<compile_context>
chip_gen: v7x
topology: tpu7x:2x2x1
jax: 0.10.0
libtpu: 0.0.40
codegen_flags: <defaults>
</compile_context>

<pallas_src>
import jax
import jax.numpy as jnp
from jax.experimental import pallas as pl
from jax.experimental.pallas import tpu as pltpu


def _round_up(x, m):
    return ((x + m - 1) // m) * m


def _pad2d(x, rows, cols):
    r, c = x.shape
    return jnp.pad(x, ((0, rows - r), (0, cols - c)))


def _make_kernel(n_valid, n_pad, compute_dtype):
    f32 = jnp.float32

    def kernel(tgt_ref, edges_ref, nodes_ref, glob_ref,
               we_e_ref, we_s_ref, we_r_ref, we_g_ref, be_ref,
               wn_n_ref, wn_s_ref, wn_r_ref, wn_g_ref, bn_ref,
               wg_g_ref, wg_n_ref, wg_e_ref, bg_ref,
               nodes_out_ref, edges_out_ref, glob_out_ref,
               nw_ref, econst_ref, acc_ref):
        t = pl.program_id(0)
        te = edges_ref.shape[0]                       # edge-tile size

        # ---------------- one-time init (first edge tile) ----------------
        @pl.when(t == 0)
        def _init():
            nodes_c = nodes_ref[...]                  # already compute_dtype
            # NW = [nodes @ We_s ; nodes @ We_r]  (gather weights pre-applied)
            nw_ref[0:n_pad, :] = jnp.dot(
                nodes_c, we_s_ref[...],
                preferred_element_type=f32).astype(compute_dtype)
            nw_ref[n_pad:, :] = jnp.dot(
                nodes_c, we_r_ref[...],
                preferred_element_type=f32).astype(compute_dtype)
            # Global contribution to edge_fn, computed once.
            econst_ref[...] = (
                jnp.dot(glob_ref[...].astype(compute_dtype), we_g_ref[...],
                        preferred_element_type=f32) + be_ref[...])
            acc_ref[...] = jnp.zeros_like(acc_ref)

        # ---------------- edge phase (every edge tile) --------------------
        tgt = tgt_ref[...]                            # (te, 2) int32
        s_col = tgt[:, 0:1]                           # sender idx   (te, 1)
        r_col = tgt[:, 1:2]                           # receiver idx + n_pad

        # Gather one-hot, (te, 2*n_pad): sender hit in cols [0, n_pad),
        # receiver hit in cols [n_pad, 2*n_pad).  Built directly in this
        # orientation -> no transpose.  Sentinel (padded) edges have
        # s == n_pad / r+n_pad == 2*n_pad -> all-zero rows.
        col = jax.lax.broadcasted_iota(jnp.int32, (te, 2 * n_pad), 1)
        tgt_g = jnp.where(col < n_pad, s_col, r_col)
        oh_gather = (col == tgt_g).astype(compute_dtype)

        gather_term = jnp.dot(oh_gather, nw_ref[...],
                              preferred_element_type=f32)          # (te, He)
        edge_term = jnp.dot(edges_ref[...], we_e_ref[...],
                            preferred_element_type=f32)            # (te, He)
        e_lin = edge_term + gather_term + econst_ref[...]

        # Sentinel edges would otherwise carry the g@We_g + be constant.
        valid = (s_col < n_pad).astype(f32)                        # (te, 1)
        edges_new = jnp.maximum(e_lin, 0.0) * valid                # (te, He) f32
        edges_out_ref[...] = edges_new.astype(edges_out_ref.dtype)

        # Scatter: reuse oh_gather as a transposed matmul
        #   acc[n, h] += sum_e oh_gather[e, n] * edges_new[e, h]
        acc_ref[...] += jax.lax.dot_general(
            oh_gather, edges_new.astype(compute_dtype),
            dimension_numbers=(((0,), (0,)), ((), ())),
            preferred_element_type=f32)

        # ---------------- node + global phase (after last tile) -----------
        @pl.when(t == pl.num_programs(0) - 1)
        def _finalize():
            g_c = glob_ref[...].astype(compute_dtype)
            nodes_c = nodes_ref[...]
            agg_s = acc_ref[0:n_pad, :]                            # f32
            agg_r = acc_ref[n_pad:, :]                             # f32

            n_lin = (jnp.dot(nodes_c, wn_n_ref[...], preferred_element_type=f32)
                     + jnp.dot(agg_s.astype(compute_dtype), wn_s_ref[...],
                               preferred_element_type=f32)
                     + jnp.dot(agg_r.astype(compute_dtype), wn_r_ref[...],
                               preferred_element_type=f32)
                     + jnp.dot(g_c, wn_g_ref[...], preferred_element_type=f32)
                     + bn_ref[...])
            nodes_new = jnp.maximum(n_lin, 0.0)
            # Mask zero-padded node rows (they carry bias/global terms) so the
            # node->global sum matches the unpadded graph.
            nrow = jax.lax.broadcasted_iota(jnp.int32, nodes_new.shape, 0)
            nodes_new = nodes_new * (nrow < n_valid).astype(f32)
            nodes_out_ref[...] = nodes_new

            # sum over senders of agg == sum over all (valid) new edges.
            edge_glob = jnp.sum(agg_s, axis=0, keepdims=True)
            node_glob = jnp.sum(nodes_new, axis=0, keepdims=True)
            g_lin = (jnp.dot(g_c, wg_g_ref[...], preferred_element_type=f32)
                     + jnp.dot(node_glob.astype(compute_dtype), wg_n_ref[...],
                               preferred_element_type=f32)
                     + jnp.dot(edge_glob.astype(compute_dtype), wg_e_ref[...],
                               preferred_element_type=f32)
                     + bg_ref[...])
            glob_out_ref[...] = jnp.maximum(g_lin, 0.0)

    return kernel


def graph_network(senders, receivers, nodes, edges, globals_, params,
                  *, edge_tile=512, compute_dtype=jnp.bfloat16):
    """Tiled Pallas GraphNetwork forward. Returns (nodes_new, edges_new, globals_new)."""
    N, Fn = nodes.shape
    E, Fe = edges.shape
    _, Fg = globals_.shape
    He = params["be"].shape[-1]
    Hn = params["bn"].shape[-1]
    Hg = params["bg"].shape[-1]

    assert edge_tile % 256 == 0, "edge tile must be a multiple of 256 (MXU aligned)"
    n_pad = _round_up(max(N, 64), 64)        # 2*n_pad multiple of 128 (MXU K-aligned)
    e_pad = _round_up(max(E, edge_tile), edge_tile)
    fn_p, fe_p, fg_p = (_round_up(d, 128) for d in (Fn, Fe, Fg))
    he_p, hn_p, hg_p = (_round_up(d, 128) for d in (He, Hn, Hg))

    # ---- lane-dense zero padding of features / parameters -------------------
    wdt = compute_dtype
    nodes_p = _pad2d(nodes.astype(jnp.float32), n_pad, fn_p).astype(wdt)
    edges_p = _pad2d(edges.astype(jnp.float32), e_pad, fe_p).astype(wdt)
    glob_p = _pad2d(globals_.astype(jnp.float32), 1, fg_p)

    we_e = _pad2d(params["we_e"], fe_p, he_p).astype(wdt)
    we_s = _pad2d(params["we_s"], fn_p, he_p).astype(wdt)
    we_r = _pad2d(params["we_r"], fn_p, he_p).astype(wdt)
    we_g = _pad2d(params["we_g"], fg_p, he_p).astype(wdt)
    be = _pad2d(params["be"], 1, he_p).astype(jnp.float32)
    wn_n = _pad2d(params["wn_n"], fn_p, hn_p).astype(wdt)
    wn_s = _pad2d(params["wn_s"], he_p, hn_p).astype(wdt)
    wn_r = _pad2d(params["wn_r"], he_p, hn_p).astype(wdt)
    wn_g = _pad2d(params["wn_g"], fg_p, hn_p).astype(wdt)
    bn = _pad2d(params["bn"], 1, hn_p).astype(jnp.float32)
    wg_g = _pad2d(params["wg_g"], fg_p, hg_p).astype(wdt)
    wg_n = _pad2d(params["wg_n"], hn_p, hg_p).astype(wdt)
    wg_e = _pad2d(params["wg_e"], he_p, hg_p).astype(wdt)
    bg = _pad2d(params["bg"], 1, hg_p).astype(jnp.float32)

    # Packed index targets (one tiny DMA per step): col 0 = sender index,
    # col 1 = receiver index + n_pad.  Padded edges get out-of-range sentinels
    # (n_pad / 2*n_pad) so their one-hot rows are all-zero.
    s_flat = jnp.pad(senders.astype(jnp.int32), (0, e_pad - E), constant_values=n_pad)
    r_flat = jnp.pad(receivers.astype(jnp.int32), (0, e_pad - E), constant_values=n_pad)
    tgt = jnp.stack([s_flat, r_flat + n_pad], axis=1).astype(jnp.int32)   # (e_pad, 2)

    n_tiles = e_pad // edge_tile

    def _full(a):
        return pl.BlockSpec(a.shape, lambda t: (0, 0))

    inputs = [tgt, edges_p, nodes_p, glob_p,
              we_e, we_s, we_r, we_g, be,
              wn_n, wn_s, wn_r, wn_g, bn,
              wg_g, wg_n, wg_e, bg]
    in_specs = [
        pl.BlockSpec((edge_tile, 2), lambda t: (t, 0)),      # packed indices
        pl.BlockSpec((edge_tile, fe_p), lambda t: (t, 0)),   # edge features
    ] + [_full(a) for a in inputs[2:]]                       # resident operands

    out_shape = (
        jax.ShapeDtypeStruct((n_pad, hn_p), jnp.float32),
        jax.ShapeDtypeStruct((e_pad, he_p), compute_dtype),
        jax.ShapeDtypeStruct((1, hg_p), jnp.float32),
    )
    out_specs = (
        pl.BlockSpec((n_pad, hn_p), lambda t: (0, 0)),       # nodes_new (resident)
        pl.BlockSpec((edge_tile, he_p), lambda t: (t, 0)),   # edges_new (streamed)
        pl.BlockSpec((1, hg_p), lambda t: (0, 0)),           # globals_new (resident)
    )
    scratch_shapes = [
        pltpu.VMEM((2 * n_pad, he_p), compute_dtype),        # NW = [n@We_s ; n@We_r]
        pltpu.VMEM((1, he_p), jnp.float32),                  # g@We_g + be
        pltpu.VMEM((2 * n_pad, he_p), jnp.float32),          # [agg_s ; agg_r] accumulator
    ]

    # VMEM budget: resident operands/outputs (counted double-buffered) +
    # double-buffered edge stream + scratch, clamped to the physical chip VMEM.
    itemsize = jnp.dtype(compute_dtype).itemsize
    streamed = 2 * (edge_tile * 2 * 4
                    + edge_tile * fe_p * itemsize
                    + edge_tile * he_p * itemsize)
    resident = 2 * (sum(int(x.size) * x.dtype.itemsize for x in inputs[2:])
                    + 4 * (n_pad * hn_p + hg_p))
    scratch_b = 2 * n_pad * he_p * (itemsize + 4) + 4 * he_p
    needed = streamed + resident + scratch_b
    try:
        vmem_cap = int(pltpu.get_tpu_info().vmem_capacity_bytes)
    except Exception:
        vmem_cap = 64 * 2**20                                # conservative (v7x)
    vmem_limit = int(min(0.85 * vmem_cap, max(4 * needed + (16 << 20), 48 << 20)))

    flops = (2 * e_pad * he_p * (4 * n_pad + fe_p)           # gather + edge + scatter dots
             + 4 * n_pad * fn_p * he_p                       # NW precompute
             + 2 * n_pad * hn_p * (fn_p + 2 * he_p + fg_p)   # node phase
             + 2 * hg_p * (fg_p + hn_p + he_p))              # global phase
    bytes_accessed = int(sum(int(x.size) * x.dtype.itemsize for x in inputs)
                         + 4 * (n_pad * hn_p + hg_p) + e_pad * he_p * itemsize)

    kernel = _make_kernel(N, n_pad, compute_dtype)

    nodes_o, edges_o, glob_o = pl.pallas_call(
        kernel,
        grid=(n_tiles,),
        in_specs=in_specs,
        out_specs=out_specs,
        out_shape=out_shape,
        scratch_shapes=scratch_shapes,
        compiler_params=pltpu.CompilerParams(
            dimension_semantics=("arbitrary",),   # reduction into VMEM accumulators
            vmem_limit_bytes=vmem_limit),
        cost_estimate=pl.CostEstimate(flops=int(flops), transcendentals=0,
                                      bytes_accessed=bytes_accessed),
    )(*inputs)

    return (nodes_o[:N, :Hn],
            edges_o[:E, :He].astype(jnp.float32),
            glob_o[:, :Hg])


def reference(senders, receivers, nodes, edges, globals_, params):
    """Pure-JAX f32 reference of the same forward pass."""
    N = nodes.shape[0]
    g = globals_
    n_s = jnp.take(nodes, senders, axis=0)
    n_r = jnp.take(nodes, receivers, axis=0)
    edges_new = jax.nn.relu(
        edges @ params["we_e"] + n_s @ params["we_s"] + n_r @ params["we_r"]
        + g @ params["we_g"] + params["be"])
    agg_s = jax.ops.segment_sum(edges_new, senders, num_segments=N)
    agg_r = jax.ops.segment_sum(edges_new, receivers, num_segments=N)
    nodes_new = jax.nn.relu(
        nodes @ params["wn_n"] + agg_s @ params["wn_s"] + agg_r @ params["wn_r"]
        + g @ params["wn_g"] + params["bn"])
    edge_glob = jnp.sum(edges_new, axis=0, keepdims=True)
    node_glob = jnp.sum(nodes_new, axis=0, keepdims=True)
    globals_new = jax.nn.relu(
        g @ params["wg_g"] + node_glob @ params["wg_n"] + edge_glob @ params["wg_e"]
        + params["bg"])
    return nodes_new, edges_new, globals_new


def _check(name, got, want, tol_scale):
    err = float(jnp.max(jnp.abs(got.astype(jnp.float32) - want)))
    scale = max(1.0, float(jnp.max(jnp.abs(want))))
    assert err <= tol_scale * scale, f"{name}: max err {err} > {tol_scale * scale}"


if __name__ == "__main__":
    # Small graph, but large enough that the edge grid has 3 tiles at the
    # default edge_tile=512 (tests init / accumulate / finalize phases):
    # 64 nodes, 1200 edges, feats 8 -> 16.
    N, E = 64, 1200
    Fn = Fe = Fg = 8
    He = Hn = Hg = 16

    key = jax.random.PRNGKey(0)
    ks = jax.random.split(key, 20)

    nodes = jax.random.normal(ks[0], (N, Fn), jnp.float32)
    edges = jax.random.normal(ks[1], (E, Fe), jnp.float32)
    globals_ = jax.random.normal(ks[2], (1, Fg), jnp.float32)
    senders = jax.random.randint(ks[3], (E,), 0, N, jnp.int32)
    receivers = jax.random.randint(ks[4], (E,), 0, N, jnp.int32)

    s = 0.1
    params = {
        "we_e": s * jax.random.normal(ks[5], (Fe, He), jnp.float32),
        "we_s": s * jax.random.normal(ks[6], (Fn, He), jnp.float32),
        "we_r": s * jax.random.normal(ks[7], (Fn, He), jnp.float32),
        "we_g": s * jax.random.normal(ks[8], (Fg, He), jnp.float32),
        "be":   s * jax.random.normal(ks[9], (1, He), jnp.float32),
        "wn_n": s * jax.random.normal(ks[10], (Fn, Hn), jnp.float32),
        "wn_s": s * jax.random.normal(ks[11], (He, Hn), jnp.float32),
        "wn_r": s * jax.random.normal(ks[12], (He, Hn), jnp.float32),
        "wn_g": s * jax.random.normal(ks[13], (Fg, Hn), jnp.float32),
        "bn":   s * jax.random.normal(ks[14], (1, Hn), jnp.float32),
        "wg_g": s * jax.random.normal(ks[15], (Fg, Hg), jnp.float32),
        "wg_n": s * jax.random.normal(ks[16], (Hn, Hg), jnp.float32),
        "wg_e": s * jax.random.normal(ks[17], (He, Hg), jnp.float32),
        "bg":   s * jax.random.normal(ks[18], (1, Hg), jnp.float32),
    }

    ref = reference(senders, receivers, nodes, edges, globals_, params)

    # Exact path: f32 streamed operands / f32 MXU -> tight match.
    out_f32 = jax.block_until_ready(graph_network(
        senders, receivers, nodes, edges, globals_, params,
        compute_dtype=jnp.float32))
    # Fast path: bf16 streamed edges/nodes + bf16 MXU operands (f32 accumulate).
    out_bf16 = jax.block_until_ready(graph_network(
        senders, receivers, nodes, edges, globals_, params,
        compute_dtype=jnp.bfloat16))

    names = ("nodes", "edges", "globals")
    for name, got, want in zip(names, out_f32, ref):
        _check(name + "/f32", got, want, 1e-4)
    for name, got, want in zip(names, out_bf16, ref):
        _check(name + "/bf16", got, want, 5e-2)

    print("KERNEL_OK")
</pallas_src>

<mosaic_0001>
module attributes {stable_mosaic.version = 11 : i64} {
  func.func @kernel(%arg0: i32, %arg1: memref<512x2xi32, #tpu.memory_space<vmem>>, %arg2: memref<512x128xf32, #tpu.memory_space<vmem>>, %arg3: memref<64x128xf32, #tpu.memory_space<vmem>>, %arg4: memref<1x128xf32, #tpu.memory_space<vmem>>, %arg5: memref<128x128xf32, #tpu.memory_space<vmem>>, %arg6: memref<128x128xf32, #tpu.memory_space<vmem>>, %arg7: memref<128x128xf32, #tpu.memory_space<vmem>>, %arg8: memref<128x128xf32, #tpu.memory_space<vmem>>, %arg9: memref<1x128xf32, #tpu.memory_space<vmem>>, %arg10: memref<128x128xf32, #tpu.memory_space<vmem>>, %arg11: memref<128x128xf32, #tpu.memory_space<vmem>>, %arg12: memref<128x128xf32, #tpu.memory_space<vmem>>, %arg13: memref<128x128xf32, #tpu.memory_space<vmem>>, %arg14: memref<1x128xf32, #tpu.memory_space<vmem>>, %arg15: memref<128x128xf32, #tpu.memory_space<vmem>>, %arg16: memref<128x128xf32, #tpu.memory_space<vmem>>, %arg17: memref<128x128xf32, #tpu.memory_space<vmem>>, %arg18: memref<1x128xf32, #tpu.memory_space<vmem>>, %arg19: memref<64x128xf32, #tpu.memory_space<vmem>>, %arg20: memref<512x128xf32, #tpu.memory_space<vmem>>, %arg21: memref<1x128xf32, #tpu.memory_space<vmem>>, %arg22: memref<128x128xf32, #tpu.memory_space<vmem>>, %arg23: memref<1x128xf32, #tpu.memory_space<vmem>>, %arg24: memref<128x128xf32, #tpu.memory_space<vmem>>) attributes {dimension_semantics = [#tpu.dimension_semantics<arbitrary>], iteration_bounds = array<i64: 3>, scalar_prefetch = 0 : i64, scratch_operands = 3 : i64, tpu.core_type = #tpu.core_type<tc>, window_params = [{transform_indices = @transform_0, window_bounds = array<i64: 512, 2>}, {transform_indices = @transform_1, window_bounds = array<i64: 512, 128>}, {pipeline_mode = #tpu.pipeline_mode<synchronous>, transform_indices = @transform_2, window_bounds = array<i64: 64, 128>}, {pipeline_mode = #tpu.pipeline_mode<synchronous>, transform_indices = @transform_3, window_bounds = array<i64: 1, 128>}, {pipeline_mode = #tpu.pipeline_mode<synchronous>, transform_indices = @transform_4, window_bounds = array<i64: 128, 128>}, {pipeline_mode = #tpu.pipeline_mode<synchronous>, transform_indices = @transform_5, window_bounds = array<i64: 128, 128>}, {pipeline_mode = #tpu.pipeline_mode<synchronous>, transform_indices = @transform_6, window_bounds = array<i64: 128, 128>}, {pipeline_mode = #tpu.pipeline_mode<synchronous>, transform_indices = @transform_7, window_bounds = array<i64: 128, 128>}, {pipeline_mode = #tpu.pipeline_mode<synchronous>, transform_indices = @transform_8, window_bounds = array<i64: 1, 128>}, {pipeline_mode = #tpu.pipeline_mode<synchronous>, transform_indices = @transform_9, window_bounds = array<i64: 128, 128>}, {pipeline_mode = #tpu.pipeline_mode<synchronous>, transform_indices = @transform_10, window_bounds = array<i64: 128, 128>}, {pipeline_mode = #tpu.pipeline_mode<synchronous>, transform_indices = @transform_11, window_bounds = array<i64: 128, 128>}, {pipeline_mode = #tpu.pipeline_mode<synchronous>, transform_indices = @transform_12, window_bounds = array<i64: 128, 128>}, {pipeline_mode = #tpu.pipeline_mode<synchronous>, transform_indices = @transform_13, window_bounds = array<i64: 1, 128>}, {pipeline_mode = #tpu.pipeline_mode<synchronous>, transform_indices = @transform_14, window_bounds = array<i64: 128, 128>}, {pipeline_mode = #tpu.pipeline_mode<synchronous>, transform_indices = @transform_15, window_bounds = array<i64: 128, 128>}, {pipeline_mode = #tpu.pipeline_mode<synchronous>, transform_indices = @transform_16, window_bounds = array<i64: 128, 128>}, {pipeline_mode = #tpu.pipeline_mode<synchronous>, transform_indices = @transform_17, window_bounds = array<i64: 1, 128>}, {pipeline_mode = #tpu.pipeline_mode<synchronous>, transform_indices = @transform_18, window_bounds = array<i64: 64, 128>}, {transform_indices = @transform_19, window_bounds = array<i64: 512, 128>}, {pipeline_mode = #tpu.pipeline_mode<synchronous>, transform_indices = @transform_20, window_bounds = array<i64: 1, 128>}]} {
    %c0_i32 = arith.constant 0 : i32
    %0 = arith.cmpi eq, %arg0, %c0_i32 : i32
    %1 = arith.extui %0 : i1 to i32
    %c0_i32_0 = arith.constant 0 : i32
    %2 = arith.cmpi ne, %1, %c0_i32_0 : i32
    scf.if %2 {
      %c0_21 = arith.constant 0 : index
      %c0_22 = arith.constant 0 : index
      %42 = vector.load %arg3[%c0_21, %c0_22] : memref<64x128xf32, #tpu.memory_space<vmem>>, vector<64x128xf32>
      %c0_23 = arith.constant 0 : index
      %c0_24 = arith.constant 0 : index
      %43 = vector.load %arg6[%c0_23, %c0_24] : memref<128x128xf32, #tpu.memory_space<vmem>>, vector<128x128xf32>
      %cst_25 = arith.constant dense<0.000000e+00> : vector<64x128xf32>
      %44 = tpu.matmul %42, %43, %cst_25 {dimension_numbers = #tpu.dot_dimension_numbers<[1], [0], [0], [1], [0, 0, 1, 1], [], []>} : vector<64x128xf32>, vector<128x128xf32>, vector<64x128xf32> -> vector<64x128xf32>
      %c0_26 = arith.constant 0 : index
      %c0_27 = arith.constant 0 : index
      %45 = vector.load %arg22[%c0_26, %c0_27] : memref<128x128xf32, #tpu.memory_space<vmem>>, vector<64x128xf32>
      tpu.vector_store %arg22[%c0_26, %c0_27], %44 {strides = array<i32>} : memref<128x128xf32, #tpu.memory_space<vmem>>, vector<64x128xf32>,
      %c0_28 = arith.constant 0 : index
      %c0_29 = arith.constant 0 : index
      %46 = vector.load %arg7[%c0_28, %c0_29] : memref<128x128xf32, #tpu.memory_space<vmem>>, vector<128x128xf32>
      %cst_30 = arith.constant dense<0.000000e+00> : vector<64x128xf32>
      %47 = tpu.matmul %42, %46, %cst_30 {dimension_numbers = #tpu.dot_dimension_numbers<[1], [0], [0], [1], [0, 0, 1, 1], [], []>} : vector<64x128xf32>, vector<128x128xf32>, vector<64x128xf32> -> vector<64x128xf32>
      %c64 = arith.constant 64 : index
      %c0_31 = arith.constant 0 : index
      %48 = vector.load %arg22[%c64, %c0_31] : memref<128x128xf32, #tpu.memory_space<vmem>>, vector<64x128xf32>
      tpu.vector_store %arg22[%c64, %c0_31], %47 {strides = array<i32>} : memref<128x128xf32, #tpu.memory_space<vmem>>, vector<64x128xf32>,
      %c0_32 = arith.constant 0 : index
      %c0_33 = arith.constant 0 : index
      %49 = vector.load %arg4[%c0_32, %c0_33] : memref<1x128xf32, #tpu.memory_space<vmem>>, vector<1x128xf32>
      %c0_34 = arith.constant 0 : index
      %c0_35 = arith.constant 0 : index
      %50 = vector.load %arg8[%c0_34, %c0_35] : memref<128x128xf32, #tpu.memory_space<vmem>>, vector<128x128xf32>
      %cst_36 = arith.constant dense<0.000000e+00> : vector<1x128xf32>
      %51 = tpu.matmul %49, %50, %cst_36 {dimension_numbers = #tpu.dot_dimension_numbers<[1], [0], [0], [1], [0, 0, 1, 1], [], []>} : vector<1x128xf32>, vector<128x128xf32>, vector<1x128xf32> -> vector<1x128xf32>
      %c0_37 = arith.constant 0 : index
      %c0_38 = arith.constant 0 : index
      %52 = vector.load %arg9[%c0_37, %c0_38] : memref<1x128xf32, #tpu.memory_space<vmem>>, vector<1x128xf32>
      %53 = arith.addf %51, %52 : vector<1x128xf32>
      %c0_39 = arith.constant 0 : index
      %c0_40 = arith.constant 0 : index
      %54 = vector.load %arg23[%c0_39, %c0_40] : memref<1x128xf32, #tpu.memory_space<vmem>>, vector<1x128xf32>
      tpu.vector_store %arg23[%c0_39, %c0_40], %53 {strides = array<i32>} : memref<1x128xf32, #tpu.memory_space<vmem>>, vector<1x128xf32>,
      %cst_41 = arith.constant 0.000000e+00 : f32
      %55 = vector.broadcast %cst_41 : f32 to vector<128x128xf32>
      %c0_42 = arith.constant 0 : index
      %c0_43 = arith.constant 0 : index
      %56 = vector.load %arg24[%c0_42, %c0_43] : memref<128x128xf32, #tpu.memory_space<vmem>>, vector<128x128xf32>
      tpu.vector_store %arg24[%c0_42, %c0_43], %55 {strides = array<i32>} : memref<128x128xf32, #tpu.memory_space<vmem>>, vector<128x128xf32>,
    } else {
    }
    %c0 = arith.constant 0 : index
    %c0_1 = arith.constant 0 : index
    %3 = vector.load %arg1[%c0, %c0_1] : memref<512x2xi32, #tpu.memory_space<vmem>>, vector<512x2xi32>
    %4 = vector.extract_strided_slice %3 {offsets = [0, 0], sizes = [512, 1], strides = [1, 1]} : vector<512x2xi32> to vector<512x1xi32>
    %5 = vector.extract_strided_slice %3 {offsets = [0, 1], sizes = [512, 1], strides = [1, 1]} : vector<512x2xi32> to vector<512x1xi32>
    %6 = tpu.iota {dimensions = array<i32: 1>} : vector<512x128xi32>
    %c64_i32 = arith.constant 64 : i32
    %7 = vector.broadcast %c64_i32 : i32 to vector<512x128xi32>
    %8 = arith.cmpi slt, %6, %7 : vector<512x128xi32>
    %9 = vector.shape_cast %4 : vector<512x1xi32> to vector<512x1xi32>
    %10 = vector.broadcast %9 : vector<512x1xi32> to vector<512x128xi32>
    %11 = vector.shape_cast %5 : vector<512x1xi32> to vector<512x1xi32>
    %12 = vector.broadcast %11 : vector<512x1xi32> to vector<512x128xi32>
    %13 = arith.select %8, %10, %12 : vector<512x128xi1>, vector<512x128xi32>
    %14 = arith.cmpi eq, %6, %13 : vector<512x128xi32>
    %15 = arith.extui %14 : vector<512x128xi1> to vector<512x128xi32>
    %16 = arith.sitofp %15 : vector<512x128xi32> to vector<512x128xf32>
    %c0_2 = arith.constant 0 : index
    %c0_3 = arith.constant 0 : index
    %17 = vector.load %arg22[%c0_2, %c0_3] : memref<128x128xf32, #tpu.memory_space<vmem>>, vector<128x128xf32>
    %cst = arith.constant dense<0.000000e+00> : vector<512x128xf32>
    %18 = tpu.matmul %16, %17, %cst {dimension_numbers = #tpu.dot_dimension_numbers<[1], [0], [0], [1], [0, 0, 1, 1], [], []>} : vector<512x128xf32>, vector<128x128xf32>, vector<512x128xf32> -> vector<512x128xf32>
    %c0_4 = arith.constant 0 : index
    %c0_5 = arith.constant 0 : index
    %19 = vector.load %arg2[%c0_4, %c0_5] : memref<512x128xf32, #tpu.memory_space<vmem>>, vector<512x128xf32>
    %c0_6 = arith.constant 0 : index
    %c0_7 = arith.constant 0 : index
    %20 = vector.load %arg5[%c0_6, %c0_7] : memref<128x128xf32, #tpu.memory_space<vmem>>, vector<128x128xf32>
    %cst_8 = arith.constant dense<0.000000e+00> : vector<512x128xf32>
    %21 = tpu.matmul %19, %20, %cst_8 {dimension_numbers = #tpu.dot_dimension_numbers<[1], [0], [0], [1], [0, 0, 1, 1], [], []>} : vector<512x128xf32>, vector<128x128xf32>, vector<512x128xf32> -> vector<512x128xf32>
    %22 = arith.addf %21, %18 : vector<512x128xf32>
    %c0_9 = arith.constant 0 : index
    %c0_10 = arith.constant 0 : index
    %23 = vector.load %arg23[%c0_9, %c0_10] : memref<1x128xf32, #tpu.memory_space<vmem>>, vector<1x128xf32>
    %24 = vector.broadcast %23 : vector<1x128xf32> to vector<512x128xf32>
    %25 = arith.addf %22, %24 : vector<512x128xf32>
    %c64_i32_11 = arith.constant 64 : i32
    %26 = vector.broadcast %c64_i32_11 : i32 to vector<512x1xi32>
    %27 = arith.cmpi slt, %4, %26 : vector<512x1xi32>
    %28 = arith.extui %27 : vector<512x1xi1> to vector<512x1xi32>
    %29 = arith.sitofp %28 : vector<512x1xi32> to vector<512x1xf32>
    %cst_12 = arith.constant 0.000000e+00 : f32
    %30 = vector.broadcast %cst_12 : f32 to vector<512x128xf32>
    %31 = arith.maximumf %25, %30 : vector<512x128xf32>
    %32 = vector.broadcast %29 : vector<512x1xf32> to vector<512x128xf32>
    %33 = arith.mulf %31, %32 : vector<512x128xf32>
    %c0_13 = arith.constant 0 : index
    %c0_14 = arith.constant 0 : index
    %34 = vector.load %arg20[%c0_13, %c0_14] : memref<512x128xf32, #tpu.memory_space<vmem>>, vector<512x128xf32>
    tpu.vector_store %arg20[%c0_13, %c0_14], %33 {strides = array<i32>} : memref<512x128xf32, #tpu.memory_space<vmem>>, vector<512x128xf32>,
    %c0_15 = arith.constant 0 : index
    %c0_16 = arith.constant 0 : index
    %35 = vector.load %arg24[%c0_15, %c0_16] : memref<128x128xf32, #tpu.memory_space<vmem>>, vector<128x128xf32>
    %cst_17 = arith.constant dense<0.000000e+00> : vector<128x128xf32>
    %36 = tpu.matmul %16, %33, %cst_17 {dimension_numbers = #tpu.dot_dimension_numbers<[0], [0], [1], [1], [0, 1, 1, 1], [], []>} : vector<512x128xf32>, vector<512x128xf32>, vector<128x128xf32> -> vector<128x128xf32>
    %37 = arith.addf %35, %36 : vector<128x128xf32>
    %c0_18 = arith.constant 0 : index
    %c0_19 = arith.constant 0 : index
    %38 = vector.load %arg24[%c0_18, %c0_19] : memref<128x128xf32, #tpu.memory_space<vmem>>, vector<128x128xf32>
    tpu.vector_store %arg24[%c0_18, %c0_19], %37 {strides = array<i32>} : memref<128x128xf32, #tpu.memory_space<vmem>>, vector<128x128xf32>,
    %c2_i32 = arith.constant 2 : i32
    %39 = arith.cmpi eq, %arg0, %c2_i32 : i32
    %40 = arith.extui %39 : i1 to i32
    %c0_i32_20 = arith.constant 0 : i32
    %41 = arith.cmpi ne, %40, %c0_i32_20 : i32
    scf.if %41 {
      %c0_21 = arith.constant 0 : index
      %c0_22 = arith.constant 0 : index
      %42 = vector.load %arg4[%c0_21, %c0_22] : memref<1x128xf32, #tpu.memory_space<vmem>>, vector<1x128xf32>
      %c0_23 = arith.constant 0 : index
      %c0_24 = arith.constant 0 : index
      %43 = vector.load %arg3[%c0_23, %c0_24] : memref<64x128xf32, #tpu.memory_space<vmem>>, vector<64x128xf32>
      %c0_25 = arith.constant 0 : index
      %c0_26 = arith.constant 0 : index
      %44 = vector.load %arg24[%c0_25, %c0_26] : memref<128x128xf32, #tpu.memory_space<vmem>>, vector<64x128xf32>
      %c64 = arith.constant 64 : index
      %c0_27 = arith.constant 0 : index
      %45 = vector.load %arg24[%c64, %c0_27] : memref<128x128xf32, #tpu.memory_space<vmem>>, vector<64x128xf32>
      %c0_28 = arith.constant 0 : index
      %c0_29 = arith.constant 0 : index
      %46 = vector.load %arg10[%c0_28, %c0_29] : memref<128x128xf32, #tpu.memory_space<vmem>>, vector<128x128xf32>
      %cst_30 = arith.constant dense<0.000000e+00> : vector<64x128xf32>
      %47 = tpu.matmul %43, %46, %cst_30 {dimension_numbers = #tpu.dot_dimension_numbers<[1], [0], [0], [1], [0, 0, 1, 1], [], []>} : vector<64x128xf32>, vector<128x128xf32>, vector<64x128xf32> -> vector<64x128xf32>
      %c0_31 = arith.constant 0 : index
      %c0_32 = arith.constant 0 : index
      %48 = vector.load %arg11[%c0_31, %c0_32] : memref<128x128xf32, #tpu.memory_space<vmem>>, vector<128x128xf32>
      %cst_33 = arith.constant dense<0.000000e+00> : vector<64x128xf32>
      %49 = tpu.matmul %44, %48, %cst_33 {dimension_numbers = #tpu.dot_dimension_numbers<[1], [0], [0], [1], [0, 0, 1, 1], [], []>} : vector<64x128xf32>, vector<128x128xf32>, vector<64x128xf32> -> vector<64x128xf32>
      %50 = arith.addf %47, %49 : vector<64x128xf32>
      %c0_34 = arith.constant 0 : index
      %c0_35 = arith.constant 0 : index
      %51 = vector.load %arg12[%c0_34, %c0_35] : memref<128x128xf32, #tpu.memory_space<vmem>>, vector<128x128xf32>
      %cst_36 = arith.constant dense<0.000000e+00> : vector<64x128xf32>
      %52 = tpu.matmul %45, %51, %cst_36 {dimension_numbers = #tpu.dot_dimension_numbers<[1], [0], [0], [1], [0, 0, 1, 1], [], []>} : vector<64x128xf32>, vector<128x128xf32>, vector<64x128xf32> -> vector<64x128xf32>
      %53 = arith.addf %50, %52 : vector<64x128xf32>
      %c0_37 = arith.constant 0 : index
      %c0_38 = arith.constant 0 : index
      %54 = vector.load %arg13[%c0_37, %c0_38] : memref<128x128xf32, #tpu.memory_space<vmem>>, vector<128x128xf32>
      %cst_39 = arith.constant dense<0.000000e+00> : vector<1x128xf32>
      %55 = tpu.matmul %42, %54, %cst_39 {dimension_numbers = #tpu.dot_dimension_numbers<[1], [0], [0], [1], [0, 0, 1, 1], [], []>} : vector<1x128xf32>, vector<128x128xf32>, vector<1x128xf32> -> vector<1x128xf32>
      %56 = vector.broadcast %55 : vector<1x128xf32> to vector<64x128xf32>
      %57 = arith.addf %53, %56 : vector<64x128xf32>
      %c0_40 = arith.constant 0 : index
      %c0_41 = arith.constant 0 : index
      %58 = vector.load %arg14[%c0_40, %c0_41] : memref<1x128xf32, #tpu.memory_space<vmem>>, vector<1x128xf32>
      %59 = vector.broadcast %58 : vector<1x128xf32> to vector<64x128xf32>
      %60 = arith.addf %57, %59 : vector<64x128xf32>
      %cst_42 = arith.constant 0.000000e+00 : f32
      %61 = vector.broadcast %cst_42 : f32 to vector<64x128xf32>
      %62 = arith.maximumf %60, %61 : vector<64x128xf32>
      %63 = tpu.iota {dimensions = array<i32: 0>} : vector<64x128xi32>
      %c64_i32_43 = arith.constant 64 : i32
      %64 = vector.broadcast %c64_i32_43 : i32 to vector<64x128xi32>
      %65 = arith.cmpi slt, %63, %64 : vector<64x128xi32>
      %66 = arith.extui %65 : vector<64x128xi1> to vector<64x128xi32>
      %67 = arith.sitofp %66 : vector<64x128xi32> to vector<64x128xf32>
      %68 = arith.mulf %62, %67 : vector<64x128xf32>
      %c0_44 = arith.constant 0 : index
      %c0_45 = arith.constant 0 : index
      %69 = vector.load %arg19[%c0_44, %c0_45] : memref<64x128xf32, #tpu.memory_space<vmem>>, vector<64x128xf32>
      tpu.vector_store %arg19[%c0_44, %c0_45], %68 {strides = array<i32>} : memref<64x128xf32, #tpu.memory_space<vmem>>, vector<64x128xf32>,
      %cst_46 = arith.constant dense<0.000000e+00> : vector<128xf32>
      %70 = vector.multi_reduction <add>, %44, %cst_46 [0] : vector<64x128xf32> to vector<128xf32>
      %71 = vector.shape_cast %70 : vector<128xf32> to vector<1x128xf32>
      %cst_47 = arith.constant dense<0.000000e+00> : vector<128xf32>
      %72 = vector.multi_reduction <add>, %68, %cst_47 [0] : vector<64x128xf32> to vector<128xf32>
      %73 = vector.shape_cast %72 : vector<128xf32> to vector<1x128xf32>
      %c0_48 = arith.constant 0 : index
      %c0_49 = arith.constant 0 : index
      %74 = vector.load %arg15[%c0_48, %c0_49] : memref<128x128xf32, #tpu.memory_space<vmem>>, vector<128x128xf32>
      %cst_50 = arith.constant dense<0.000000e+00> : vector<1x128xf32>
      %75 = tpu.matmul %42, %74, %cst_50 {dimension_numbers = #tpu.dot_dimension_numbers<[1], [0], [0], [1], [0, 0, 1, 1], [], []>} : vector<1x128xf32>, vector<128x128xf32>, vector<1x128xf32> -> vector<1x128xf32>
      %c0_51 = arith.constant 0 : index
      %c0_52 = arith.constant 0 : index
      %76 = vector.load %arg16[%c0_51, %c0_52] : memref<128x128xf32, #tpu.memory_space<vmem>>, vector<128x128xf32>
      %cst_53 = arith.constant dense<0.000000e+00> : vector<1x128xf32>
      %77 = tpu.matmul %73, %76, %cst_53 {dimension_numbers = #tpu.dot_dimension_numbers<[1], [0], [0], [1], [0, 0, 1, 1], [], []>} : vector<1x128xf32>, vector<128x128xf32>, vector<1x128xf32> -> vector<1x128xf32>
      %78 = arith.addf %75, %77 : vector<1x128xf32>
      %c0_54 = arith.constant 0 : index
      %c0_55 = arith.constant 0 : index
      %79 = vector.load %arg17[%c0_54, %c0_55] : memref<128x128xf32, #tpu.memory_space<vmem>>, vector<128x128xf32>
      %cst_56 = arith.constant dense<0.000000e+00> : vector<1x128xf32>
      %80 = tpu.matmul %71, %79, %cst_56 {dimension_numbers = #tpu.dot_dimension_numbers<[1], [0], [0], [1], [0, 0, 1, 1], [], []>} : vector<1x128xf32>, vector<128x128xf32>, vector<1x128xf32> -> vector<1x128xf32>
      %81 = arith.addf %78, %80 : vector<1x128xf32>
      %c0_57 = arith.constant 0 : index
      %c0_58 = arith.constant 0 : index
      %82 = vector.load %arg18[%c0_57, %c0_58] : memref<1x128xf32, #tpu.memory_space<vmem>>, vector<1x128xf32>
      %83 = arith.addf %81, %82 : vector<1x128xf32>
      %cst_59 = arith.constant 0.000000e+00 : f32
      %84 = vector.broadcast %cst_59 : f32 to vector<1x128xf32>
      %85 = arith.maximumf %83, %84 : vector<1x128xf32>
      %c0_60 = arith.constant 0 : index
      %c0_61 = arith.constant 0 : index
      %86 = vector.load %arg21[%c0_60, %c0_61] : memref<1x128xf32, #tpu.memory_space<vmem>>, vector<1x128xf32>
      tpu.vector_store %arg21[%c0_60, %c0_61], %85 {strides = array<i32>} : memref<1x128xf32, #tpu.memory_space<vmem>>, vector<1x128xf32>,
    } else {
    }
    return
  }
  func.func @transform_0(%arg0: i32) -> (i32, i32) {
    %c0_i32 = arith.constant 0 : i32
    %c0_i32_0 = arith.constant 0 : i32
    return %arg0, %c0_i32 : i32, i32
  }
  func.func @transform_1(%arg0: i32) -> (i32, i32) {
    %c0_i32 = arith.constant 0 : i32
    %c0_i32_0 = arith.constant 0 : i32
    return %arg0, %c0_i32 : i32, i32
  }
  func.func @transform_2(%arg0: i32) -> (i32, i32) {
    %c0_i32 = arith.constant 0 : i32
    %c0_i32_0 = arith.constant 0 : i32
    %c0_i32_1 = arith.constant 0 : i32
    return %c0_i32, %c0_i32_0 : i32, i32
  }
  func.func @transform_3(%arg0: i32) -> (i32, i32) {
    %c0_i32 = arith.constant 0 : i32
    %c0_i32_0 = arith.constant 0 : i32
    %c0_i32_1 = arith.constant 0 : i32
    return %c0_i32, %c0_i32_0 : i32, i32
  }
  func.func @transform_4(%arg0: i32) -> (i32, i32) {
    %c0_i32 = arith.constant 0 : i32
    %c0_i32_0 = arith.constant 0 : i32
    %c0_i32_1 = arith.constant 0 : i32
    return %c0_i32, %c0_i32_0 : i32, i32
  }
  func.func @transform_5(%arg0: i32) -> (i32, i32) {
    %c0_i32 = arith.constant 0 : i32
    %c0_i32_0 = arith.constant 0 : i32
    %c0_i32_1 = arith.constant 0 : i32
    return %c0_i32, %c0_i32_0 : i32, i32
  }
  func.func @transform_6(%arg0: i32) -> (i32, i32) {
    %c0_i32 = arith.constant 0 : i32
    %c0_i32_0 = arith.constant 0 : i32
    %c0_i32_1 = arith.constant 0 : i32
    return %c0_i32, %c0_i32_0 : i32, i32
  }
  func.func @transform_7(%arg0: i32) -> (i32, i32) {
    %c0_i32 = arith.constant 0 : i32
    %c0_i32_0 = arith.constant 0 : i32
    %c0_i32_1 = arith.constant 0 : i32
    return %c0_i32, %c0_i32_0 : i32, i32
  }
  func.func @transform_8(%arg0: i32) -> (i32, i32) {
    %c0_i32 = arith.constant 0 : i32
    %c0_i32_0 = arith.constant 0 : i32
    %c0_i32_1 = arith.constant 0 : i32
    return %c0_i32, %c0_i32_0 : i32, i32
  }
  func.func @transform_9(%arg0: i32) -> (i32, i32) {
    %c0_i32 = arith.constant 0 : i32
    %c0_i32_0 = arith.constant 0 : i32
    %c0_i32_1 = arith.constant 0 : i32
    return %c0_i32, %c0_i32_0 : i32, i32
  }
  func.func @transform_10(%arg0: i32) -> (i32, i32) {
    %c0_i32 = arith.constant 0 : i32
    %c0_i32_0 = arith.constant 0 : i32
    %c0_i32_1 = arith.constant 0 : i32
    return %c0_i32, %c0_i32_0 : i32, i32
  }
  func.func @transform_11(%arg0: i32) -> (i32, i32) {
    %c0_i32 = arith.constant 0 : i32
    %c0_i32_0 = arith.constant 0 : i32
    %c0_i32_1 = arith.constant 0 : i32
    return %c0_i32, %c0_i32_0 : i32, i32
  }
  func.func @transform_12(%arg0: i32) -> (i32, i32) {
    %c0_i32 = arith.constant 0 : i32
    %c0_i32_0 = arith.constant 0 : i32
    %c0_i32_1 = arith.constant 0 : i32
    return %c0_i32, %c0_i32_0 : i32, i32
  }
  func.func @transform_13(%arg0: i32) -> (i32, i32) {
    %c0_i32 = arith.constant 0 : i32
    %c0_i32_0 = arith.constant 0 : i32
    %c0_i32_1 = arith.constant 0 : i32
    return %c0_i32, %c0_i32_0 : i32, i32
  }
  func.func @transform_14(%arg0: i32) -> (i32, i32) {
    %c0_i32 = arith.constant 0 : i32
    %c0_i32_0 = arith.constant 0 : i32
    %c0_i32_1 = arith.constant 0 : i32
    return %c0_i32, %c0_i32_0 : i32, i32
  }
  func.func @transform_15(%arg0: i32) -> (i32, i32) {
    %c0_i32 = arith.constant 0 : i32
    %c0_i32_0 = arith.constant 0 : i32
    %c0_i32_1 = arith.constant 0 : i32
    return %c0_i32, %c0_i32_0 : i32, i32
  }
  func.func @transform_16(%arg0: i32) -> (i32, i32) {
    %c0_i32 = arith.constant 0 : i32
    %c0_i32_0 = arith.constant 0 : i32
    %c0_i32_1 = arith.constant 0 : i32
    return %c0_i32, %c0_i32_0 : i32, i32
  }
  func.func @transform_17(%arg0: i32) -> (i32, i32) {
    %c0_i32 = arith.constant 0 : i32
    %c0_i32_0 = arith.constant 0 : i32
    %c0_i32_1 = arith.constant 0 : i32
    return %c0_i32, %c0_i32_0 : i32, i32
  }
  func.func @transform_18(%arg0: i32) -> (i32, i32) {
    %c0_i32 = arith.constant 0 : i32
    %c0_i32_0 = arith.constant 0 : i32
    %c0_i32_1 = arith.constant 0 : i32
    return %c0_i32, %c0_i32_0 : i32, i32
  }
  func.func @transform_19(%arg0: i32) -> (i32, i32) {
    %c0_i32 = arith.constant 0 : i32
    %c0_i32_0 = arith.constant 0 : i32
    return %arg0, %c0_i32 : i32, i32
  }
  func.func @transform_20(%arg0: i32) -> (i32, i32) {
    %c0_i32 = arith.constant 0 : i32
    %c0_i32_0 = arith.constant 0 : i32
    %c0_i32_1 = arith.constant 0 : i32
    return %c0_i32, %c0_i32_0 : i32, i32
  }
}

</mosaic_0001>

<bundles_post_ra>
// kernel: tpu_custom_call.1
= control target key start
LH: loop header
LB: loop body
LE: loop exit
PB: predicated region body
PF: predicated region fallthrough
CT: control target
= control target key end

     0   :  { %s11117_s0 = inlined_call_operand.vmem [shape: s32[1536,2], index: 0, kind: input, shape index: {}]   ;;  %s11118_s1 = inlined_call_operand.vmem [shape: f32[1536,128], index: 1, kind: input, shape index: {}]   ;;  %s11119_s2 = inlined_call_operand.hbm [shape: f32[64,128], index: 2, kind: input, shape index: {}]   ;;  %s11120_s3 = inlined_call_operand.vmem [shape: f32[1,128], index: 3, kind: input, shape index: {}]   ;;  %s11121_s4 = inlined_call_operand.hbm [shape: f32[128,128], index: 4, kind: input, shape index: {}]   ;;  %s11122_s5 = inlined_call_operand.hbm [shape: f32[128,128], index: 5, kind: input, shape index: {}]   ;;  %s11123_s6 = inlined_call_operand.hbm [shape: f32[128,128], index: 6, kind: input, shape index: {}]   ;;  %s11124_s7 = inlined_call_operand.hbm [shape: f32[128,128], index: 7, kind: input, shape index: {}]   ;;  %s11125_s8 = inlined_call_operand.vmem [shape: f32[1,128], index: 8, kind: input, shape index: {}]   ;;  %s11126_s9 = inlined_call_operand.hbm [shape: f32[128,128], index: 9, kind: input, shape index: {}]   ;;  %s11127_s10 = inlined_call_operand.hbm [shape: f32[128,128], index: 10, kind: input, shape index: {}]   ;;  %s11128_s11 = inlined_call_operand.hbm [shape: f32[128,128], index: 11, kind: input, shape index: {}]   ;;  %s11129_s12 = inlined_call_operand.hbm [shape: f32[128,128], index: 12, kind: input, shape index: {}]   ;;  %s11130_s13 = inlined_call_operand.vmem [shape: f32[1,128], index: 13, kind: input, shape index: {}]   ;;  %s11131_s14 = inlined_call_operand.hbm [shape: f32[128,128], index: 14, kind: input, shape index: {}]   ;;  %s11132_s15 = inlined_call_operand.hbm [shape: f32[128,128], index: 15, kind: input, shape index: {}]   ;;  %s11133_s16 = inlined_call_operand.hbm [shape: f32[128,128], index: 16, kind: input, shape index: {}]   ;;  %s11134_s17 = inlined_call_operand.vmem [shape: f32[1,128], index: 17, kind: input, shape index: {}]   ;;  %s11135_s18 = inlined_call_operand.hbm [shape: f32[64,128], index: 18, kind: output, shape index: {0}]   ;;  %s11136_s19 = inlined_call_operand.hbm [shape: f32[1536,128], index: 19, kind: output, shape index: {1}]   ;;  %s11137_s20 = inlined_call_operand.hbm [shape: f32[1,128], index: 20, kind: output, shape index: {2}]  }
   0x1   :  { %11212 = sst [smem:[#allocation68_spill]] %s11117_s0 }
   0x2   :  { %11213 = sst [smem:[#allocation69_spill]] %s11118_s1 }
   0x3   :  { %11214 = sst [smem:[#allocation70_spill]] %s11119_s2 }
   0x4   :  { %11215 = sst [smem:[#allocation71_spill]] %s11120_s3 }
   0x5   :  { %11216 = sst [smem:[#allocation72_spill]] %s11121_s4 }
   0x6   :  { %11217 = sst [smem:[#allocation73_spill]] %s11123_s6 }
   0x7   :  { %11218 = sst [smem:[#allocation74_spill]] %s11126_s9 }
   0x8   :  { %11219 = sst [smem:[#allocation75_spill]] %s11130_s13 }
   0x9   :  { %11220 = sst [smem:[#allocation76_spill]] %s11134_s17 }
   0xa   :  { %11221 = sst [smem:[#allocation77_spill]] %s11135_s18 }
   0xb   :  { %11222 = sst [smem:[#allocation78_spill]] %s11136_s19 }
   0xc   :  { %11223 = sst [smem:[#allocation79_spill]] %s11137_s20 }
   0xd   :  { %26 = vsyncpa [#allocation6], 0 }
   0xe   :  { %27 = vsyncpa [#allocation9], 0 }
   0xf   :  { %28 = vsyncpa [#allocation12], 0 }
  0x10   :  { %29 = vsyncpa [#allocation15], 0 }
  0x11   :  { %30 = vsyncpa [#allocation18], 0 }
  0x12   :  { %31 = vsyncpa [#allocation21], 0 }
  0x13   :  { %32 = vsyncpa [#allocation24], 0 }
  0x14   :  { %33 = vsyncpa [#allocation7], 0 }
  0x15   :  { %34 = vsyncpa [#allocation27], 0 }
  0x16   :  { %36 = vsyncpa [#allocation27 + $0x1], 0  ;;  %s8271_s1 = smov 0   ;;  %s8273_s22 = smov 0  }
  0x17   :  { %s8275_s23 = smov 0   ;;  %s8277_s24 = smov 0  }
  0x18 LB: > { %11224 = sst [smem:[#allocation39_spill]] %s8131_s23  ;;  %s8290_s2 = sadd.s32 4294967295, %s8135_s24   ;;  %s8135_s24 = sphi %s8277_s24, %s11410_s24   ;;  %s8131_s23 = sphi %s8275_s23, %s11412_s23   ;;  %s8127_s22 = sphi %s8273_s22, %s11414_s22   ;;  %s8123_s1 = sphi %s8271_s1, %s11413_s1  }
  0x19   : > { %11225 = sst [smem:[#allocation40_spill]] %s8135_s24  ;;  %s11140_s25 = sadd.s32 4294967294, %s8135_s24  }
  0x1a   : > { %s8294_s3 = sadd.s32 1, %s8135_s24   ;;  %s458_s26 = sadd.s32 1, %s8131_s23 }
  0x1b   : > { %11226 = sst [smem:[#allocation41_spill]] %s8294_s3  ;;  %s455_s27 = ssub.s32 %s8135_s24, %s8294_s3 }
  0x1c   : > { %p468_p0 = scmp.ne.s32.totalorder %s8131_s23, %s8127_s22  ;;  %p456_p1 = scmp.eq.s32.totalorder %s455_s27, 0 }
  0x1d   : > { %p11149_p2 = scmp.eq.s32.totalorder %s8290_s2, 2  ;;  %p474_p3 = scmp.ne.s32.totalorder %s8127_s22, %s8123_s1 }
  0x1e   : > { %p475_p4 = scmp.eq.s32.totalorder %s11140_s25, 2  ;;  %p5125_p7 = scmp.ge.s32.totalorder %s8135_s24, 1 }
  0x1f   : > { %s8306_s28 = scalar_select %p456_p1, %s8131_s23, %s458_s26  }
  0x20   : > { %p8310_p5 = por %p11149_p2, %p468_p0  ;;  %p8314_p6 = por %p475_p4, %p474_p3 }
  0x21   : > { %11227 = sst [smem:[#allocation42_spill]] %s8306_s28  ;;  %p503_p8 = scmp.lt.s32.totalorder %s8135_s24, 4 }
  0x22   : > { %s11228_s4 = scalar_select %p8310_p5, 1, 0 }
  0x23   : > { %s11230_s29 = scalar_select %p8314_p6, 1, 0 }
  0x24   : > { %11229 = sst [smem:[#allocation43_spill]] %s11228_s4  ;;  %p11150_p10 = scmp.eq.s32.totalorder %s8290_s2, 0 }
  0x25   : > { %11231 = sst [smem:[#allocation44_spill]] %s11230_s29  ;;  %p8322_p11 = pnand %p5125_p7, %p503_p8 }
  0x26   : > { %s8137_s0 = smov [#allocation8]   ;;  %s8138_s26 = smov [#allocation11]  }
  0x27   : > { %s11232_s30 = scalar_select %p8322_p11, 1, 0 }
  0x28   : > { %p7101_p12 = pneg %p8322_p11  ;;  %s531_s21 = sshll.u32 %s8137_s0, 4  ;;  %s8328_s21 = int_to_ptr.vmem [resolvable:$true] %s531_s21 }
  0x29   : > { %s557_s27 = sshll.u32 %s8138_s26, 4  ;;  %s8139_s25 = smov [#allocation14]   ;;  %s8336_s27 = int_to_ptr.vmem [resolvable:$true] %s557_s27 }
  0x2a   : > { %p8332_p13 = pnand %p11150_p10, %p7101_p12  ;;  %s8338_s28 = sshll.u32 %s8139_s25, 4  ;;  %s587_s28 = int_to_ptr.vmem [resolvable:$true] %s8338_s28 }
  0x2b   : > { %s11234_s29 = sld [smem:[#allocation72_spill]] }
  0x2c   : > { %p8348_p1 = pneg %p8332_p13 }
  0x31   : > { %s7649_s24 = scalar_lea.hbm %s11234_s29, 2048 }
  0x32   : > { %p7650_p0 = scmp.ne.s32.totalorder %s11234_s29, %s7649_s24  ;;  %p7656_p7 = scmp.lt.u32.totalorder %s7649_s24, %s11234_s29 }
  0x34   : > { %p7652_p3 = pnand %p8348_p1, %p7650_p0 }
  0x36   : > { %p7653_p4 = pneg %p7652_p3 }
  0x38   : > { %p7658_p8 = pnand %p7656_p7, %p7653_p4 }
  0x3a   : > { %7661 = shalt.err (!%p7658_p8)
}
  0x3b   : > { %s7662_s20 = scalar_lea.vmem %s8328_s21, 2048  ;;  %p7670_p10 = scmp.lt.s32.totalorder %s8328_s21, %s8328_s21 }
  0x3c   : > { %p7663_p12 = scmp.ne.s32.totalorder %s8328_s21, %s7662_s20  ;;  %p7671_p6 = scmp.lt.s32.totalorder %s7662_s20, %s7662_s20 }
  0x3e   : > { %p7665_p2 = pnand %p7663_p12, %p8348_p1  ;;  %p7672_p0 = por %p7671_p6, %p7670_p10 }
  0x40   : > { %p7666_p9 = pneg %p7665_p2 }
  0x42   : > { %p7673_p3 = pnand %p7672_p0, %p7666_p9 }
  0x44   : > { %7676 = shalt.err (!%p7673_p3)
}
  0x45   : > { %s8140_s23 = smov 128   ;;  %s8141_s24 = smov 8  }
  0x46   : > { %7107 = dma.hbm_to_vmem [thread:$0]  (!%p8332_p13), %s11234_s29, 2048, %s8328_s21, [#allocation9], %s8140_s23, %s8140_s23, %s8141_s24  }
  0x47   : > { %s11236_s6 = sld [smem:[#allocation73_spill]] }
  0x4d   : > { %s7677_s20 = scalar_lea.hbm %s11236_s6, 2048 }
  0x4e   : > { %p7678_p2 = scmp.ne.s32.totalorder %s11236_s6, %s7677_s20  ;;  %p7684_p10 = scmp.lt.u32.totalorder %s7677_s20, %s11236_s6 }
  0x50   : > { %p7680_p6 = pnand %p7678_p2, %p8348_p1 }
  0x52   : > { %p7681_p9 = pneg %p7680_p6 }
  0x54   : > { %p7686_p4 = pnand %p7684_p10, %p7681_p9 }
  0x56   : > { %7689 = shalt.err (!%p7686_p4)
}
  0x57   : > { %s7690_s21 = scalar_lea.vmem %s8336_s27, 2048  ;;  %p7698_p0 = scmp.lt.s32.totalorder %s8336_s27, %s8336_s27 }
  0x58   : > { %p7691_p7 = scmp.ne.s32.totalorder %s8336_s27, %s7690_s21  ;;  %p7699_p3 = scmp.lt.s32.totalorder %s7690_s21, %s7690_s21 }
  0x5a   : > { %p7693_p8 = pnand %p7691_p7, %p8348_p1  ;;  %p7700_p2 = por %p7699_p3, %p7698_p0 }
  0x5c   : > { %p7694_p12 = pneg %p7693_p8 }
  0x5e   : > { %p7701_p6 = pnand %p7700_p2, %p7694_p12 }
  0x60   : > { %7704 = shalt.err (!%p7701_p6)
}
  0x61   : > { %7113 = dma.hbm_to_vmem [thread:$0]  (!%p8332_p13), %s11236_s6, 2048, %s8336_s27, [#allocation12], %s8140_s23, %s8140_s23, %s8141_s24  }
  0x62   : > { %s11237_s9 = sld [smem:[#allocation74_spill]] }
  0x68   : > { %s7705_s3 = scalar_lea.hbm %s11237_s9, 2048 }
  0x69   : > { %p7706_p9 = scmp.ne.s32.totalorder %s11237_s9, %s7705_s3  ;;  %p7712_p7 = scmp.lt.u32.totalorder %s7705_s3, %s11237_s9 }
  0x6b   : > { %p7708_p10 = pnand %p7706_p9, %p8348_p1 }
  0x6d   : > { %p7709_p4 = pneg %p7708_p10 }
  0x6f   : > { %p7714_p8 = pnand %p7712_p7, %p7709_p4 }
  0x71   : > { %7717 = shalt.err (!%p7714_p8)
}
  0x72   : > { %s7718_s21 = scalar_lea.vmem %s587_s28, 2048  ;;  %p7726_p2 = scmp.lt.s32.totalorder %s587_s28, %s587_s28 }
  0x73   : > { %p7719_p12 = scmp.ne.s32.totalorder %s587_s28, %s7718_s21  ;;  %p7727_p6 = scmp.lt.s32.totalorder %s7718_s21, %s7718_s21 }
  0x75   : > { %p7721_p0 = pnand %p7719_p12, %p8348_p1  ;;  %p7728_p5 = por %p7727_p6, %p7726_p2 }
  0x77   : > { %p7722_p3 = pneg %p7721_p0 }
  0x79   : > { %p7729_p11 = pnand %p7728_p5, %p7722_p3 }
  0x7b   : > { %7732 = shalt.err (!%p7729_p11)
}
  0x7c   : > { %7119 = dma.hbm_to_vmem [thread:$0]  (!%p8332_p13), %s11237_s9, 2048, %s587_s28, [#allocation15], %s8140_s23, %s8140_s23, %s8141_s24  }
  0x7d   : > { %s8142_s17 = smov [#allocation17]   ;;  %s8143_s4 = smov [#allocation20]  }
  0x7e   : > { %s612_s19 = sshll.u32 %s8142_s17, 4  ;;  %s641_s3 = sshll.u32 %s8143_s4, 4  ;;  %s613_s19 = int_to_ptr.vmem [resolvable:$true] %s612_s19  ;;  %s642_s3 = int_to_ptr.vmem [resolvable:$true] %s641_s3 }
  0x7f   : > { %s7733_s25 = scalar_lea.hbm %s11128_s11, 2048 }
  0x80   : > { %p7734_p5 = scmp.ne.s32.totalorder %s11128_s11, %s7733_s25  ;;  %p7740_p10 = scmp.lt.u32.totalorder %s7733_s25, %s11128_s11 }
  0x82   : > { %p7736_p11 = pnand %p7734_p5, %p8348_p1 }
  0x84   : > { %p7737_p9 = pneg %p7736_p11 }
  0x86   : > { %p7742_p4 = pnand %p7740_p10, %p7737_p9 }
  0x88   : > { %7745 = shalt.err (!%p7742_p4)
}
  0x89   : > { %s7746_s28 = scalar_lea.vmem %s613_s19, 2048  ;;  %p7754_p0 = scmp.lt.s32.totalorder %s613_s19, %s613_s19 }
  0x8a   : > { %p7747_p7 = scmp.ne.s32.totalorder %s613_s19, %s7746_s28  ;;  %p7755_p3 = scmp.lt.s32.totalorder %s7746_s28, %s7746_s28 }
  0x8c   : > { %p7749_p8 = pnand %p7747_p7, %p8348_p1  ;;  %p7756_p2 = por %p7755_p3, %p7754_p0 }
  0x8e   : > { %p7750_p12 = pneg %p7749_p8 }
  0x90   : > { %p7757_p6 = pnand %p7756_p2, %p7750_p12 }
  0x92   : > { %7760 = shalt.err (!%p7757_p6)
}
  0x93   : > { %7125 = dma.hbm_to_vmem [thread:$0]  (!%p8332_p13), %s11128_s11, 2048, %s613_s19, [#allocation18], %s8140_s23, %s8140_s23, %s8141_s24  }
  0x94   : > { %s7761_s0 = scalar_lea.hbm %s11131_s14, 2048 }
  0x95   : > { %p7762_p5 = scmp.ne.s32.totalorder %s11131_s14, %s7761_s0  ;;  %p7768_p10 = scmp.lt.u32.totalorder %s7761_s0, %s11131_s14 }
  0x97   : > { %p7764_p11 = pnand %p7762_p5, %p8348_p1 }
  0x99   : > { %p7765_p9 = pneg %p7764_p11 }
  0x9b   : > { %p7770_p4 = pnand %p7768_p10, %p7765_p9 }
  0x9d   : > { %7773 = shalt.err (!%p7770_p4)
}
  0x9e   : > { %s7774_s27 = scalar_lea.vmem %s642_s3, 2048  ;;  %p7782_p0 = scmp.lt.s32.totalorder %s642_s3, %s642_s3 }
  0x9f   : > { %p7775_p7 = scmp.ne.s32.totalorder %s642_s3, %s7774_s27  ;;  %p7783_p3 = scmp.lt.s32.totalorder %s7774_s27, %s7774_s27 }
  0xa1   : > { %p7777_p8 = pnand %p7775_p7, %p8348_p1  ;;  %p7784_p2 = por %p7783_p3, %p7782_p0 }
  0xa3   : > { %p7778_p12 = pneg %p7777_p8 }
  0xa5   : > { %p7785_p6 = pnand %p7784_p2, %p7778_p12 }
  0xa7   : > { %7788 = shalt.err (!%p7785_p6)
}
  0xa8   : > { %7131 = dma.hbm_to_vmem [thread:$0]  (!%p8332_p13), %s11131_s14, 2048, %s642_s3, [#allocation21], %s8140_s23, %s8140_s23, %s8141_s24  }
  0xa9   : > { %s8144_s6 = smov [#allocation5]   ;;  %s8145_s17 = smov [#allocation10]  }
  0xaa   : > { %s515_s13 = sshll.u32 %s8144_s6, 4  ;;  %s544_s4 = sshll.u32 %s8145_s17, 4  ;;  %s516_s13 = int_to_ptr.vmem [resolvable:$true] %s515_s13  ;;  %s545_s4 = int_to_ptr.vmem [resolvable:$true] %s544_s4 }
  0xab   : > { %s11238_s25 = sld [smem:[#allocation70_spill]] }
  0xb1   : > { %s7789_s20 = scalar_lea.hbm %s11238_s25, 1024 }
  0xb2   : > { %p7790_p5 = scmp.ne.s32.totalorder %s11238_s25, %s7789_s20  ;;  %p7796_p10 = scmp.lt.u32.totalorder %s7789_s20, %s11238_s25 }
  0xb4   : > { %p7792_p11 = pnand %p7790_p5, %p8348_p1 }
  0xb6   : > { %p7793_p9 = pneg %p7792_p11 }
  0xb8   : > { %p7798_p4 = pnand %p7796_p10, %p7793_p9 }
  0xba   : > { %7801 = shalt.err (!%p7798_p4)
}
  0xbb   : > { %s7802_s3 = scalar_lea.vmem %s516_s13, 1024  ;;  %p7810_p0 = scmp.lt.s32.totalorder %s516_s13, %s516_s13 }
  0xbc   : > { %p7803_p7 = scmp.ne.s32.totalorder %s516_s13, %s7802_s3  ;;  %p7811_p3 = scmp.lt.s32.totalorder %s7802_s3, %s7802_s3 }
  0xbe   : > { %p7805_p8 = pnand %p7803_p7, %p8348_p1  ;;  %p7812_p2 = por %p7811_p3, %p7810_p0 }
  0xc0   : > { %p7806_p12 = pneg %p7805_p8 }
  0xc2   : > { %p7813_p6 = pnand %p7812_p2, %p7806_p12 }
  0xc4   : > { %7816 = shalt.err (!%p7813_p6)
}
  0xc5   : > { %7104 = dma.hbm_to_vmem [thread:$0]  (!%p8332_p13), %s11238_s25, 1024, %s516_s13, [#allocation6], %s8140_s23, %s8140_s23, %s8141_s24  }
  0xc6   : > { %s7817_s0 = scalar_lea.hbm %s11122_s5, 2048 }
  0xc7   : > { %p7818_p5 = scmp.ne.s32.totalorder %s11122_s5, %s7817_s0  ;;  %p7824_p10 = scmp.lt.u32.totalorder %s7817_s0, %s11122_s5 }
  0xc9   : > { %p7820_p11 = pnand %p7818_p5, %p8348_p1 }
  0xcb   : > { %p7821_p9 = pneg %p7820_p11 }
  0xcd   : > { %p7826_p4 = pnand %p7824_p10, %p7821_p9 }
  0xcf   : > { %7829 = shalt.err (!%p7826_p4)
}
  0xd0   : > { %s7830_s19 = scalar_lea.vmem %s545_s4, 2048  ;;  %p7838_p0 = scmp.lt.s32.totalorder %s545_s4, %s545_s4 }
  0xd1   : > { %p7831_p7 = scmp.ne.s32.totalorder %s545_s4, %s7830_s19  ;;  %p7839_p3 = scmp.lt.s32.totalorder %s7830_s19, %s7830_s19 }
  0xd3   : > { %p7833_p8 = pnand %p7831_p7, %p8348_p1  ;;  %p7840_p2 = por %p7839_p3, %p7838_p0 }
  0xd5   : > { %p7834_p12 = pneg %p7833_p8 }
  0xd7   : > { %p7841_p6 = pnand %p7840_p2, %p7834_p12 }
  0xd9   : > { %7844 = shalt.err (!%p7841_p6)
}
  0xda   : > { %7110 = dma.hbm_to_vmem [thread:$0]  (!%p8332_p13), %s11122_s5, 2048, %s545_s4, [#allocation9], %s8140_s23, %s8140_s23, %s8141_s24  }
  0xdb   : > { %s8146_s9 = smov [#allocation13]   ;;  %s8147_s6 = smov [#allocation16]  }
  0xdc   : > { %s570_s28 = sshll.u32 %s8146_s9, 4  ;;  %s599_s17 = sshll.u32 %s8147_s6, 4  ;;  %s571_s28 = int_to_ptr.vmem [resolvable:$true] %s570_s28  ;;  %s600_s17 = int_to_ptr.vmem [resolvable:$true] %s599_s17 }
  0xdd   : > { %s7845_s20 = scalar_lea.hbm %s11124_s7, 2048 }
  0xde   : > { %p7846_p5 = scmp.ne.s32.totalorder %s11124_s7, %s7845_s20  ;;  %p7852_p10 = scmp.lt.u32.totalorder %s7845_s20, %s11124_s7 }
  0xe0   : > { %p7848_p11 = pnand %p7846_p5, %p8348_p1 }
  0xe2   : > { %p7849_p9 = pneg %p7848_p11 }
  0xe4   : > { %p7854_p4 = pnand %p7852_p10, %p7849_p9 }
  0xe6   : > { %7857 = shalt.err (!%p7854_p4)
}
  0xe7   : > { %s7858_s4 = scalar_lea.vmem %s571_s28, 2048  ;;  %p7866_p0 = scmp.lt.s32.totalorder %s571_s28, %s571_s28 }
  0xe8   : > { %p7859_p7 = scmp.ne.s32.totalorder %s571_s28, %s7858_s4  ;;  %p7867_p3 = scmp.lt.s32.totalorder %s7858_s4, %s7858_s4 }
  0xea   : > { %p7861_p8 = pnand %p7859_p7, %p8348_p1  ;;  %p7868_p2 = por %p7867_p3, %p7866_p0 }
  0xec   : > { %p7862_p12 = pneg %p7861_p8 }
  0xee   : > { %p7869_p6 = pnand %p7868_p2, %p7862_p12 }
  0xf0   : > { %7872 = shalt.err (!%p7869_p6)
}
  0xf1   : > { %7116 = dma.hbm_to_vmem [thread:$0]  (!%p8332_p13), %s11124_s7, 2048, %s571_s28, [#allocation12], %s8140_s23, %s8140_s23, %s8141_s24  }
  0xf2   : > { %s7873_s26 = scalar_lea.hbm %s11127_s10, 2048 }
  0xf3   : > { %p7874_p5 = scmp.ne.s32.totalorder %s11127_s10, %s7873_s26  ;;  %p7880_p10 = scmp.lt.u32.totalorder %s7873_s26, %s11127_s10 }
  0xf5   : > { %p7876_p11 = pnand %p7874_p5, %p8348_p1 }
  0xf7   : > { %p7877_p9 = pneg %p7876_p11 }
  0xf9   : > { %p7882_p4 = pnand %p7880_p10, %p7877_p9 }
  0xfb   : > { %7885 = shalt.err (!%p7882_p4)
}
  0xfc   : > { %s7886_s13 = scalar_lea.vmem %s600_s17, 2048  ;;  %p7894_p0 = scmp.lt.s32.totalorder %s600_s17, %s600_s17 }
  0xfd   : > { %p7887_p7 = scmp.ne.s32.totalorder %s600_s17, %s7886_s13  ;;  %p7895_p3 = scmp.lt.s32.totalorder %s7886_s13, %s7886_s13 }
  0xff   : > { %p7889_p8 = pnand %p7887_p7, %p8348_p1  ;;  %p7896_p2 = por %p7895_p3, %p7894_p0 }
 0x101   : > { %p7890_p12 = pneg %p7889_p8 }
 0x103   : > { %p7897_p6 = pnand %p7896_p2, %p7890_p12 }
 0x105   : > { %7900 = shalt.err (!%p7897_p6)
}
 0x106   : > { %7122 = dma.hbm_to_vmem [thread:$0]  (!%p8332_p13), %s11127_s10, 2048, %s600_s17, [#allocation15], %s8140_s23, %s8140_s23, %s8141_s24  }
 0x107   : > { %s8148_s3 = smov [#allocation19]   ;;  %s8149_s6 = smov [#allocation22]  }
 0x108   : > { %s625_s9 = sshll.u32 %s8148_s3, 4  ;;  %s654_s0 = sshll.u32 %s8149_s6, 4  ;;  %s626_s9 = int_to_ptr.vmem [resolvable:$true] %s625_s9  ;;  %s655_s0 = int_to_ptr.vmem [resolvable:$true] %s654_s0 }
 0x109   : > { %s7901_s21 = scalar_lea.hbm %s11129_s12, 2048 }
 0x10a   : > { %p7902_p5 = scmp.ne.s32.totalorder %s11129_s12, %s7901_s21  ;;  %p7908_p10 = scmp.lt.u32.totalorder %s7901_s21, %s11129_s12 }
 0x10c   : > { %p7904_p11 = pnand %p7902_p5, %p8348_p1 }
 0x10e   : > { %p7905_p9 = pneg %p7904_p11 }
 0x110   : > { %p7910_p4 = pnand %p7908_p10, %p7905_p9 }
 0x112   : > { %7913 = shalt.err (!%p7910_p4)
}
 0x113   : > { %s7914_s17 = scalar_lea.vmem %s626_s9, 2048  ;;  %p7922_p0 = scmp.lt.s32.totalorder %s626_s9, %s626_s9 }
 0x114   : > { %p7915_p7 = scmp.ne.s32.totalorder %s626_s9, %s7914_s17  ;;  %p7923_p3 = scmp.lt.s32.totalorder %s7914_s17, %s7914_s17 }
 0x116   : > { %p7917_p8 = pnand %p7915_p7, %p8348_p1  ;;  %p7924_p2 = por %p7923_p3, %p7922_p0 }
 0x118   : > { %p7918_p12 = pneg %p7917_p8 }
 0x11a   : > { %p7925_p6 = pnand %p7924_p2, %p7918_p12 }
 0x11c   : > { %7928 = shalt.err (!%p7925_p6)
}
 0x11d   : > { %7128 = dma.hbm_to_vmem [thread:$0]  (!%p8332_p13), %s11129_s12, 2048, %s626_s9, [#allocation18], %s8140_s23, %s8140_s23, %s8141_s24  }
 0x11e   : > { %s7929_s20 = scalar_lea.hbm %s11132_s15, 2048 }
 0x11f   : > { %p7930_p5 = scmp.ne.s32.totalorder %s11132_s15, %s7929_s20  ;;  %p7936_p10 = scmp.lt.u32.totalorder %s7929_s20, %s11132_s15 }
 0x121   : > { %p7932_p11 = pnand %p7930_p5, %p8348_p1 }
 0x123   : > { %p7933_p9 = pneg %p7932_p11 }
 0x125   : > { %p7938_p4 = pnand %p7936_p10, %p7933_p9 }
 0x127   : > { %7941 = shalt.err (!%p7938_p4)
}
 0x128   : > { %s7942_s28 = scalar_lea.vmem %s655_s0, 2048  ;;  %p7950_p0 = scmp.lt.s32.totalorder %s655_s0, %s655_s0 }
 0x129   : > { %p7943_p7 = scmp.ne.s32.totalorder %s655_s0, %s7942_s28  ;;  %p7951_p3 = scmp.lt.s32.totalorder %s7942_s28, %s7942_s28 }
 0x12b   : > { %p7945_p8 = pnand %p7943_p7, %p8348_p1  ;;  %p7952_p2 = por %p7951_p3, %p7950_p0 }
 0x12d   : > { %p7946_p12 = pneg %p7945_p8 }
 0x12f   : > { %p7953_p6 = pnand %p7952_p2, %p7946_p12 }
 0x131   : > { %7956 = shalt.err (!%p7953_p6)
}
 0x132   : > { %7134 = dma.hbm_to_vmem [thread:$0]  (!%p8332_p13), %s11132_s15, 2048, %s655_s0, [#allocation21], %s8140_s23, %s8140_s23, %s8141_s24  }
 0x133   : > { %s8150_s4 = smov [#allocation23]   ;;  %s7957_s20 = scalar_lea.hbm %s11133_s16, 2048 }
 0x134   : > { %s667_s3 = sshll.u32 %s8150_s4, 4  ;;  %p7958_p5 = scmp.ne.s32.totalorder %s11133_s16, %s7957_s20  ;;  %s668_s3 = int_to_ptr.vmem [resolvable:$true] %s667_s3 }
 0x135   : > { %p7964_p10 = scmp.lt.u32.totalorder %s7957_s20, %s11133_s16 }
 0x136   : > { %p7960_p11 = pnand %p7958_p5, %p8348_p1 }
 0x138   : > { %p7961_p9 = pneg %p7960_p11 }
 0x13a   : > { %p7966_p4 = pnand %p7964_p10, %p7961_p9 }
 0x13c   : > { %7969 = shalt.err (!%p7966_p4)
}
 0x13d   : > { %s7970_s0 = scalar_lea.vmem %s668_s3, 2048  ;;  %p7978_p0 = scmp.lt.s32.totalorder %s668_s3, %s668_s3 }
 0x13e   : > { %p7971_p7 = scmp.ne.s32.totalorder %s668_s3, %s7970_s0  ;;  %p7979_p3 = scmp.lt.s32.totalorder %s7970_s0, %s7970_s0 }
 0x140   : > { %p7973_p8 = pnand %p7971_p7, %p8348_p1  ;;  %p7980_p2 = por %p7979_p3, %p7978_p0 }
 0x142   : > { %p7974_p12 = pneg %p7973_p8 }
 0x144   : > { %p7981_p6 = pnand %p7980_p2, %p7974_p12 }
 0x146   : > { %7984 = shalt.err (!%p7981_p6)
}
 0x147   : > { %7137 = dma.hbm_to_vmem [thread:$0]  (!%p8332_p13), %s11133_s16, 2048, %s668_s3, [#allocation24], %s8140_s23, %s8140_s23, %s8141_s24  }
 0x148   : > { %p11239_p5 = scmp.ne.s32.totalorder %s11232_s30, 0 }
 0x14a   : > { %704 = sbr.rel (%p11239_p5) target bundleno = 2229 (0x8b5), region = 92 }
 0x151   : > { %p11240_p1 = scmp.eq.s32.totalorder %s8290_s2, 0 }
 0x153   : > { %8082 = dma.done.wait (%p11240_p1), [#allocation6], 1024   ;;  %p11241_p11 = pmov %p11240_p1 }
 0x154   : > { %p11242_p9 = pmov %p11240_p1 }
 0x155   : > { %8084 = vsyncadd (%p11241_p11), [#allocation6], 4294966272 }
 0x156   : > { %8086 = dma.done.wait (%p11242_p9), [#allocation9], 4096   ;;  %p11243_p10 = pmov %p11240_p1 }
 0x157   : > { %p11244_p4 = pmov %p11240_p1 }
 0x158   : > { %8088 = vsyncadd (%p11243_p10), [#allocation9], 4294963200 }
 0x159   : > { %8090 = dma.done.wait (%p11244_p4), [#allocation12], 4096   ;;  %p11245_p13 = pmov %p11240_p1 }
 0x15a   : > { %p11246_p7 = pmov %p11240_p1 }
 0x15b   : > { %8092 = vsyncadd (%p11245_p13), [#allocation12], 4294963200 }
 0x15c   : > { %8094 = dma.done.wait (%p11246_p7), [#allocation15], 4096   ;;  %p11247_p8 = pmov %p11240_p1 }
 0x15d   : > { %p11248_p12 = pmov %p11240_p1 }
 0x15e   : > { %8096 = vsyncadd (%p11247_p8), [#allocation15], 4294963200 }
 0x15f   : > { %8098 = dma.done.wait (%p11248_p12), [#allocation18], 4096   ;;  %p11249_p0 = pmov %p11240_p1 }
 0x161   : > { %8100 = vsyncadd (%p11249_p0), [#allocation18], 4294963200  ;;  %p11250_p3 = pmov %p11249_p0 }
 0x162   : > { %p11251_p2 = pmov %p11249_p0 }
 0x163   : > { %8102 = dma.done.wait (%p11250_p3), [#allocation21], 4096  }
 0x164   : > { %8104 = vsyncadd (%p11251_p2), [#allocation21], 4294963200  ;;  %p11252_p6 = pmov %p11249_p0 }
 0x165   : > { %p11253_p5 = pmov %p11249_p0 }
 0x166   : > { %8106 = dma.done.wait (%p11252_p6), [#allocation24], 2048  }
 0x167   : > { %8108 = vsyncadd (%p11253_p5), [#allocation24], 4294965248  ;;  %s806_s18 = sand.u32 1, %s8127_s22   ;;  %s5153_s30 = sshll.u32 %s8290_s2, 6 }
 0x168   : > { %s5152_s1 = sshll.u32 %s806_s18, 9  ;;  %p812_p1 = scmp.lt.s32.totalorder %s5153_s30, 191 }
 0x169   : > { %s11254_s4 = sld [smem:[#allocation68_spill]]  ;;  %s11255_s20 = sld [smem:[#allocation69_spill]] }
 0x16a   : > { %s11416_s30 = smov (!%p812_p1, %s5153_s30), 191  ;;  %s8651_s27 = scalar_lea.vmem [#allocation26], %s5152_s1 }
 0x16b   : > { %s5154_s23 = sshll.u32 %s11416_s30, 3  ;;  %p11256_p11 = scmp.ne.s32.totalorder %s8290_s2, 0 }
 0x16c   : > { %v836_v0 = vld [vmem:[#allocation10] sm:$0xff] (!%p11256_p11)  ;;  %v837_v1 = vld [vmem:[#allocation10 + $0x8] sm:$0xff] (!%p11256_p11)  ;;  %v838_v2 = vld [vmem:[#allocation10 + $0x10] sm:$0xff] (!%p11256_p11)  ;;  %v8151_v5 = vmov (!%p11256_p11), 0.0   ;;  %v8152_v54 = vmov (!%p11256_p11), 0.0|0.0   ;;  %vm8153_vm0 = vmmov (!%p11256_p11), 0  }
 0x16d   : > { %827 = sbr.rel (%p11256_p11) target bundleno = 646 (0x286), region = 144  ;;  %v6539_v3 = vpack.c.bf16 (!%p11256_p11), %v837_v1, %v836_v0  ;;  %v839_v4 = vld [vmem:[#allocation10 + $0x18] sm:$0xff] (!%p11256_p11)  ;;  %1183 = vst [vmem:[#allocation4] sm:$0xff] (!%p11256_p11), %v8151_v5  ;;  %1184 = vst [vmem:[#allocation4 + $0x8] sm:$0xff] (!%p11256_p11), %v8151_v5  ;;  %v840_v7 = vld [vmem:[#allocation10 + $0x20] sm:$0xff] (!%p11256_p11)  ;;  %s11257_s0 = sld [smem:[#allocation71_spill]] (!%p11256_p11) }
 0x16e   : > { %1185 = vst [vmem:[#allocation4 + $0x10] sm:$0xff] (!%p11256_p11), %v8151_v5  ;;  %1186 = vst [vmem:[#allocation4 + $0x18] sm:$0xff] (!%p11256_p11), %v8151_v5  ;;  %v6543_v6 = vpack.c.bf16 (!%p11256_p11), %v839_v4, %v838_v2  ;;  %v841_v8 = vld [vmem:[#allocation10 + $0x28] sm:$0xff] (!%p11256_p11)  ;;  %v965_v9 = vld [vmem:[#allocation11] sm:$0xff] (!%p11256_p11) }
 0x16f   : > { %s8644_s3 = scalar_lea.vmem %s11254_s4, %s5154_s23  ;;  %s8649_s21 = scalar_lea.vmem %s11255_s20, %s5154_s23  ;;  %1187 = vst [vmem:[#allocation4 + $0x20] sm:$0xff] (!%p11256_p11), %v8151_v5  ;;  %1188 = vst [vmem:[#allocation4 + $0x28] sm:$0xff] (!%p11256_p11), %v8151_v5  ;;  %6540 = vmatprep.subr.bf16.mxu0 (!%p11256_p11), %v6539_v3  ;;  %v966_v10 = vld [vmem:[#allocation11 + $0x8] sm:$0xff] (!%p11256_p11)  ;;  %v6547_v11 = vpack.c.bf16 (!%p11256_p11), %v841_v8, %v840_v7  ;;  %v967_v13 = vld [vmem:[#allocation11 + $0x10] sm:$0xff] (!%p11256_p11) }
 0x170   : > { %1189 = vst [vmem:[#allocation4 + $0x30] sm:$0xff] (!%p11256_p11), %v8151_v5  ;;  %1190 = vst [vmem:[#allocation4 + $0x38] sm:$0xff] (!%p11256_p11), %v8151_v5  ;;  %6542 = vmatpush3.bf16.msra.mxu0 (!%p11256_p11), %v6539_v3  ;;  %v6571_v12 = vpack.c.bf16 (!%p11256_p11), %v966_v10, %v965_v9  ;;  %v968_v14 = vld [vmem:[#allocation11 + $0x18] sm:$0xff] (!%p11256_p11)  ;;  %v842_v15 = vld [vmem:[#allocation10 + $0x30] sm:$0xff] (!%p11256_p11) }
 0x171   : > { %1191 = vst [vmem:[#allocation4 + $0x40] sm:$0xff] (!%p11256_p11), %v8151_v5  ;;  %1192 = vst [vmem:[#allocation4 + $0x48] sm:$0xff] (!%p11256_p11), %v8151_v5  ;;  %6544 = vmatprep.subr.bf16.mxu0 (!%p11256_p11), %v6543_v6  ;;  %v843_v16 = vld [vmem:[#allocation10 + $0x38] sm:$0xff] (!%p11256_p11)  ;;  %v6575_v17 = vpack.c.bf16 (!%p11256_p11), %v968_v14, %v967_v13  ;;  %v969_v18 = vld [vmem:[#allocation11 + $0x20] sm:$0xff] (!%p11256_p11) }
 0x172   : > { %1193 = vst [vmem:[#allocation4 + $0x50] sm:$0xff] (!%p11256_p11), %v8151_v5  ;;  %1194 = vst [vmem:[#allocation4 + $0x58] sm:$0xff] (!%p11256_p11), %v8151_v5  ;;  %6572 = vmatprep.subr.bf16.mxu1 (!%p11256_p11), %v6571_v12  ;;  %v970_v19 = vld [vmem:[#allocation11 + $0x28] sm:$0xff] (!%p11256_p11)  ;;  %v828_v20 = vld [vmem:[#allocation5] sm:$0xff] (!%p11256_p11)  ;;  %v6551_v21 = vpack.c.bf16 (!%p11256_p11), %v843_v16, %v842_v15 }
 0x173   : > { %1195 = vst [vmem:[#allocation4 + $0x60] sm:$0xff] (!%p11256_p11), %v8151_v5  ;;  %1196 = vst [vmem:[#allocation4 + $0x68] sm:$0xff] (!%p11256_p11), %v8151_v5  ;;  %6574 = vmatpush3.bf16.msra.mxu1 (!%p11256_p11), %v6571_v12  ;;  %v844_v22 = vld [vmem:[#allocation10 + $0x40] sm:$0xff] (!%p11256_p11)  ;;  %v6579_v23 = vpack.c.bf16 (!%p11256_p11), %v970_v19, %v969_v18  ;;  %v845_v24 = vld [vmem:[#allocation10 + $0x48] sm:$0xff] (!%p11256_p11)  ;;  %5920 = vmatprep.mubr.f32.mxu0 (!%p11256_p11), %v828_v20 }
 0x174   : > { %1197 = vst [vmem:[#allocation4 + $0x70] sm:$0xff] %v8151_v5  ;;  %1198 = vst [vmem:[#allocation4 + $0x78] sm:$0xff] %v8151_v5  ;;  %6546 = vmatpush3.bf16.msra.mxu0 %v6543_v6  ;;  %6576 = vmatprep.subr.bf16.mxu1 %v6575_v17  ;;  %v971_v25 = vld [vmem:[#allocation11 + $0x30] sm:$0xff]  ;;  %v972_v26 = vld [vmem:[#allocation11 + $0x38] sm:$0xff]  ;;  %v6555_v27 = vpack.c.bf16 %v845_v24, %v844_v22 }
 0x175   : > { %6548 = vmatprep.subr.bf16.mxu0 %v6547_v11  ;;  %5964 = vmatprep.mubr.f32.mxu1 %v828_v20  ;;  %v846_v28 = vld [vmem:[#allocation10 + $0x50] sm:$0xff]  ;;  %v6583_v29 = vpack.c.bf16 %v972_v26, %v971_v25  ;;  %v847_v30 = vld [vmem:[#allocation10 + $0x58] sm:$0xff]  ;;  %v973_v31 = vld [vmem:[#allocation11 + $0x40] sm:$0xff] }
 0x176   : > { %v974_v32 = vld [vmem:[#allocation11 + $0x48] sm:$0xff]  ;;  %v6559_v33 = vpack.c.bf16 %v847_v30, %v846_v28  ;;  %v848_v34 = vld [vmem:[#allocation10 + $0x60] sm:$0xff]  ;;  %v975_v37 = vld [vmem:[#allocation11 + $0x50] sm:$0xff] }
 0x177   : > { %6578 = vmatpush3.bf16.msra.mxu1 %v6575_v17  ;;  %v6587_v35 = vpack.c.bf16 %v974_v32, %v973_v31  ;;  %v849_v36 = vld [vmem:[#allocation10 + $0x68] sm:$0xff]  ;;  %v976_v38 = vld [vmem:[#allocation11 + $0x58] sm:$0xff]  ;;  %v850_v40 = vld [vmem:[#allocation10 + $0x70] sm:$0xff] }
 0x178   : > { %6550 = vmatpush3.bf16.msra.mxu0 %v6547_v11  ;;  %6580 = vmatprep.subr.bf16.mxu1 %v6579_v23  ;;  %v6563_v39 = vpack.c.bf16 %v849_v36, %v848_v34  ;;  %v6591_v41 = vpack.c.bf16 %v976_v38, %v975_v37  ;;  %v851_v42 = vld [vmem:[#allocation10 + $0x78] sm:$0xff]  ;;  %v977_v43 = vld [vmem:[#allocation11 + $0x60] sm:$0xff]  ;;  %v978_v44 = vld [vmem:[#allocation11 + $0x68] sm:$0xff] }
 0x179   : > { %6552 = vmatprep.subr.bf16.mxu0 %v6551_v21  ;;  %v6567_v45 = vpack.c.bf16 %v851_v42, %v850_v40  ;;  %v6595_v46 = vpack.c.bf16 %v978_v44, %v977_v43  ;;  %v979_v47 = vld [vmem:[#allocation11 + $0x70] sm:$0xff]  ;;  %v980_v48 = vld [vmem:[#allocation11 + $0x78] sm:$0xff]  ;;  %v1095_v49 = vld [vmem:[#allocation13] sm:$0xff] }
 0x17a   : > { %v1096_v50 = vld [vmem:[#allocation13 + $0x8] sm:$0xff]  ;;  %v6599_v51 = vpack.c.bf16 %v980_v48, %v979_v47  ;;  %v1097_v55 = vld [vmem:[#allocation13 + $0x10] sm:$0xff]  ;;  %v1098_v56 = vld [vmem:[#allocation13 + $0x18] sm:$0xff] }
 0x17b   : > { %6582 = vmatpush3.bf16.msra.mxu1 %v6579_v23  ;;  %v829_v52 = vld [vmem:[#allocation5 + $0x8] sm:$0xff]  ;;  %v6604_v53 = vpack.c.bf16 %v1096_v50, %v1095_v49  ;;  %v830_v57 = vld [vmem:[#allocation5 + $0x10] sm:$0xff]  ;;  %v6607_v58 = vpack.c.bf16 %v1098_v56, %v1097_v55  ;;  %v831_v59 = vld [vmem:[#allocation5 + $0x18] sm:$0xff] }
 0x17c   : > { %6554 = vmatpush3.bf16.msra.mxu0 %v6551_v21  ;;  %6584 = vmatprep.subr.bf16.mxu1 %v6583_v29  ;;  %v1099_v60 = vld [vmem:[#allocation13 + $0x20] sm:$0xff]  ;;  %v1100_v61 = vld [vmem:[#allocation13 + $0x28] sm:$0xff]  ;;  %v1101_v1 = vld [vmem:[#allocation13 + $0x30] sm:$0xff] }
 0x17d   : > { %6556 = vmatprep.subr.bf16.mxu0 %v6555_v27  ;;  %v832_v62 = vld [vmem:[#allocation5 + $0x20] sm:$0xff]  ;;  %v6610_v63 = vpack.c.bf16 %v1100_v61, %v1099_v60  ;;  %v833_v0 = vld [vmem:[#allocation5 + $0x28] sm:$0xff]  ;;  %v1102_v2 = vld [vmem:[#allocation13 + $0x38] sm:$0xff] }
 0x17e   : > { %v834_v3 = vld [vmem:[#allocation5 + $0x30] sm:$0xff]  ;;  %v6613_v4 = vpack.c.bf16 %v1102_v2, %v1101_v1  ;;  %v835_v6 = vld [vmem:[#allocation5 + $0x38] sm:$0xff]  ;;  %v1103_v7 = vld [vmem:[#allocation13 + $0x40] sm:$0xff] }
 0x17f   : > { %6586 = vmatpush3.bf16.msra.mxu1 %v6583_v29  ;;  %v1104_v8 = vld [vmem:[#allocation13 + $0x48] sm:$0xff]  ;;  %v1105_v10 = vld [vmem:[#allocation13 + $0x50] sm:$0xff]  ;;  %v1106_v11 = vld [vmem:[#allocation13 + $0x58] sm:$0xff] }
 0x180   : > { %6558 = vmatpush3.bf16.msra.mxu0 %v6555_v27  ;;  %6588 = vmatprep.subr.bf16.mxu1 %v6587_v35  ;;  %v6616_v9 = vpack.c.bf16 %v1104_v8, %v1103_v7  ;;  %v6619_v12 = vpack.c.bf16 %v1106_v11, %v1105_v10  ;;  %v1107_v13 = vld [vmem:[#allocation13 + $0x60] sm:$0xff]  ;;  %v1108_v14 = vld [vmem:[#allocation13 + $0x68] sm:$0xff]  ;;  %v1109_v16 = vld [vmem:[#allocation13 + $0x70] sm:$0xff] }
 0x181   : > { %6560 = vmatprep.subr.bf16.mxu0 %v6559_v33  ;;  %v6622_v15 = vpack.c.bf16 %v1108_v14, %v1107_v13  ;;  %v1110_v17 = vld [vmem:[#allocation13 + $0x78] sm:$0xff] }
 0x182   : > { %v6625_v18 = vpack.c.bf16 %v1110_v17, %v1109_v16  ;;  %v1094_v19 = vld [vmem:[%s11257_s0] sm:$0x1] }
 0x183   : > { %6590 = vmatpush3.bf16.msra.mxu1 %v6587_v35  ;;  %v1111_v35 = vld [vmem:[%s11125_s8] sm:$0x1] }
 0x184   : > { %6562 = vmatpush3.bf16.msra.mxu0 %v6559_v33  ;;  %6592 = vmatprep.subr.bf16.mxu1 %v6591_v41 }
 0x185   : > { %6564 = vmatprep.subr.bf16.mxu0 %v6563_v39 }
 0x187   : > { %6594 = vmatpush3.bf16.msra.mxu1 %v6591_v41 }
 0x188   : > { %6566 = vmatpush3.bf16.msra.mxu0 %v6563_v39  ;;  %6596 = vmatprep.subr.bf16.mxu1 %v6595_v46 }
 0x189   : > { %6568 = vmatprep.subr.bf16.mxu0 %v6567_v45 }
 0x18b   : > { %6598 = vmatpush3.bf16.msra.mxu1 %v6595_v46 }
 0x18c   : > { %6570 = vmatpush3.bf16.msra.mxu0 %v6567_v45  ;;  %6600 = vmatprep.subr.bf16.mxu1 %v6599_v51 }
 0x18d   : > { %6603 = vmatprep.subr.bf16.mxu0 %v8152_v54 }
 0x18f   : > { %5921 = vmatmul.mubr.f32.vlgmr.msra.gmra.mrb[0].mxu0 %v829_v52  ;;  %6602 = vmatpush3.bf16.msra.mxu1 %v6599_v51 }
 0x190   : > { %6605 = vmatpush3.bf16.msra.mxu0 %v6604_v53  ;;  %5923 = vmatprep.mubr.f32.mxu0 %v830_v57 }
 0x191   : > { %6606 = vmatprep.subr.bf16.mxu0 %v8152_v54 }
 0x192   : > { %5965 = vmatmul.mubr.f32.vlgmr.msra.gmra.mrb[0].mxu1 %v829_v52 }
 0x193   : > { %5924 = vmatmul.mubr.f32.gmra.mrb[2].mxu0 %v831_v59  ;;  %5967 = vmatprep.mubr.f32.mxu1 %v830_v57 }
 0x194   : > { %6608 = vmatpush3.bf16.msra.mxu0 %v6607_v58  ;;  %5926 = vmatprep.mubr.f32.mxu0 %v832_v62 }
 0x195   : > { %6609 = vmatprep.subr.bf16.mxu0 %v8152_v54 }
 0x196   : > { %5968 = vmatmul.mubr.f32.gmra.mrb[2].mxu1 %v831_v59 }
 0x197   : > { %5927 = vmatmul.mubr.f32.gmra.mrb[4].mxu0 %v833_v0  ;;  %5970 = vmatprep.mubr.f32.mxu1 %v832_v62 }
 0x198   : > { %6611 = vmatpush3.bf16.msra.mxu0 %v6610_v63  ;;  %5929 = vmatprep.mubr.f32.mxu0 %v834_v3 }
 0x199   : > { %6612 = vmatprep.subr.bf16.mxu0 %v8152_v54 }
 0x19a   : > { %5971 = vmatmul.mubr.f32.gmra.mrb[4].mxu1 %v833_v0 }
 0x19b   : > { %5930 = vmatmul.mubr.f32.gmra.mrb[6].mxu0 %v835_v6  ;;  %5973 = vmatprep.mubr.f32.mxu1 %v834_v3 }
 0x19c   : > { %6614 = vmatpush3.bf16.msra.mxu0 %v6613_v4  ;;  %6008 = vmatprep.mubr.msk.f32.mxu0 %vm8153_vm0, %v8151_v5 }
 0x19d   : > { %6615 = vmatprep.subr.bf16.mxu0 %v8152_v54 }
 0x19e   : > { %5974 = vmatmul.mubr.f32.gmra.mrb[6].mxu1 %v835_v6 }
 0x1a0   : > { %6617 = vmatpush3.bf16.msra.mxu0 %v6616_v9 }
 0x1a1   : > { %6618 = vmatprep.subr.bf16.mxu0 %v8152_v54 }
 0x1a4   : > { %6620 = vmatpush3.bf16.msra.mxu0 %v6619_v12 }
 0x1a5   : > { %6621 = vmatprep.subr.bf16.mxu0 %v8152_v54 }
 0x1a8   : > { %6623 = vmatpush3.bf16.msra.mxu0 %v6622_v15 }
 0x1a9   : > { %6624 = vmatprep.subr.bf16.mxu0 %v8152_v54 }
 0x1ac   : > { %6626 = vmatpush3.bf16.msra.mxu0 %v6625_v18 }
 0x1af   : > { %6009 = vmatmul.mubr.f32.vlgmr.msra.gmra.mrb[8].mxu0 %v1094_v19 }
 0x262   : > { %v5922_v5 = vpop.f32.mrb[0].mxu0 }
 0x263   : > { %958 = vst [vmem:[#allocation2 + $0x8] sm:$0xff] %v5922_v5  ;;  %v918_v20 = vpop.f32.mrb[1].mxu0 }
 0x264   : > { %957 = vst [vmem:[#allocation2] sm:$0xff] %v918_v20 }
 0x265   : > { %v5966_v22 = vpop.f32.mrb[0].mxu1 }
 0x266   : > { %v5925_v21 = vpop.f32.mrb[2].mxu0  ;;  %1087 = vst [vmem:[#allocation2 + $0x48] sm:$0xff] %v5966_v22  ;;  %v1047_v24 = vpop.f32.mrb[1].mxu1 }
 0x267   : > { %960 = vst [vmem:[#allocation2 + $0x18] sm:$0xff] %v5925_v21  ;;  %v928_v23 = vpop.f32.mrb[3].mxu0  ;;  %1086 = vst [vmem:[#allocation2 + $0x40] sm:$0xff] %v1047_v24 }
 0x268   : > { %959 = vst [vmem:[#allocation2 + $0x10] sm:$0xff] %v928_v23 }
 0x269   : > { %v5969_v26 = vpop.f32.mrb[2].mxu1 }
 0x26a   : > { %v5928_v25 = vpop.f32.mrb[4].mxu0  ;;  %1089 = vst [vmem:[#allocation2 + $0x58] sm:$0xff] %v5969_v26  ;;  %v1057_v28 = vpop.f32.mrb[3].mxu1 }
 0x26b   : > { %962 = vst [vmem:[#allocation2 + $0x28] sm:$0xff] %v5928_v25  ;;  %v938_v27 = vpop.f32.mrb[5].mxu0  ;;  %1088 = vst [vmem:[#allocation2 + $0x50] sm:$0xff] %v1057_v28 }
 0x26c   : > { %961 = vst [vmem:[#allocation2 + $0x20] sm:$0xff] %v938_v27 }
 0x26d   : > { %v5972_v30 = vpop.f32.mrb[4].mxu1 }
 0x26e   : > { %v5931_v29 = vpop.f32.mrb[6].mxu0  ;;  %1091 = vst [vmem:[#allocation2 + $0x68] sm:$0xff] %v5972_v30  ;;  %v1067_v32 = vpop.f32.mrb[5].mxu1 }
 0x26f   : > { %964 = vst [vmem:[#allocation2 + $0x38] sm:$0xff] %v5931_v29  ;;  %v948_v31 = vpop.f32.mrb[7].mxu0  ;;  %1090 = vst [vmem:[#allocation2 + $0x60] sm:$0xff] %v1067_v32 }
 0x270   : > { %963 = vst [vmem:[#allocation2 + $0x30] sm:$0xff] %v948_v31 }
 0x271   : > { %v5975_v33 = vpop.f32.mrb[6].mxu1 }
 0x272   : > { %1093 = vst [vmem:[#allocation2 + $0x78] sm:$0xff] %v5975_v33  ;;  %v1077_v34 = vpop.f32.mrb[7].mxu1 }
 0x273   : > { %1092 = vst [vmem:[#allocation2 + $0x70] sm:$0xff] %v1077_v34 }
 0x282   : > { %v1178_v36 = vpop.f32.mrb[8].mxu0 }
 0x283   : > { %v1179_v37 = vadd.f32 %v1178_v36, %v1111_v35  ;;  %v6010_v38 = vpop.f32.mrb[9].mxu0 }
 0x285   : > { %1182 = vst [vmem:[#allocation3] sm:$0x1] %v1179_v37 }
 0x286 PF: > { %v8679_v39 = vld [vmem:[%s8644_s3 + $0x10] sm:$0xff]  ;;  %v8682_v40 = vld [vmem:[%s8644_s3] sm:$0xff]  ;;  %v11156_v41 = vmov 0   ;;  %v8689_v42 = vld [vmem:[%s8644_s3 + $0x18] sm:$0xff]  ;;  %v8155_v34 = vmov 1   ;;  %p5351_p9 = scmp.ne.s32.totalorder %s8290_s2, 2 }
 0x287   : > { %7232 = vset.pattern.permute.xlu1 %v11156_v41  ;;  %7231 = vset.pattern.permute.xlu0 %v11156_v41  ;;  %v8692_v43 = vld [vmem:[%s8644_s3 + $0x8] sm:$0xff]  ;;  %v8700_v45 = vld [vmem:[%s8644_s3 + $0x20] sm:$0xff]  ;;  %v8705_v46 = vld [vmem:[%s8644_s3 + $0x38] sm:$0xff]  ;;  %s11388_s1 = sld [smem:[#allocation71_spill]] (!%p5351_p9)  ;;  %s11390_s17 = sld [smem:[#allocation75_spill]] (!%p5351_p9) }
 0x288   : > { %1273 = vperm.xlu1 %7232, %v8679_v39   ;;  %1267 = vperm.xlu0 %7231, %v8682_v40   ;;  %v8697_v44 = vld [vmem:[%s8644_s3 + $0x28] sm:$0xff]  ;;  %v8708_v47 = vld [vmem:[%s8644_s3 + $0x30] sm:$0xff]  ;;  %v8716_v49 = vld [vmem:[%s8644_s3 + $0x40] sm:$0xff]  ;;  %s11391_s6 = sld [smem:[#allocation76_spill]] (!%p5351_p9) }
 0x289   : > { %v8713_v48 = vld [vmem:[%s8644_s3 + $0x48] sm:$0xff]  ;;  %v8721_v50 = vld [vmem:[%s8644_s3 + $0x58] sm:$0xff]  ;;  %v8724_v51 = vld [vmem:[%s8644_s3 + $0x50] sm:$0xff] }
 0x28a   : > { %v8729_v52 = vld [vmem:[%s8644_s3 + $0x68] sm:$0xff]  ;;  %v8732_v53 = vld [vmem:[%s8644_s3 + $0x60] sm:$0xff]  ;;  %v8737_v54 = vld [vmem:[%s8644_s3 + $0x78] sm:$0xff] }
 0x28b   : > { %v8740_v55 = vld [vmem:[%s8644_s3 + $0x70] sm:$0xff]  ;;  %v8745_v56 = vld [vmem:[%s8644_s3 + $0x88] sm:$0xff]  ;;  %v8748_v57 = vld [vmem:[%s8644_s3 + $0x80] sm:$0xff] }
 0x28c   : > { %1276 = vperm.xlu1 %7232, %v8689_v42   ;;  %1270 = vperm.xlu0 %7231, %v8692_v43   ;;  %v8753_v58 = vld [vmem:[%s8644_s3 + $0x98] sm:$0xff]  ;;  %v8756_v59 = vld [vmem:[%s8644_s3 + $0x90] sm:$0xff]  ;;  %v8761_v60 = vld [vmem:[%s8644_s3 + $0xa8] sm:$0xff] }
 0x28d   : > { %v8764_v61 = vld [vmem:[%s8644_s3 + $0xa0] sm:$0xff]  ;;  %v8769_v62 = vld [vmem:[%s8644_s3 + $0xb8] sm:$0xff]  ;;  %v8772_v63 = vld [vmem:[%s8644_s3 + $0xb0] sm:$0xff] }
 0x28e   : > { %v1906_v0 = vld [vmem:[#allocation2] sm:$0xff]  ;;  %v1907_v1 = vld [vmem:[#allocation2 + $0x8] sm:$0xff]  ;;  %v1908_v6 = vld [vmem:[#allocation2 + $0x10] sm:$0xff] }
 0x28f   : > { %v8777_v2 = vld [vmem:[%s8644_s3 + $0xc8] sm:$0xff]  ;;  %v8780_v3 = vld [vmem:[%s8644_s3 + $0xc0] sm:$0xff]  ;;  %v6627_v4 = vpack.c.bf16 %v1907_v1, %v1906_v0  ;;  %v1909_v7 = vld [vmem:[#allocation2 + $0x18] sm:$0xff] }
 0x290   : > { %1282 = vperm.xlu1 %7232, %v8697_v44   ;;  %1279 = vperm.xlu0 %7231, %v8700_v45   ;;  %v8785_v8 = vld [vmem:[%s8644_s3 + $0xd8] sm:$0xff]  ;;  %v8788_v9 = vld [vmem:[%s8644_s3 + $0xd0] sm:$0xff]  ;;  %v6631_v10 = vpack.c.bf16 %v1909_v7, %v1908_v6  ;;  %v1910_v11 = vld [vmem:[#allocation2 + $0x20] sm:$0xff] }
 0x291   : > { %6628 = vmatprep.subr.bf16.mxu0 %v6627_v4  ;;  %6947 = vmatprep.subr.bf16.mxu1 %v6627_v4  ;;  %v1911_v12 = vld [vmem:[#allocation2 + $0x28] sm:$0xff]  ;;  %v8796_v14 = vld [vmem:[%s8644_s3 + $0xe0] sm:$0xff]  ;;  %v1912_v16 = vld [vmem:[#allocation2 + $0x30] sm:$0xff] }
 0x292   : > { %6630 = vmatpush3.bf16.msra.mxu0 %v6627_v4  ;;  %6955 = vmatpush3.bf16.msra.mxu1 %v6627_v4  ;;  %v8793_v13 = vld [vmem:[%s8644_s3 + $0xe8] sm:$0xff]  ;;  %11259 = vst [vmem:[#allocation46_spill] sm:$0xff] %v8796_v14  ;;  %v6635_v15 = vpack.c.bf16 %v1911_v12, %v1910_v11  ;;  %v1913_v17 = vld [vmem:[#allocation2 + $0x38] sm:$0xff]  ;;  %v8804_v19 = vld [vmem:[%s8644_s3 + $0xf0] sm:$0xff] }
 0x293   : > { %6632 = vmatprep.subr.bf16.mxu0 %v6631_v10  ;;  %6948 = vmatprep.subr.bf16.mxu1 %v6631_v10  ;;  %11258 = vst [vmem:[#allocation45_spill] sm:$0xff] %v8793_v13  ;;  %v8801_v18 = vld [vmem:[%s8644_s3 + $0xf8] sm:$0xff]  ;;  %v6639_v5 = vpack.c.bf16 %v1913_v17, %v1912_v16  ;;  %v1914_v20 = vld [vmem:[#allocation2 + $0x40] sm:$0xff]  ;;  %v1915_v21 = vld [vmem:[#allocation2 + $0x48] sm:$0xff] }
 0x294   : > { %1288 = vperm.xlu1 %7232, %v8705_v46   ;;  %1285 = vperm.xlu0 %7231, %v8708_v47   ;;  %v8809_v22 = vld [vmem:[%s8644_s3 + $0x108] sm:$0xff]  ;;  %v8812_v23 = vld [vmem:[%s8644_s3 + $0x100] sm:$0xff]  ;;  %v6643_v24 = vpack.c.bf16 %v1915_v21, %v1914_v20  ;;  %v1916_v25 = vld [vmem:[#allocation2 + $0x50] sm:$0xff] }
 0x295   : > { %v1917_v26 = vld [vmem:[#allocation2 + $0x58] sm:$0xff]  ;;  %v8820_v28 = vld [vmem:[%s8644_s3 + $0x110] sm:$0xff]  ;;  %v1918_v30 = vld [vmem:[#allocation2 + $0x60] sm:$0xff] }
 0x296   : > { %6634 = vmatpush3.bf16.msra.mxu0 %v6631_v10  ;;  %6956 = vmatpush3.bf16.msra.mxu1 %v6631_v10  ;;  %v8817_v27 = vld [vmem:[%s8644_s3 + $0x118] sm:$0xff]  ;;  %v6647_v29 = vpack.c.bf16 %v1917_v26, %v1916_v25  ;;  %v1919_v31 = vld [vmem:[#allocation2 + $0x68] sm:$0xff]  ;;  %v8825_v32 = vld [vmem:[%s8644_s3 + $0x120] sm:$0xff] }
 0x297   : > { %6636 = vmatprep.subr.bf16.mxu0 %v6635_v15  ;;  %6949 = vmatprep.subr.bf16.mxu1 %v6635_v15  ;;  %v6651_v33 = vpack.c.bf16 %v1919_v31, %v1918_v30  ;;  %v1920_v35 = vld [vmem:[#allocation2 + $0x70] sm:$0xff]  ;;  %v1921_v36 = vld [vmem:[#allocation2 + $0x78] sm:$0xff]  ;;  %v2371_v38 = vld [vmem:[#allocation8] sm:$0xff] }
 0x298   : > { %1294 = vperm.xlu1 %7232, %v8713_v48   ;;  %1291 = vperm.xlu0 %7231, %v8716_v49   ;;  %v6655_v37 = vpack.c.bf16 %v1921_v36, %v1920_v35  ;;  %v1236_v6 = vld [vmem:[%s8644_s3 + $0x128] sm:$0xff]  ;;  %v1237_v11 = vld [vmem:[%s8644_s3 + $0x130] sm:$0xff]  ;;  %v1238_v16 = vld [vmem:[%s8644_s3 + $0x138] sm:$0xff] }
 0x299   : > { %v1240_v21 = vld [vmem:[%s8644_s3 + $0x148] sm:$0xff]  ;;  %v1243_v30 = vld [vmem:[%s8644_s3 + $0x160] sm:$0xff]  ;;  %v1245_v36 = vld [vmem:[%s8644_s3 + $0x170] sm:$0xff] }
 0x29a   : > { %6638 = vmatpush3.bf16.msra.mxu0 %v6635_v15  ;;  %6957 = vmatpush3.bf16.msra.mxu1 %v6635_v15 }
 0x29b   : > { %6640 = vmatprep.subr.bf16.mxu0 %v6639_v5  ;;  %6950 = vmatprep.subr.bf16.mxu1 %v6639_v5 }
 0x29c   : > { %1300 = vperm.xlu1 %7232, %v8721_v50   ;;  %1297 = vperm.xlu0 %7231, %v8724_v51  }
 0x29e   : > { %6642 = vmatpush3.bf16.msra.mxu0 %v6639_v5  ;;  %6958 = vmatpush3.bf16.msra.mxu1 %v6639_v5 }
 0x29f   : > { %6644 = vmatprep.subr.bf16.mxu0 %v6643_v24  ;;  %6951 = vmatprep.subr.bf16.mxu1 %v6643_v24 }
 0x2a0   : > { %1306 = vperm.xlu1 %7232, %v8729_v52   ;;  %1303 = vperm.xlu0 %7231, %v8732_v53  }
 0x2a2   : > { %6646 = vmatpush3.bf16.msra.mxu0 %v6643_v24  ;;  %6959 = vmatpush3.bf16.msra.mxu1 %v6643_v24  ;;  %v1241_v24 = vld [vmem:[%s8644_s3 + $0x150] sm:$0xff] }
 0x2a3   : > { %6648 = vmatprep.subr.bf16.mxu0 %v6647_v29  ;;  %6952 = vmatprep.subr.bf16.mxu1 %v6647_v29 }
 0x2a4   : > { %1312 = vperm.xlu1 %7232, %v8737_v54   ;;  %1309 = vperm.xlu0 %7231, %v8740_v55  }
 0x2a6   : > { %6650 = vmatpush3.bf16.msra.mxu0 %v6647_v29  ;;  %6960 = vmatpush3.bf16.msra.mxu1 %v6647_v29 }
 0x2a7   : > { %6652 = vmatprep.subr.bf16.mxu0 %v6651_v33  ;;  %6953 = vmatprep.subr.bf16.mxu1 %v6651_v33 }
 0x2a8   : > { %1318 = vperm.xlu1 %7232, %v8745_v56   ;;  %1315 = vperm.xlu0 %7231, %v8748_v57  }
 0x2aa   : > { %6654 = vmatpush3.bf16.msra.mxu0 %v6651_v33  ;;  %6961 = vmatpush3.bf16.msra.mxu1 %v6651_v33  ;;  %v1244_v33 = vld [vmem:[%s8644_s3 + $0x168] sm:$0xff] }
 0x2ab   : > { %6656 = vmatprep.subr.bf16.mxu0 %v6655_v37  ;;  %6954 = vmatprep.subr.bf16.mxu1 %v6655_v37 }
 0x2ac   : > { %1324 = vperm.xlu1 %7232, %v8753_v58   ;;  %1321 = vperm.xlu0 %7231, %v8756_v59  }
 0x2ae   : > { %6658 = vmatpush3.bf16.msra.mxu0 %v6655_v37  ;;  %6962 = vmatpush3.bf16.msra.mxu1 %v6655_v37 }
 0x2b0   : > { %1330 = vperm.xlu1 %7232, %v8761_v60   ;;  %1327 = vperm.xlu0 %7231, %v8764_v61  }
 0x2b4   : > { %1336 = vperm.xlu1 %7232, %v8769_v62   ;;  %1333 = vperm.xlu0 %7231, %v8772_v63  }
 0x2b8   : > { %1342 = vperm.xlu1 %7232, %v8777_v2   ;;  %1339 = vperm.xlu0 %7231, %v8780_v3  }
 0x2bc   : > { %1348 = vperm.xlu1 %7232, %v8785_v8   ;;  %1345 = vperm.xlu0 %7231, %v8788_v9  }
 0x2c0   : > { %1354 = vperm.xlu1 %7232, %v8793_v13   ;;  %1351 = vperm.xlu0 %7231, %v8796_v14  }
 0x2c4   : > { %1360 = vperm.xlu1 %7232, %v8801_v18   ;;  %1357 = vperm.xlu0 %7231, %v8804_v19  }
 0x2c8   : > { %1366 = vperm.xlu1 %7232, %v8809_v22   ;;  %1363 = vperm.xlu0 %7231, %v8812_v23  }
 0x2cc   : > { %1372 = vperm.xlu1 %7232, %v8817_v27   ;;  %1369 = vperm.xlu0 %7231, %v8820_v28  }
 0x2d0   : > { %7233 = vset.pattern.permute.xlu1 %v8155_v34  ;;  %1375 = vperm.xlu0 %7231, %v8825_v32  }
 0x2d1   : > { %1459 = vperm.xlu1 %7233, %v8682_v40  }
 0x2d4   : > { %7234 = vset.pattern.permute.xlu0 %v8155_v34 }
 0x2d5   : > { %1465 = vperm.xlu1 %7233, %v8679_v39   ;;  %1462 = vperm.xlu0 %7234, %v8692_v43  }
 0x2d9   : > { %1468 = vperm.xlu1 %7233, %v8689_v42   ;;  %1471 = vperm.xlu0 %7234, %v8700_v45  }
 0x2dd   : > { %1474 = vperm.xlu1 %7233, %v8697_v44   ;;  %1477 = vperm.xlu0 %7234, %v8708_v47   ;;  %v2372_v47 = vld [vmem:[#allocation8 + $0x8] sm:$0xff] }
 0x2e1   : > { %1480 = vperm.xlu1 %7233, %v8705_v46   ;;  %1483 = vperm.xlu0 %7234, %v8716_v49  }
 0x2e5   : > { %1486 = vperm.xlu1 %7233, %v8713_v48   ;;  %1489 = vperm.xlu0 %7234, %v8724_v51   ;;  %v8847_v48 = vpack.c.bf16 %v2372_v47, %v2371_v38  ;;  %v1246_v47 = vld [vmem:[%s8644_s3 + $0x178] sm:$0xff] }
 0x2e7   : > { %6660 = vmatprep.subr.bf16.mxu0 %v8847_v48 }
 0x2e9   : > { %1492 = vperm.xlu1 %7233, %v8721_v50   ;;  %1495 = vperm.xlu0 %7234, %v8732_v53  }
 0x2ed   : > { %1498 = vperm.xlu1 %7233, %v8729_v52   ;;  %1501 = vperm.xlu0 %7234, %v8740_v55  }
 0x2f1   : > { %1504 = vperm.xlu1 %7233, %v8737_v54   ;;  %1507 = vperm.xlu0 %7234, %v8748_v57  }
 0x2f5   : > { %1510 = vperm.xlu1 %7233, %v8745_v56   ;;  %1513 = vperm.xlu0 %7234, %v8756_v59  }
 0x2f9   : > { %1516 = vperm.xlu1 %7233, %v8753_v58   ;;  %1519 = vperm.xlu0 %7234, %v8764_v61  }
 0x2fd   : > { %1522 = vperm.xlu1 %7233, %v8761_v60   ;;  %1525 = vperm.xlu0 %7234, %v8772_v63  }
 0x301   : > { %1528 = vperm.xlu1 %7233, %v8769_v62   ;;  %1531 = vperm.xlu0 %7234, %v8780_v3  }
 0x305   : > { %1534 = vperm.xlu1 %7233, %v8777_v2   ;;  %1537 = vperm.xlu0 %7234, %v8788_v9  }
 0x307   : > { %v8858_v49 = vpop.permute.xlu1 %1273  ;;  %v8860_v50 = vpop.permute.xlu0 %1267 }
 0x309   : > { %1540 = vperm.xlu1 %7233, %v8785_v8   ;;  %1543 = vperm.xlu0 %7234, %v8796_v14  }
 0x30b   : > { %v8864_v51 = vpop.permute.xlu1 %1276  ;;  %v8866_v52 = vpop.permute.xlu0 %1270 }
 0x30d   : > { %1546 = vperm.xlu1 %7233, %v8793_v13   ;;  %1549 = vperm.xlu0 %7234, %v8804_v19   ;;  %v1239_v19 = vld [vmem:[%s8644_s3 + $0x140] sm:$0xff]  ;;  %v11269_v13 = vmov 1.0  }
 0x30f   : > { %v8870_v53 = vpop.permute.xlu1 %1282  ;;  %v8872_v54 = vpop.permute.xlu0 %1279 }
 0x311   : > { %1552 = vperm.xlu1 %7233, %v8801_v18   ;;  %1555 = vperm.xlu0 %7234, %v8812_v23  }
 0x313   : > { %v8876_v55 = vpop.permute.xlu1 %1288  ;;  %v8878_v0 = vpop.permute.xlu0 %1285 }
 0x315   : > { %1558 = vperm.xlu1 %7233, %v8809_v22   ;;  %1561 = vperm.xlu0 %7234, %v8820_v28  }
 0x317   : > { %v8882_v1 = vpop.permute.xlu1 %1294  ;;  %v8884_v4 = vpop.permute.xlu0 %1291 }
 0x319   : > { %1564 = vperm.xlu1 %7233, %v8817_v27   ;;  %1567 = vperm.xlu0 %7234, %v8825_v32   ;;  %v1242_v27 = vld [vmem:[%s8644_s3 + $0x158] sm:$0xff] }
 0x31b   : > { %v8889_v7 = vpop.permute.xlu1 %1300  ;;  %v8891_v10 = vpop.permute.xlu0 %1297 }
 0x31d   : > { %7235 = vset.pattern.permute.xlu1 %v11156_v41  ;;  %1570 = vperm.xlu0 %7234, %v1236_v6  }
 0x31e   : > { %1378 = vperm.xlu1 %7235, %v1236_v6  }
 0x31f   : > { %v8895_v12 = vpop.permute.xlu1 %1306  ;;  %v8897_v15 = vpop.permute.xlu0 %1303 }
 0x321   : > { %1573 = vperm.xlu0 %7234, %v1237_v11  }
 0x322   : > { %1381 = vperm.xlu1 %7235, %v1237_v11  }
 0x323   : > { %v8900_v17 = vpop.permute.xlu1 %1312  ;;  %v8902_v18 = vpop.permute.xlu0 %1309 }
 0x325   : > { %1576 = vperm.xlu0 %7234, %v1238_v16  }
 0x326   : > { %1384 = vperm.xlu1 %7235, %v1238_v16   ;;  %v8945_v16 = vld [vmem:[%s8644_s3 + $0x180] sm:$0xff] }
 0x327   : > { %v8905_v5 = vpop.permute.xlu1 %1318  ;;  %v8907_v20 = vpop.permute.xlu0 %1315  ;;  %11260 = vst [vmem:[#allocation47_spill] sm:$0xff] %v8945_v16 }
 0x329   : > { %1579 = vperm.xlu0 %7234, %v1239_v19  }
 0x32a   : > { %1387 = vperm.xlu1 %7235, %v1239_v19   ;;  %v11158_v19 = vlaneseq }
 0x32b   : > { %v8910_v22 = vpop.permute.xlu1 %1324  ;;  %v8912_v23 = vpop.permute.xlu0 %1321 }
 0x32d   : > { %1582 = vperm.xlu0 %7234, %v1240_v21  }
 0x32e   : > { %1390 = vperm.xlu1 %7235, %v1240_v21  }
 0x32f   : > { %v8915_v25 = vpop.permute.xlu1 %1330  ;;  %v8917_v26 = vpop.permute.xlu0 %1327 }
 0x331   : > { %1585 = vperm.xlu0 %7234, %v1241_v24  }
 0x332   : > { %1393 = vperm.xlu1 %7235, %v1241_v24  }
 0x333   : > { %v8920_v28 = vpop.permute.xlu1 %1336  ;;  %v8922_v29 = vpop.permute.xlu0 %1333 }
 0x335   : > { %1588 = vperm.xlu0 %7234, %v1242_v27  }
 0x336   : > { %1396 = vperm.xlu1 %7235, %v1242_v27   ;;  %v8954_v27 = vld [vmem:[%s8644_s3 + $0x188] sm:$0xff] }
 0x337   : > { %v8925_v31 = vpop.permute.xlu1 %1342  ;;  %v8927_v32 = vpop.permute.xlu0 %1339  ;;  %11262 = vst [vmem:[#allocation49_spill] sm:$0xff] %v8954_v27 }
 0x339   : > { %1591 = vperm.xlu0 %7234, %v1243_v30  }
 0x33a   : > { %1399 = vperm.xlu1 %7235, %v1243_v30   ;;  %v8957_v30 = vand.u32 127, %v11158_v19 }
 0x33b   : > { %v8930_v34 = vpop.permute.xlu1 %1348  ;;  %v8932_v35 = vpop.permute.xlu0 %1345 }
 0x33c   : > { %vm1265_vm1 = vcmp.lt.s32.totalorder %v8957_v30, 64 }
 0x33d   : > { %1594 = vperm.xlu0 %7234, %v1244_v33  }
 0x33e   : > { %1402 = vperm.xlu1 %7235, %v1244_v33  }
 0x33f   : > { %v8935_v37 = vpop.permute.xlu1 %1354  ;;  %v8937_v38 = vpop.permute.xlu0 %1351 }
 0x341   : > { %1597 = vperm.xlu0 %7234, %v1245_v36  }
 0x342   : > { %1405 = vperm.xlu1 %7235, %v1245_v36  }
 0x343   : > { %v8940_v6 = vpop.permute.xlu1 %1360  ;;  %v8942_v11 = vpop.permute.xlu0 %1357 }
 0x345   : > { %1600 = vperm.xlu0 %7234, %v1246_v47  }
 0x346   : > { %1408 = vperm.xlu1 %7235, %v1246_v47   ;;  %v8966_v47 = vld [vmem:[%s8644_s3 + $0x190] sm:$0xff] }
 0x347   : > { %v8947_v21 = vpop.permute.xlu1 %1366  ;;  %v8949_v24 = vpop.permute.xlu0 %1363  ;;  %11265 = vst [vmem:[#allocation52_spill] sm:$0xff] %v8966_v47 }
 0x348   : > { %11261 = vst [vmem:[#allocation48_spill] sm:$0xff] %v8947_v21  ;;  %v11163_v21 = vmov 1.0  }
 0x349   : > { %1603 = vperm.xlu0 %7234, %v8945_v16  }
 0x34a   : > { %1411 = vperm.xlu1 %7235, %v8945_v16  }
 0x34b   : > { %v8959_v33 = vpop.permute.xlu1 %1372  ;;  %v8961_v36 = vpop.permute.xlu0 %1369 }
 0x34c   : > { %11263 = vst [vmem:[#allocation50_spill] sm:$0xff] %v8959_v33  ;;  %11264 = vst [vmem:[#allocation51_spill] sm:$0xff] %v8961_v36  ;;  %v2373_v33 = vld [vmem:[#allocation8 + $0x10] sm:$0xff]  ;;  %v2374_v36 = vld [vmem:[#allocation8 + $0x18] sm:$0xff] }
 0x34d   : > { %1606 = vperm.xlu0 %7234, %v8954_v27  }
 0x34e   : > { %1414 = vperm.xlu1 %7235, %v8954_v27   ;;  %v8981_v27 = vld [vmem:[%s8644_s3 + $0x198] sm:$0xff] }
 0x34f   : > { %v8969_v41 = vpop.permute.xlu0 %1375  ;;  %11267 = vst [vmem:[#allocation54_spill] sm:$0xff] %v8981_v27 }
 0x350   : > { %11266 = vst [vmem:[#allocation53_spill] sm:$0xff] %v8969_v41  ;;  %v1460_v16 = vpop.permute.xlu1 %1459 }
 0x351   : > { %1609 = vperm.xlu0 %7234, %v8966_v47   ;;  %v8975_v19 = vsel %vm1265_vm1, %v8860_v50, %v1460_v16 }
 0x352   : > { %1417 = vperm.xlu1 %7235, %v8966_v47   ;;  %vm1714_vm2 = vcmp.eq.s32.totalorder %v8957_v30, %v8975_v19  ;;  %v6663_v47 = vpack.c.bf16 %v2374_v36, %v2373_v33 }
 0x353   : > { %6043 = vmatprep.mubr.msk.f32.mxu0 %vm1714_vm2, %v11163_v21  ;;  %v9004_v21 = vld [vmem:[%s8644_s3 + $0x1a0] sm:$0xff] }
 0x354   : > { %v1466_v41 = vpop.permute.xlu1 %1465  ;;  %v1463_v14 = vpop.permute.xlu0 %1462  ;;  %11268 = vst [vmem:[#allocation55_spill] sm:$0xff] %v9004_v21 }
 0x355   : > { %v8990_v50 = vsel %vm1265_vm1, %v8858_v49, %v1466_v41  ;;  %v8995_v16 = vsel %vm1265_vm1, %v8866_v52, %v1463_v14  ;;  %1612 = vperm.xlu0 %7234, %v8981_v27   ;;  %v2375_v41 = vld [vmem:[#allocation8 + $0x20] sm:$0xff]  ;;  %v2376_v49 = vld [vmem:[#allocation8 + $0x28] sm:$0xff] }
 0x356   : > { %vm1716_vm3 = vcmp.eq.s32.totalorder %v8957_v30, %v8990_v50  ;;  %vm1715_vm4 = vcmp.eq.s32.totalorder %v8957_v30, %v8995_v16  ;;  %1420 = vperm.xlu1 %7235, %v8981_v27   ;;  %v6667_v27 = vpack.c.bf16 %v2376_v49, %v2375_v41 }
 0x357   : > { %6044 = vmatmul.mubr.msk.f32.vlgmr.msra.gmra.mrb[0].mxu0 %vm1715_vm4, %v11269_v13 }
 0x358   : > { %v1469_v14 = vpop.permute.xlu1 %1468  ;;  %6046 = vmatprep.mubr.msk.f32.mxu0 %vm1716_vm3, %v11269_v13  ;;  %v1472_v52 = vpop.permute.xlu0 %1471  ;;  %6662 = vmatpush3.bf16.msra.mxu0 %v8847_v48  ;;  %v9032_v48 = vld [vmem:[%s8644_s3 + $0x1a8] sm:$0xff] }
 0x359   : > { %v9018_v33 = vsel %vm1265_vm1, %v8864_v51, %v1469_v14  ;;  %v9023_v36 = vsel %vm1265_vm1, %v8872_v54, %v1472_v52  ;;  %1615 = vperm.xlu0 %7234, %v9004_v21   ;;  %6664 = vmatprep.subr.bf16.mxu0 %v6663_v47  ;;  %11270 = vst [vmem:[#allocation56_spill] sm:$0xff] %v9032_v48  ;;  %v2377_v51 = vld [vmem:[#allocation8 + $0x30] sm:$0xff]  ;;  %v2378_v14 = vld [vmem:[#allocation8 + $0x38] sm:$0xff] }
 0x35a   : > { %vm1717_vm5 = vcmp.eq.s32.totalorder %v8957_v30, %v9018_v33  ;;  %vm1718_vm6 = vcmp.eq.s32.totalorder %v8957_v30, %v9023_v36  ;;  %1423 = vperm.xlu1 %7235, %v9004_v21   ;;  %v6671_v21 = vpack.c.bf16 %v2378_v14, %v2377_v51 }
 0x35b   : > { %6047 = vmatmul.mubr.msk.f32.gmra.mrb[2].mxu0 %vm1717_vm5, %v11269_v13 }
 0x35c   : > { %v1475_v54 = vpop.permute.xlu1 %1474  ;;  %6049 = vmatprep.mubr.msk.f32.mxu0 %vm1718_vm6, %v11269_v13  ;;  %v1478_v41 = vpop.permute.xlu0 %1477  ;;  %6666 = vmatpush3.bf16.msra.mxu0 %v6663_v47  ;;  %v9059_v47 = vld [vmem:[%s8644_s3 + $0x1b0] sm:$0xff] }
 0x35d   : > { %v9045_v49 = vsel %vm1265_vm1, %v8870_v53, %v1475_v54  ;;  %v9050_v52 = vsel %vm1265_vm1, %v8878_v0, %v1478_v41  ;;  %1618 = vperm.xlu0 %7234, %v9032_v48   ;;  %6668 = vmatprep.subr.bf16.mxu0 %v6667_v27  ;;  %11271 = vst [vmem:[#allocation57_spill] sm:$0xff] %v9059_v47  ;;  %v2379_v53 = vld [vmem:[#allocation8 + $0x40] sm:$0xff]  ;;  %v2380_v54 = vld [vmem:[#allocation8 + $0x48] sm:$0xff] }
 0x35e   : > { %vm1719_vm7 = vcmp.eq.s32.totalorder %v8957_v30, %v9045_v49  ;;  %vm1720_vm8 = vcmp.eq.s32.totalorder %v8957_v30, %v9050_v52  ;;  %1426 = vperm.xlu1 %7235, %v9032_v48   ;;  %v6675_v48 = vpack.c.bf16 %v2380_v54, %v2379_v53 }
 0x35f   : > { %6050 = vmatmul.mubr.msk.f32.gmra.mrb[4].mxu0 %vm1719_vm7, %v11269_v13 }
 0x360   : > { %v1481_v0 = vpop.permute.xlu1 %1480  ;;  %6052 = vmatprep.mubr.msk.f32.mxu0 %vm1720_vm8, %v11269_v13  ;;  %v1484_v51 = vpop.permute.xlu0 %1483  ;;  %6670 = vmatpush3.bf16.msra.mxu0 %v6667_v27  ;;  %v9086_v27 = vld [vmem:[%s8644_s3 + $0x1b8] sm:$0xff] }
 0x361   : > { %v9072_v14 = vsel %vm1265_vm1, %v8876_v55, %v1481_v0  ;;  %v9077_v41 = vsel %vm1265_vm1, %v8884_v4, %v1484_v51  ;;  %1621 = vperm.xlu0 %7234, %v9059_v47   ;;  %6672 = vmatprep.subr.bf16.mxu0 %v6671_v21  ;;  %11272 = vst [vmem:[#allocation58_spill] sm:$0xff] %v9086_v27  ;;  %v2381_v55 = vld [vmem:[#allocation8 + $0x50] sm:$0xff]  ;;  %v2382_v0 = vld [vmem:[#allocation8 + $0x58] sm:$0xff] }
 0x362   : > { %vm1721_vm9 = vcmp.eq.s32.totalorder %v8957_v30, %v9072_v14  ;;  %vm1722_vm10 = vcmp.eq.s32.totalorder %v8957_v30, %v9077_v41  ;;  %1429 = vperm.xlu1 %7235, %v9059_v47   ;;  %v6679_v47 = vpack.c.bf16 %v2382_v0, %v2381_v55 }
 0x363   : > { %6053 = vmatmul.mubr.msk.f32.gmra.mrb[6].mxu0 %vm1721_vm9, %v11269_v13 }
 0x364   : > { %v1487_v4 = vpop.permute.xlu1 %1486  ;;  %6055 = vmatprep.mubr.msk.f32.mxu0 %vm1722_vm10, %v11269_v13  ;;  %v1490_v53 = vpop.permute.xlu0 %1489  ;;  %6674 = vmatpush3.bf16.msra.mxu0 %v6671_v21  ;;  %v9113_v21 = vld [vmem:[%s8644_s3 + $0x1c0] sm:$0xff] }
 0x365   : > { %v9099_v54 = vsel %vm1265_vm1, %v8882_v1, %v1487_v4  ;;  %v9104_v51 = vsel %vm1265_vm1, %v8891_v10, %v1490_v53  ;;  %1624 = vperm.xlu0 %7234, %v9086_v27   ;;  %6676 = vmatprep.subr.bf16.mxu0 %v6675_v48  ;;  %11273 = vst [vmem:[#allocation59_spill] sm:$0xff] %v9113_v21  ;;  %v2383_v1 = vld [vmem:[#allocation8 + $0x60] sm:$0xff]  ;;  %v2384_v4 = vld [vmem:[#allocation8 + $0x68] sm:$0xff] }
 0x366   : > { %vm1723_vm11 = vcmp.eq.s32.totalorder %v8957_v30, %v9099_v54  ;;  %vm1724_vm12 = vcmp.eq.s32.totalorder %v8957_v30, %v9104_v51  ;;  %1432 = vperm.xlu1 %7235, %v9086_v27   ;;  %v6683_v27 = vpack.c.bf16 %v2384_v4, %v2383_v1  ;;  %v7641_v54 = vld [vmem:[%s8644_s3 + $0x148] sm:$0xff] }
 0x367   : > { %6056 = vmatmul.mubr.msk.f32.gmra.mrb[8].mxu0 %vm1723_vm11, %v11269_v13 }
 0x368   : > { %v1493_v10 = vpop.permute.xlu1 %1492  ;;  %6058 = vmatprep.mubr.msk.f32.mxu0 %vm1724_vm12, %v11269_v13  ;;  %v1496_v55 = vpop.permute.xlu0 %1495  ;;  %6678 = vmatpush3.bf16.msra.mxu0 %v6675_v48  ;;  %v9140_v48 = vld [vmem:[%s8644_s3 + $0x1c8] sm:$0xff] }
 0x369   : > { %v9126_v0 = vsel %vm1265_vm1, %v8889_v7, %v1493_v10  ;;  %v9131_v53 = vsel %vm1265_vm1, %v8897_v15, %v1496_v55  ;;  %1627 = vperm.xlu0 %7234, %v9113_v21   ;;  %6680 = vmatprep.subr.bf16.mxu0 %v6679_v47  ;;  %v2385_v7 = vld [vmem:[#allocation8 + $0x70] sm:$0xff]  ;;  %v2386_v10 = vld [vmem:[#allocation8 + $0x78] sm:$0xff] }
 0x36a   : > { %vm11176_vm13 = vcmp.eq.s32.totalorder %v8957_v30, %v9126_v0  ;;  %vm11174_vm14 = vcmp.eq.s32.totalorder %v8957_v30, %v9131_v53  ;;  %1435 = vperm.xlu1 %7235, %v9113_v21   ;;  %v6687_v21 = vpack.c.bf16 %v2386_v10, %v2385_v7 }
 0x36b   : > { %6059 = vmatmul.mubr.msk.f32.gmra.mrb[10].mxu0 %vm11176_vm13, %v11269_v13  ;;  %vm2846_vm13 = vcmp.lt.s32.totalorder %v8689_v42, 64 }
 0x36c   : > { %v1499_v15 = vpop.permute.xlu1 %1498  ;;  %6061 = vmatprep.mubr.msk.f32.mxu0 %vm11174_vm14, %v11269_v13  ;;  %v1502_v1 = vpop.permute.xlu0 %1501  ;;  %6682 = vmatpush3.bf16.msra.mxu0 %v6679_v47 }
 0x36d   : > { %v9153_v4 = vsel %vm1265_vm1, %v8895_v12, %v1499_v15  ;;  %v9158_v55 = vsel %vm1265_vm1, %v8902_v18, %v1502_v1  ;;  %1630 = vperm.xlu0 %7234, %v9140_v48   ;;  %6684 = vmatprep.subr.bf16.mxu0 %v6683_v27  ;;  %v9167_v12 = vld [vmem:[%s8644_s3 + $0x1d0] sm:$0xff] }
 0x36e   : > { %vm11173_vm15 = vcmp.eq.s32.totalorder %v8957_v30, %v9153_v4  ;;  %vm11175_vm0 = vcmp.eq.s32.totalorder %v8957_v30, %v9158_v55  ;;  %1438 = vperm.xlu1 %7235, %v9140_v48  }
 0x36f   : > { %6062 = vmatmul.mubr.msk.f32.gmra.mrb[12].mxu0 %vm11173_vm15, %v11269_v13  ;;  %vm2845_vm15 = vcmp.lt.s32.totalorder %v8679_v39, 64 }
 0x370   : > { %v1505_v18 = vpop.permute.xlu1 %1504  ;;  %6064 = vmatprep.mubr.msk.f32.mxu0 %vm11175_vm0, %v11269_v13  ;;  %v1508_v47 = vpop.permute.xlu0 %1507  ;;  %6686 = vmatpush3.bf16.msra.mxu0 %v6683_v27  ;;  %v9192_v27 = vld [vmem:[%s8644_s3 + $0x1d8] sm:$0xff] }
 0x371   : > { %v9180_v7 = vsel %vm1265_vm1, %v8900_v17, %v1505_v18  ;;  %v1666_v10 = vsel %vm1265_vm1, %v8907_v20, %v1508_v47  ;;  %1633 = vperm.xlu0 %7234, %v9167_v12   ;;  %6688 = vmatprep.subr.bf16.mxu0 %v6687_v21  ;;  %11274 = vst [vmem:[#allocation60_spill] sm:$0xff] %v9192_v27  ;;  %v8157_v17 = vmov 0.0  }
 0x372   : > { %vm11177_vm14 = vcmp.eq.s32.totalorder %v8957_v30, %v9180_v7  ;;  %vm1730_vm0 = vcmp.eq.s32.totalorder %v8957_v30, %v1666_v10  ;;  %1441 = vperm.xlu1 %7235, %v9167_v12   ;;  %v9199_v20 = vsel %vm1714_vm2, 1.0, %v8157_v17  ;;  %v9212_v19 = vsel %vm2845_vm15, 1.0, %v8157_v17 }
 0x373   : > { %v9202_v39 = vsel %vm1730_vm0, 1.0, %v8157_v17  ;;  %6065 = vmatmul.mubr.msk.f32.gmra.mrb[14].mxu0 %vm11177_vm14, %v11269_v13  ;;  %vm2843_vm2 = vcmp.lt.s32.totalorder %v8682_v40, 64  ;;  %v9223_v10 = vsel %vm2846_vm13, 1.0, %v8157_v17  ;;  %v9230_v40 = vld [vmem:[%s8644_s3 + $0x1e0] sm:$0xff] }
 0x374   : > { %v1511_v42 = vpop.permute.xlu1 %1510  ;;  %6067 = vmatprep.mubr.msk.f32.mxu0 %vm1730_vm0, %v11269_v13  ;;  %v1514_v1 = vpop.permute.xlu0 %1513  ;;  %6690 = vmatpush3.bf16.msra.mxu0 %v6687_v21  ;;  %vm2844_vm0 = vcmp.lt.s32.totalorder %v8692_v43, 64  ;;  %11275 = vst [vmem:[#allocation61_spill] sm:$0xff] %v9230_v40  ;;  %v9279_v43 = vld [vmem:[%s8644_s3 + $0x1e8] sm:$0xff] }
 0x375   : > { %v1667_v18 = vsel %vm1265_vm1, %v8905_v5, %v1511_v42  ;;  %v1668_v47 = vsel %vm1265_vm1, %v8912_v23, %v1514_v1  ;;  %1636 = vperm.xlu0 %7234, %v9192_v27   ;;  %v9236_v5 = vsel %vm1716_vm3, 1.0, %v8157_v17  ;;  %v9242_v23 = vsel %vm1715_vm4, 1.0, %v8157_v17 }
 0x376   : > { %vm1731_vm15 = vcmp.eq.s32.totalorder %v8957_v30, %v1667_v18  ;;  %vm1732_vm14 = vcmp.eq.s32.totalorder %v8957_v30, %v1668_v47  ;;  %1444 = vperm.xlu1 %7235, %v9192_v27   ;;  %v9252_v1 = vsel %vm2843_vm2, 1.0, %v8157_v17  ;;  %v9262_v15 = vsel %vm2844_vm0, 1.0, %v8157_v17 }
 0x377   : > { %v9245_v21 = vsel %vm1731_vm15, 1.0, %v8157_v17  ;;  %v9248_v42 = vsel %vm1732_vm14, 1.0, %v8157_v17  ;;  %6068 = vmatmul.mubr.msk.f32.gmra.mrb[16].mxu0 %vm1731_vm15, %v11269_v13  ;;  %vm2848_vm3 = vcmp.lt.s32.totalorder %v8697_v44, 64  ;;  %vm2847_vm4 = vcmp.lt.s32.totalorder %v8700_v45, 64 }
 0x378   : > { %v1517_v18 = vpop.permute.xlu1 %1516  ;;  %6070 = vmatprep.mubr.msk.f32.mxu0 %vm1732_vm14, %v11269_v13  ;;  %v1520_v47 = vpop.permute.xlu0 %1519  ;;  %v9305_v33 = vsel %vm2848_vm3, 1.0, %v8157_v17  ;;  %vm2862_vm2 = vcmp.lt.s32.totalorder %v8753_v58, 64  ;;  %v9343_v45 = vsel %vm1720_vm8, 1.0, %v8157_v17  ;;  %vm2861_vm8 = vcmp.lt.s32.totalorder %v8756_v59, 64  ;;  %v9383_v58 = vld [vmem:[%s8644_s3 + $0x1f8] sm:$0xff] }
 0x379   : > { %v1669_v27 = vsel %vm1265_vm1, %v8910_v22, %v1517_v18  ;;  %v1670_v50 = vsel %vm1265_vm1, %v8917_v26, %v1520_v47  ;;  %1639 = vperm.xlu0 %7234, %v9230_v40   ;;  %v9285_v22 = vsel %vm1717_vm5, 1.0, %v8157_v17  ;;  %v9291_v26 = vsel %vm1718_vm6, 1.0, %v8157_v17  ;;  %11277 = vst [vmem:[#allocation63_spill] sm:$0xff] %v9343_v45 }
 0x37a   : > { %vm1733_vm13 = vcmp.eq.s32.totalorder %v8957_v30, %v1669_v27  ;;  %vm1734_vm14 = vcmp.eq.s32.totalorder %v8957_v30, %v1670_v50  ;;  %1447 = vperm.xlu1 %7235, %v9230_v40   ;;  %vm2860_vm5 = vcmp.lt.s32.totalorder %v8745_v56, 64  ;;  %vm2859_vm6 = vcmp.lt.s32.totalorder %v8748_v57, 64 }
 0x37b   : > { %v9294_v27 = vsel %vm1733_vm13, 1.0, %v8157_v17  ;;  %v9297_v50 = vsel %vm1734_vm14, 1.0, %v8157_v17  ;;  %6071 = vmatmul.mubr.msk.f32.gmra.mrb[18].mxu0 %vm1733_vm13, %v11269_v13  ;;  %v9324_v47 = vsel %vm2847_vm4, 1.0, %v8157_v17  ;;  %v5304_v49 = vsel %vm2860_vm5, 1.0, %v8157_v17 }
 0x37c   : > { %11276 = vst [vmem:[#allocation62_spill] sm:$0xff] %v9297_v50  ;;  %v1523_v16 = vpop.permute.xlu1 %1522  ;;  %6073 = vmatprep.mubr.msk.f32.mxu0 %vm1734_vm14, %v11269_v13  ;;  %v1526_v40 = vpop.permute.xlu0 %1525  ;;  %v9367_v56 = vsel %vm2862_vm2, 1.0, %v8157_v17  ;;  %vm2864_vm3 = vcmp.lt.s32.totalorder %v8761_v60, 64  ;;  %vm2863_vm4 = vcmp.lt.s32.totalorder %v8764_v61, 64  ;;  %v5305_v14 = vsel %vm2861_vm8, 1.0, %v8157_v17 }
 0x37d   : > { %v1671_v44 = vsel %vm1265_vm1, %v8915_v25, %v1523_v16  ;;  %v1672_v18 = vsel %vm1265_vm1, %v8922_v29, %v1526_v40  ;;  %1642 = vperm.xlu0 %7234, %v9279_v43   ;;  %v9331_v25 = vld [vmem:[%s8644_s3 + $0x1f0] sm:$0xff]  ;;  %v9337_v29 = vsel %vm1719_vm7, 1.0, %v8157_v17  ;;  %vm2850_vm7 = vcmp.lt.s32.totalorder %v8705_v46, 64 }
 0x37e   : > { %vm1735_vm0 = vcmp.eq.s32.totalorder %v8957_v30, %v1671_v44  ;;  %vm1736_vm15 = vcmp.eq.s32.totalorder %v8957_v30, %v1672_v18  ;;  %1450 = vperm.xlu1 %7235, %v9279_v43   ;;  %v5303_v18 = vsel %vm2859_vm6, 1.0, %v8157_v17  ;;  %v5308_v45 = vsel %vm2864_vm3, 1.0, %v8157_v17 }
 0x37f   : > { %v9346_v40 = vsel %vm1735_vm0, 1.0, %v8157_v17  ;;  %v9349_v16 = vsel %vm1736_vm15, 1.0, %v8157_v17  ;;  %6074 = vmatmul.mubr.msk.f32.gmra.mrb[20].mxu0 %vm1735_vm0, %v11269_v13  ;;  %v9434_v60 = vsel %vm1723_vm11, 1.0, %v8157_v17  ;;  %v9440_v61 = vsel %vm1724_vm12, 1.0, %v8157_v17 }
 0x380   : > { %11278 = vst [vmem:[#allocation64_spill] sm:$0xff] %v9349_v16  ;;  %v1529_v36 = vpop.permute.xlu1 %1528  ;;  %6076 = vmatprep.mubr.msk.f32.mxu0 %vm1736_vm15, %v11269_v13  ;;  %v1532_v50 = vpop.permute.xlu0 %1531  ;;  %vm2868_vm11 = vcmp.lt.s32.totalorder %v8777_v2, 64  ;;  %vm2867_vm12 = vcmp.lt.s32.totalorder %v8780_v3, 64  ;;  %vm11281_vm15 = vcmp.eq.s32.totalorder %v8957_v30, %v9126_v0  ;;  %vm11282_vm8 = vcmp.eq.s32.totalorder %v8957_v30, %v9131_v53  ;;  %v2309_v53 = vld [vmem:[%s8649_s21 + $0x10] sm:$0xff] }
 0x381   : > { %v1673_v57 = vsel %vm1265_vm1, %v8920_v28, %v1529_v36  ;;  %v1674_v44 = vsel %vm1265_vm1, %v8927_v32, %v1532_v50  ;;  %1645 = vperm.xlu0 %7234, %v9331_v25   ;;  %v9389_v28 = vsel %vm1721_vm9, 1.0, %v8157_v17  ;;  %v9395_v32 = vsel %vm1722_vm10, 1.0, %v8157_v17 }
 0x382   : > { %vm1737_vm13 = vcmp.eq.s32.totalorder %v8957_v30, %v1673_v57  ;;  %vm1738_vm14 = vcmp.eq.s32.totalorder %v8957_v30, %v1674_v44  ;;  %1453 = vperm.xlu1 %7235, %v9331_v25   ;;  %v7236_v44 = vpack.i.bf16 %v5304_v49, %v5303_v18  ;;  %v5307_v49 = vsel %vm2863_vm4, 1.0, %v8157_v17 }
 0x383   : > { %v9398_v50 = vsel %vm1737_vm13, 1.0, %v8157_v17  ;;  %v9401_v36 = vsel %vm1738_vm14, 1.0, %v8157_v17  ;;  %6077 = vmatmul.mubr.msk.f32.gmra.mrb[22].mxu0 %vm1737_vm13, %v11269_v13  ;;  %vm2866_vm9 = vcmp.lt.s32.totalorder %v8769_v62, 64  ;;  %vm2865_vm10 = vcmp.lt.s32.totalorder %v8772_v63, 64 }
 0x384   : > { %v1535_v52 = vpop.permute.xlu1 %1534  ;;  %6079 = vmatprep.mubr.msk.f32.mxu0 %vm1738_vm14, %v11269_v13  ;;  %v1538_v16 = vpop.permute.xlu0 %1537  ;;  %v5310_v41 = vsel %vm2866_vm9, 1.0, %v8157_v17  ;;  %v11280_v62 = vpack.i.bf16 %v9262_v15, %v9252_v1  ;;  %v9485_v63 = vsel %vm11282_vm8, 1.0, %v8157_v17  ;;  %v7262_v15 = vpack.i.bf16 %v9305_v33, %v9324_v47  ;;  %v7625_v33 = vld [vmem:[%s8644_s3 + $0x50] sm:$0xff]  ;;  %v7626_v47 = vld [vmem:[%s8644_s3 + $0xf8] sm:$0xff] }
 0x385   : > { %v1675_v59 = vsel %vm1265_vm1, %v8925_v31, %v1535_v52  ;;  %v1676_v18 = vsel %vm1265_vm1, %v8932_v35, %v1538_v16  ;;  %1648 = vperm.xlu0 %7234, %v9383_v58   ;;  %v7247_v16 = vpack.i.bf16 %v9367_v56, %v5305_v14  ;;  %v7257_v52 = vpack.i.bf16 %v5308_v45, %v5307_v49 }
 0x386   : > { %vm1739_vm5 = vcmp.eq.s32.totalorder %v8957_v30, %v1675_v59  ;;  %vm1740_vm6 = vcmp.eq.s32.totalorder %v8957_v30, %v1676_v18  ;;  %1456 = vperm.xlu1 %7235, %v9383_v58   ;;  %v11279_v14 = vmov 0   ;;  %v5309_v49 = vsel %vm2865_vm10, 1.0, %v8157_v17 }
 0x387   : > { %v9443_v31 = vsel %vm1739_vm5, 1.0, %v8157_v17  ;;  %v9446_v35 = vsel %vm1740_vm6, 1.0, %v8157_v17  ;;  %6080 = vmatmul.mubr.msk.f32.gmra.mrb[24].mxu0 %vm1739_vm5, %v11269_v13  ;;  %v9499_v0 = vsel %vm2850_vm7, 1.0, %v8157_v17  ;;  %v5311_v1 = vsel %vm2867_vm12, 1.0, %v8157_v17 }
 0x388   : > { %v1541_v51 = vpop.permute.xlu1 %1540  ;;  %6082 = vmatprep.mubr.msk.f32.mxu0 %vm1740_vm6, %v11269_v13  ;;  %v1544_v18 = vpop.permute.xlu0 %1543  ;;  %vm11283_vm13 = vcmp.eq.s32.totalorder %v8957_v30, %v9153_v4  ;;  %vm11284_vm14 = vcmp.eq.s32.totalorder %v8957_v30, %v9158_v55  ;;  %vm2870_vm9 = vcmp.lt.s32.totalorder %v8785_v8, 64  ;;  %vm2869_vm10 = vcmp.lt.s32.totalorder %v8788_v9, 64  ;;  %v11287_v8 = vld [vmem:[#allocation45_spill] sm:$0xff]  ;;  %v11288_v9 = vld [vmem:[#allocation46_spill] sm:$0xff]  ;;  %v11290_v4 = vld [vmem:[#allocation51_spill] sm:$0xff] }
 0x389   : > { %v1677_v45 = vsel %vm1265_vm1, %v8930_v34, %v1541_v51  ;;  %v1678_v56 = vsel %vm1265_vm1, %v8937_v38, %v1544_v18  ;;  %7241 = vset.pattern.permute.xlu0 %v11279_v14  ;;  %v9479_v34 = vsel %vm11281_vm15, 1.0, %v8157_v17  ;;  %v9525_v2 = vsel %vm11283_vm13, 1.0, %v8157_v17 }
 0x38a   : > { %vm1741_vm2 = vcmp.eq.s32.totalorder %v8957_v30, %v1677_v45  ;;  %vm1742_vm0 = vcmp.eq.s32.totalorder %v8957_v30, %v1678_v56  ;;  %7237 = vperm.xlu1 %7235, %v7236_v44   ;;  %7243 = vperm.xlu0 %7241, %v11280_v62   ;;  %v7621_v45 = vld [vmem:[%s8644_s3 + $0x30] sm:$0xff]  ;;  %v5312_v56 = vsel %vm2868_vm11, 1.0, %v8157_v17  ;;  %v7267_v62 = vpack.i.bf16 %v5310_v41, %v5309_v49  ;;  %v7622_v49 = vld [vmem:[%s8644_s3 + $0x48] sm:$0xff] }
 0x38b   : > { %v9488_v38 = vsel %vm1741_vm2, 1.0, %v8157_v17  ;;  %v9491_v44 = vsel %vm1742_vm0, 1.0, %v8157_v17  ;;  %6083 = vmatmul.mubr.msk.f32.gmra.mrb[26].mxu0 %vm1741_vm2, %v11269_v13  ;;  %vm2849_vm3 = vcmp.lt.s32.totalorder %v7621_v45, 64  ;;  %vm2852_vm5 = vcmp.lt.s32.totalorder %v7622_v49, 64 }
 0x38c   : > { %v1547_v51 = vpop.permute.xlu1 %1546  ;;  %6085 = vmatprep.mubr.msk.f32.mxu0 %vm1742_vm0, %v11269_v13  ;;  %v1550_v18 = vpop.permute.xlu0 %1549  ;;  %v7277_v55 = vpack.i.bf16 %v5312_v56, %v5311_v1  ;;  %v11285_v45 = vpack.i.bf16 %v9223_v10, %v9212_v19  ;;  %vm11286_vm2 = vcmp.eq.s32.totalorder %v8957_v30, %v9180_v7  ;;  %vm2872_vm0 = vcmp.lt.s32.totalorder %v11287_v8, 64  ;;  %v11291_v8 = vld [vmem:[#allocation50_spill] sm:$0xff] }
 0x38d   : > { %v1679_v46 = vsel %vm1265_vm1, %v8935_v37, %v1547_v51  ;;  %v1680_v14 = vsel %vm1265_vm1, %v8942_v11, %v1550_v18  ;;  %v9531_v37 = vsel %vm11284_vm14, 1.0, %v8157_v17  ;;  %v9576_v19 = vsel %vm11286_vm2, 1.0, %v8157_v17 }
 0x38e   : > { %vm1743_vm7 = vcmp.eq.s32.totalorder %v8957_v30, %v1679_v46  ;;  %vm1744_vm4 = vcmp.eq.s32.totalorder %v8957_v30, %v1680_v14  ;;  %7248 = vperm.xlu1 %7235, %v7247_v16   ;;  %7258 = vperm.xlu0 %7241, %v7257_v52   ;;  %v5293_v52 = vsel %vm2849_vm3, 1.0, %v8157_v17  ;;  %v2307_v46 = vld [vmem:[%s8649_s21] sm:$0xff]  ;;  %vm2871_vm15 = vcmp.lt.s32.totalorder %v11288_v9, 64 }
 0x38f   : > { %v9534_v3 = vsel %vm1743_vm7, 1.0, %v8157_v17  ;;  %v9537_v11 = vsel %vm1744_vm4, 1.0, %v8157_v17  ;;  %6086 = vmatmul.mubr.msk.f32.gmra.mrb[28].mxu0 %vm1743_vm7, %v11269_v13  ;;  %v7623_v14 = vld [vmem:[%s8644_s3 + $0x40] sm:$0xff]  ;;  %v5315_v49 = vsel %vm2871_vm15, 1.0, %v8157_v17  ;;  %vm2874_vm13 = vcmp.lt.s32.totalorder %v7626_v47, 64 }
 0x390   : > { %v1553_v41 = vpop.permute.xlu1 %1552  ;;  %6088 = vmatprep.mubr.msk.f32.mxu0 %vm1744_vm4, %v11269_v13  ;;  %v1556_v16 = vpop.permute.xlu0 %1555  ;;  %vm2851_vm6 = vcmp.lt.s32.totalorder %v7623_v14, 64  ;;  %vm2853_vm4 = vcmp.lt.s32.totalorder %v7625_v33, 64  ;;  %v2312_v33 = vld [vmem:[%s8649_s21 + $0x28] sm:$0xff] }
 0x391   : > { %v1681_v51 = vsel %vm1265_vm1, %v8940_v6, %v1553_v41  ;;  %v9556_v18 = vsel %vm1265_vm1, %v8949_v24, %v1556_v16  ;;  %v5314_v6 = vsel %vm2870_vm9, 1.0, %v8157_v17  ;;  %v5313_v24 = vsel %vm2869_vm10, 1.0, %v8157_v17 }
 0x392   : > { %vm1745_vm11 = vcmp.eq.s32.totalorder %v8957_v30, %v1681_v51  ;;  %7253 = vperm.xlu1 %7235, %v11285_v45   ;;  %7268 = vperm.xlu0 %7241, %v7267_v62   ;;  %vm1746_vm12 = vcmp.eq.s32.totalorder %v8957_v30, %v9556_v18  ;;  %v2308_v62 = vld [vmem:[%s8649_s21 + $0x8] sm:$0xff]  ;;  %v7272_v41 = vpack.i.bf16 %v9499_v0, %v5293_v52  ;;  %v5296_v16 = vsel %vm2852_vm5, 1.0, %v8157_v17  ;;  %v11289_v51 = vld [vmem:[#allocation48_spill] sm:$0xff] }
 0x393   : > { %v9579_v10 = vsel %vm1745_vm11, 1.0, %v8157_v17  ;;  %6089 = vmatmul.mubr.msk.f32.gmra.mrb[30].mxu0 %vm1745_vm11, %v11269_v13  ;;  %6091 = vmatprep.mubr.msk.f32.mxu1 %vm1746_vm12, %v11269_v13  ;;  %v7287_v0 = vpack.i.bf16 %v5314_v6, %v5313_v24  ;;  %v5316_v52 = vsel %vm2872_vm0, 1.0, %v8157_v17  ;;  %v2310_v6 = vld [vmem:[%s8649_s21 + $0x18] sm:$0xff] }
 0x394   : > { %v1559_v1 = vpop.permute.xlu1 %1558  ;;  %v1562_v56 = vpop.permute.xlu0 %1561  ;;  %6171 = vmatprep.mubr.f32.mxu0 %v2307_v46  ;;  %v5295_v46 = vsel %vm2851_vm6, 1.0, %v8157_v17  ;;  %v7297_v59 = vpack.i.bf16 %v5316_v52, %v5315_v49  ;;  %v11294_v52 = vld [vmem:[#allocation49_spill] sm:$0xff] }
 0x395   : > { %v9597_v45 = vsel %vm1265_vm1, %v11289_v51, %v1559_v1  ;;  %v9602_v7 = vsel %vm1265_vm1, %v11290_v4, %v1562_v56  ;;  %v7624_v4 = vld [vmem:[%s8644_s3 + $0x58] sm:$0xff]  ;;  %v7282_v24 = vpack.i.bf16 %v5296_v16, %v5295_v46  ;;  %v11292_v1 = vld [vmem:[#allocation53_spill] sm:$0xff]  ;;  %v5318_v46 = vsel %vm2874_vm13, 1.0, %v8157_v17 }
 0x396   : > { %vm1747_vm8 = vcmp.eq.s32.totalorder %v8957_v30, %v9597_v45  ;;  %vm1748_vm3 = vcmp.eq.s32.totalorder %v8957_v30, %v9602_v7  ;;  %7263 = vperm.xlu1 %7235, %v7262_v15   ;;  %7278 = vperm.xlu0 %7241, %v7277_v55   ;;  %vm2854_vm7 = vcmp.lt.s32.totalorder %v7624_v4, 64  ;;  %v7627_v15 = vld [vmem:[%s8644_s3 + $0xf0] sm:$0xff]  ;;  %v7628_v16 = vld [vmem:[%s8644_s3 + $0x68] sm:$0xff]  ;;  %vm2892_vm2 = vcmp.lt.s32.totalorder %v11294_v52, 64 }
 0x397   : > { %6092 = vmatmul.mubr.msk.f32.vlgmr.msra.gmra.mrb[0].mxu1 %vm1747_vm8, %v11269_v13  ;;  %6172 = vmatmul.mubr.f32.vlgmr.msra.gmra.mrb[0].mxu0 %v2308_v62  ;;  %vm2873_vm14 = vcmp.lt.s32.totalorder %v7627_v15, 64  ;;  %v2311_v62 = vld [vmem:[%s8649_s21 + $0x20] sm:$0xff]  ;;  %v5298_v51 = vsel %vm2854_vm7, 1.0, %v8157_v17  ;;  %vm2856_vm5 = vcmp.lt.s32.totalorder %v7628_v16, 64  ;;  %v2313_v15 = vld [vmem:[%s8649_s21 + $0x30] sm:$0xff] }
 0x398   : > { %v1565_v55 = vpop.permute.xlu1 %1564  ;;  %6094 = vmatprep.mubr.msk.f32.mxu1 %vm1748_vm3, %v11269_v13  ;;  %v1568_v14 = vpop.permute.xlu0 %1567  ;;  %6174 = vmatprep.mubr.f32.mxu0 %v2309_v53  ;;  %v5297_v53 = vsel %vm2853_vm4, 1.0, %v8157_v17  ;;  %v5317_v4 = vsel %vm2873_vm14, 1.0, %v8157_v17 }
 0x399   : > { %v9636_v9 = vsel %vm1265_vm1, %v11291_v8, %v1565_v55  ;;  %v9641_v56 = vsel %vm1265_vm1, %v11292_v1, %v1568_v14  ;;  %v7292_v55 = vpack.i.bf16 %v5298_v51, %v5297_v53  ;;  %v5300_v14 = vsel %vm2856_vm5, 1.0, %v8157_v17  ;;  %v7630_v51 = vld [vmem:[%s8644_s3 + $0x78] sm:$0xff]  ;;  %v7631_v53 = vld [vmem:[%s8644_s3 + $0x70] sm:$0xff] }
 0x39a   : > { %vm1749_vm9 = vcmp.eq.s32.totalorder %v8957_v30, %v9636_v9  ;;  %vm1750_vm10 = vcmp.eq.s32.totalorder %v8957_v30, %v9641_v56  ;;  %7273 = vperm.xlu1 %7235, %v7272_v41   ;;  %7288 = vperm.xlu0 %7241, %v7287_v0   ;;  %v7629_v41 = vld [vmem:[%s8644_s3 + $0x60] sm:$0xff]  ;;  %v11293_v0 = vld [vmem:[#allocation47_spill] sm:$0xff]  ;;  %vm2858_vm15 = vcmp.lt.s32.totalorder %v7630_v51, 64  ;;  %vm2857_vm7 = vcmp.lt.s32.totalorder %v7631_v53, 64 }
 0x39b   : > { %6095 = vmatmul.mubr.msk.f32.gmra.mrb[2].mxu1 %vm1749_vm9, %v11269_v13  ;;  %6175 = vmatmul.mubr.f32.gmra.mrb[2].mxu0 %v2310_v6  ;;  %vm2855_vm6 = vcmp.lt.s32.totalorder %v7629_v41, 64  ;;  %vm2891_vm11 = vcmp.lt.s32.totalorder %v11293_v0, 64  ;;  %v7307_v6 = vpack.i.bf16 %v5318_v46, %v5317_v4  ;;  %v5336_v41 = vsel %vm2892_vm2, 1.0, %v8157_v17  ;;  %v2315_v46 = vld [vmem:[%s8649_s21 + $0x40] sm:$0xff] }
 0x39c   : > { %6097 = vmatprep.mubr.msk.f32.mxu1 %vm1750_vm10, %v11269_v13  ;;  %v1571_v49 = vpop.permute.xlu0 %1570  ;;  %6177 = vmatprep.mubr.f32.mxu0 %v2311_v62  ;;  %v5299_v1 = vsel %vm2855_vm6, 1.0, %v8157_v17  ;;  %v5335_v62 = vsel %vm2891_vm11, 1.0, %v8157_v17 }
 0x39d   : > { %v1379_v47 = vpop.permute.xlu1 %1378  ;;  %v7302_v4 = vpack.i.bf16 %v5300_v14, %v5299_v1  ;;  %v7317_v52 = vpack.i.bf16 %v5336_v41, %v5335_v62  ;;  %v2316_v14 = vld [vmem:[%s8649_s21 + $0x48] sm:$0xff]  ;;  %v2317_v1 = vld [vmem:[%s8649_s21 + $0x50] sm:$0xff] }
 0x39e   : > { %v9674_v8 = vsel %vm1265_vm1, %v1379_v47, %v1571_v49  ;;  %7283 = vperm.xlu1 %7235, %v7282_v24   ;;  %7298 = vperm.xlu0 %7241, %v7297_v59   ;;  %v2314_v24 = vld [vmem:[%s8649_s21 + $0x38] sm:$0xff]  ;;  %v5302_v49 = vsel %vm2858_vm15, 1.0, %v8157_v17  ;;  %v7632_v47 = vld [vmem:[%s8644_s3 + $0x108] sm:$0xff] }
 0x39f   : > { %vm1751_vm0 = vcmp.eq.s32.totalorder %v8957_v30, %v9674_v8  ;;  %6178 = vmatmul.mubr.f32.gmra.mrb[4].mxu0 %v2312_v33  ;;  %v5301_v33 = vsel %vm2857_vm7, 1.0, %v8157_v17  ;;  %vm2876_vm13 = vcmp.lt.s32.totalorder %v7632_v47, 64 }
 0x3a0   : > { %6098 = vmatmul.mubr.msk.f32.gmra.mrb[4].mxu1 %vm1751_vm0, %v11269_v13  ;;  %v1574_v59 = vpop.permute.xlu0 %1573  ;;  %6180 = vmatprep.mubr.f32.mxu0 %v2313_v15  ;;  %v7633_v15 = vld [vmem:[%s8644_s3 + $0x100] sm:$0xff]  ;;  %v7312_v62 = vpack.i.bf16 %v5302_v49, %v5301_v33  ;;  %v5320_v51 = vsel %vm2876_vm13, 1.0, %v8157_v17 }
 0x3a1   : > { %v1382_v16 = vpop.permute.xlu1 %1381  ;;  %vm2875_vm14 = vcmp.lt.s32.totalorder %v7633_v15, 64 }
 0x3a2   : > { %v9691_v0 = vsel %vm1265_vm1, %v1382_v16, %v1574_v59  ;;  %7293 = vperm.xlu1 %7235, %v7292_v55   ;;  %7308 = vperm.xlu0 %7241, %v7307_v6   ;;  %v5319_v53 = vsel %vm2875_vm14, 1.0, %v8157_v17  ;;  %v11295_v59 = vld [vmem:[#allocation52_spill] sm:$0xff] }
 0x3a3   : > { %vm1752_vm4 = vcmp.eq.s32.totalorder %v8957_v30, %v9691_v0  ;;  %6181 = vmatmul.mubr.f32.gmra.mrb[6].mxu0 %v2314_v24  ;;  %vm2893_vm6 = vcmp.lt.s32.totalorder %v11295_v59, 64  ;;  %v11296_v24 = vld [vmem:[#allocation54_spill] sm:$0xff]  ;;  %v7322_v49 = vpack.i.bf16 %v5320_v51, %v5319_v53 }
 0x3a4   : > { %6100 = vmatprep.mubr.msk.f32.mxu1 %vm1752_vm4, %v11269_v13  ;;  %v1577_v55 = vpop.permute.xlu0 %1576  ;;  %6183 = vmatprep.mubr.f32.mxu0 %v2315_v46  ;;  %vm2894_vm11 = vcmp.lt.s32.totalorder %v11296_v24, 64  ;;  %v2318_v46 = vld [vmem:[%s8649_s21 + $0x58] sm:$0xff]  ;;  %v5337_v47 = vsel %vm2893_vm6, 1.0, %v8157_v17  ;;  %v2321_v51 = vld [vmem:[%s8649_s21 + $0x70] sm:$0xff] }
 0x3a5   : > { %v1385_v6 = vpop.permute.xlu1 %1384  ;;  %v5338_v15 = vsel %vm2894_vm11, 1.0, %v8157_v17 }
 0x3a6   : > { %v9707_v41 = vsel %vm1265_vm1, %v1385_v6, %v1577_v55  ;;  %7303 = vperm.xlu1 %7235, %v7302_v4   ;;  %7318 = vperm.xlu0 %7241, %v7317_v52   ;;  %v2319_v52 = vld [vmem:[%s8649_s21 + $0x60] sm:$0xff]  ;;  %v7634_v55 = vld [vmem:[%s8644_s3 + $0x118] sm:$0xff]  ;;  %v7439_v59 = vpack.i.bf16 %v5338_v15, %v5337_v47 }
 0x3a7   : > { %vm1753_vm5 = vcmp.eq.s32.totalorder %v8957_v30, %v9707_v41  ;;  %6184 = vmatmul.mubr.f32.gmra.mrb[8].mxu0 %v2316_v14  ;;  %vm2878_vm15 = vcmp.lt.s32.totalorder %v7634_v55, 64  ;;  %v7635_v14 = vld [vmem:[%s8644_s3 + $0x110] sm:$0xff]  ;;  %v2323_v15 = vld [vmem:[%s8649_s21 + $0x80] sm:$0xff] }
 0x3a8   : > { %6101 = vmatmul.mubr.msk.f32.gmra.mrb[6].mxu1 %vm1753_vm5, %v11269_v13  ;;  %v1580_v16 = vpop.permute.xlu0 %1579  ;;  %6186 = vmatprep.mubr.f32.mxu0 %v2317_v1  ;;  %vm2877_vm7 = vcmp.lt.s32.totalorder %v7635_v14, 64  ;;  %v2320_v1 = vld [vmem:[%s8649_s21 + $0x68] sm:$0xff]  ;;  %v5322_v24 = vsel %vm2878_vm15, 1.0, %v8157_v17 }
 0x3a9   : > { %v1388_v4 = vpop.permute.xlu1 %1387 }
 0x3aa   : > { %v9723_v33 = vsel %vm1265_vm1, %v1388_v4, %v1580_v16  ;;  %7313 = vperm.xlu1 %7235, %v7312_v62   ;;  %v5321_v16 = vsel %vm2877_vm7, 1.0, %v8157_v17  ;;  %v11298_v4 = vld [vmem:[#allocation56_spill] sm:$0xff] }
 0x3ab   : > { %vm1754_vm2 = vcmp.eq.s32.totalorder %v8957_v30, %v9723_v33  ;;  %6187 = vmatmul.mubr.f32.gmra.mrb[10].mxu0 %v2318_v46  ;;  %v11297_v46 = vld [vmem:[#allocation55_spill] sm:$0xff]  ;;  %vm2896_vm6 = vcmp.lt.s32.totalorder %v11298_v4, 64  ;;  %v7444_v55 = vpack.i.bf16 %v5322_v24, %v5321_v16 }
 0x3ac   : > { %6103 = vmatprep.mubr.msk.f32.mxu1 %vm1754_vm2, %v11269_v13  ;;  %v1583_v6 = vpop.permute.xlu0 %1582  ;;  %6189 = vmatprep.mubr.f32.mxu0 %v2319_v52  ;;  %vm2895_vm14 = vcmp.lt.s32.totalorder %v11297_v46, 64  ;;  %v2325_v46 = vld [vmem:[%s8649_s21 + $0x90] sm:$0xff] }
 0x3ad   : > { %v1391_v62 = vpop.permute.xlu1 %1390 }
 0x3ae   : > { %v9739_v53 = vsel %vm1265_vm1, %v1391_v62, %v1583_v6  ;;  %7323 = vperm.xlu1 %7235, %v7322_v49   ;;  %v2322_v49 = vld [vmem:[%s8649_s21 + $0x78] sm:$0xff]  ;;  %v5339_v6 = vsel %vm2895_vm14, 1.0, %v8157_v17  ;;  %v7636_v62 = vld [vmem:[%s8644_s3 + $0x120] sm:$0xff] }
 0x3af   : > { %vm1755_vm13 = vcmp.eq.s32.totalorder %v8957_v30, %v9739_v53  ;;  %6190 = vmatmul.mubr.f32.gmra.mrb[12].mxu0 %v2320_v1  ;;  %v5340_v1 = vsel %vm2896_vm6, 1.0, %v8157_v17  ;;  %vm2879_vm15 = vcmp.lt.s32.totalorder %v7636_v62, 64  ;;  %v11300_v62 = vld [vmem:[#allocation58_spill] sm:$0xff] }
 0x3b0   : > { %6104 = vmatmul.mubr.msk.f32.gmra.mrb[8].mxu1 %vm1755_vm13, %v11269_v13  ;;  %v1586_v52 = vpop.permute.xlu0 %1585  ;;  %6192 = vmatprep.mubr.f32.mxu0 %v2321_v51  ;;  %v7637_v51 = vld [vmem:[%s8644_s3 + $0x128] sm:$0xff] }
 0x3b1   : > { %v1394_v47 = vpop.permute.xlu1 %1393  ;;  %vm2880_vm7 = vcmp.lt.s32.totalorder %v7637_v51, 64  ;;  %v2327_v51 = vld [vmem:[%s8649_s21 + $0xa0] sm:$0xff] }
 0x3b2   : > { %v9755_v14 = vsel %vm1265_vm1, %v1394_v47, %v1586_v52  ;;  %7440 = vperm.xlu1 %7235, %v7439_v59   ;;  %v2324_v59 = vld [vmem:[%s8649_s21 + $0x88] sm:$0xff]  ;;  %v7449_v52 = vpack.i.bf16 %v5340_v1, %v5339_v6  ;;  %v5324_v47 = vsel %vm2880_vm7, 1.0, %v8157_v17  ;;  %v2326_v6 = vld [vmem:[%s8649_s21 + $0x98] sm:$0xff] }
 0x3b3   : > { %vm11183_vm11 = vcmp.eq.s32.totalorder %v8957_v30, %v9755_v14  ;;  %6193 = vmatmul.mubr.f32.gmra.mrb[14].mxu0 %v2322_v49  ;;  %v5323_v49 = vsel %vm2879_vm15, 1.0, %v8157_v17 }
 0x3b4   : > { %6106 = vmatprep.mubr.msk.f32.mxu1 %vm11183_vm11, %v11269_v13  ;;  %v1589_v24 = vpop.permute.xlu0 %1588  ;;  %6195 = vmatprep.mubr.f32.mxu0 %v2323_v15  ;;  %v11299_v15 = vld [vmem:[#allocation57_spill] sm:$0xff]  ;;  %vm2898_vm11 = vcmp.lt.s32.totalorder %v11300_v62, 64  ;;  %v7639_v62 = vld [vmem:[%s8644_s3 + $0x138] sm:$0xff] }
 0x3b5   : > { %v1397_v16 = vpop.permute.xlu1 %1396  ;;  %vm2897_vm6 = vcmp.lt.s32.totalorder %v11299_v15, 64  ;;  %v5342_v15 = vsel %vm2898_vm11, 1.0, %v8157_v17 }
 0x3b6   : > { %v9771_v4 = vsel %vm1265_vm1, %v1397_v16, %v1589_v24  ;;  %7445 = vperm.xlu1 %7235, %v7444_v55   ;;  %v7454_v24 = vpack.i.bf16 %v5324_v47, %v5323_v49  ;;  %v5341_v16 = vsel %vm2897_vm6, 1.0, %v8157_v17 }
 0x3b7   : > { %vm11184_vm14 = vcmp.eq.s32.totalorder %v8957_v30, %v9771_v4  ;;  %6196 = vmatmul.mubr.f32.gmra.mrb[16].mxu0 %v2324_v59 }
 0x3b8   : > { %6107 = vmatmul.mubr.msk.f32.gmra.mrb[10].mxu1 %vm11184_vm14, %v11269_v13  ;;  %v1592_v55 = vpop.permute.xlu0 %1591  ;;  %6198 = vmatprep.mubr.f32.mxu0 %v2325_v46  ;;  %v7638_v46 = vld [vmem:[%s8644_s3 + $0x130] sm:$0xff]  ;;  %vm2882_vm14 = vcmp.lt.s32.totalorder %v7639_v62, 64 }
 0x3b9   : > { %v1400_v1 = vpop.permute.xlu1 %1399  ;;  %vm2881_vm7 = vcmp.lt.s32.totalorder %v7638_v46, 64  ;;  %v5326_v62 = vsel %vm2882_vm14, 1.0, %v8157_v17 }
 0x3ba   : > { %v9787_v59 = vsel %vm1265_vm1, %v1400_v1, %v1592_v55  ;;  %7450 = vperm.xlu1 %7235, %v7449_v52   ;;  %v2328_v52 = vld [vmem:[%s8649_s21 + $0xa8] sm:$0xff]  ;;  %v2329_v55 = vld [vmem:[%s8649_s21 + $0xb0] sm:$0xff]  ;;  %v5325_v46 = vsel %vm2881_vm7, 1.0, %v8157_v17 }
 0x3bb   : > { %vm11185_vm15 = vcmp.eq.s32.totalorder %v8957_v30, %v9787_v59  ;;  %6199 = vmatmul.mubr.f32.gmra.mrb[18].mxu0 %v2326_v6  ;;  %v7459_v6 = vpack.i.bf16 %v5342_v15, %v5341_v16  ;;  %v2330_v16 = vld [vmem:[%s8649_s21 + $0xb8] sm:$0xff] }
 0x3bc   : > { %6109 = vmatprep.mubr.msk.f32.mxu1 %vm11185_vm15, %v11269_v13  ;;  %v1595_v49 = vpop.permute.xlu0 %1594  ;;  %6201 = vmatprep.mubr.f32.mxu0 %v2327_v51  ;;  %v11301_v51 = vld [vmem:[#allocation59_spill] sm:$0xff]  ;;  %vm2900_vm15 = vcmp.lt.s32.totalorder %v9140_v48, 64 }
 0x3bd   : > { %v1403_v47 = vpop.permute.xlu1 %1402  ;;  %vm2899_vm6 = vcmp.lt.s32.totalorder %v11301_v51, 64  ;;  %v5344_v51 = vsel %vm2900_vm15, 1.0, %v8157_v17 }
 0x3be   : > { %v9803_v1 = vsel %vm1265_vm1, %v1403_v47, %v1595_v49  ;;  %7455 = vperm.xlu1 %7235, %v7454_v24   ;;  %v7464_v49 = vpack.i.bf16 %v5326_v62, %v5325_v46  ;;  %v2331_v47 = vld [vmem:[%s8649_s21 + $0xc0] sm:$0xff]  ;;  %v5343_v48 = vsel %vm2899_vm6, 1.0, %v8157_v17  ;;  %v11302_v46 = vpack.i.bf16 %v9199_v20, %v9202_v39  ;;  %v2332_v62 = vld [vmem:[%s8649_s21 + $0xc8] sm:$0xff] }
 0x3bf   : > { %vm11186_vm11 = vcmp.eq.s32.totalorder %v8957_v30, %v9803_v1  ;;  %6202 = vmatmul.mubr.f32.gmra.mrb[20].mxu0 %v2328_v52  ;;  %vm2901_vm6 = vcmp.lt.s32.totalorder %v9167_v12, 64  ;;  %v11303_v20 = vld [vmem:[#allocation60_spill] sm:$0xff] }
 0x3c0   : > { %6110 = vmatmul.mubr.msk.f32.gmra.mrb[12].mxu1 %vm11186_vm11, %v11269_v13  ;;  %v1598_v24 = vpop.permute.xlu0 %1597  ;;  %6204 = vmatprep.mubr.f32.mxu0 %v2329_v55  ;;  %v7640_v55 = vld [vmem:[%s8644_s3 + $0x140] sm:$0xff]  ;;  %vm2884_vm11 = vcmp.lt.s32.totalorder %v7641_v54, 64  ;;  %v7469_v54 = vpack.i.bf16 %v5344_v51, %v5343_v48 }
 0x3c1   : > { %v1406_v15 = vpop.permute.xlu1 %1405  ;;  %vm2883_vm7 = vcmp.lt.s32.totalorder %v7640_v55, 64  ;;  %v5328_v57 = vsel %vm2884_vm11, 1.0, %v8157_v17 }
 0x3c2   : > { %v9818_v52 = vsel %vm1265_vm1, %v1406_v15, %v1598_v24  ;;  %7460 = vperm.xlu1 %7235, %v7459_v6   ;;  %v2333_v15 = vld [vmem:[%s8649_s21 + $0xd0] sm:$0xff]  ;;  %v5327_v55 = vsel %vm2883_vm7, 1.0, %v8157_v17 }
 0x3c3   : > { %vm11187_vm14 = vcmp.eq.s32.totalorder %v8957_v30, %v9818_v52  ;;  %6205 = vmatmul.mubr.f32.gmra.mrb[22].mxu0 %v2330_v16  ;;  %v7474_v51 = vpack.i.bf16 %v5328_v57, %v5327_v55  ;;  %v2336_v55 = vld [vmem:[%s8649_s21 + $0xe8] sm:$0xff] }
 0x3c4   : > { %6112 = vmatprep.mubr.msk.f32.mxu1 %vm11187_vm14, %v11269_v13  ;;  %v1601_v6 = vpop.permute.xlu0 %1600  ;;  %7328 = vxpose.xlu0.b32.start [1/16] %v11302_v46, 128  ;;  %vm2902_vm14 = vcmp.lt.s32.totalorder %v11303_v20, 64  ;;  %v5345_v46 = vsel %vm2901_vm6, 1.0, %v8157_v17  ;;  %vm2904_vm6 = vcmp.lt.s32.totalorder %v9279_v43, 64 }
 0x3c5   : > { %v1409_v24 = vpop.permute.xlu1 %1408  ;;  %6207 = vmatprep.mubr.f32.mxu0 %v2331_v47  ;;  %v2334_v47 = vld [vmem:[%s8649_s21 + $0xd8] sm:$0xff] }
 0x3c6   : > { %v9837_v16 = vsel %vm1265_vm1, %v1409_v24, %v1601_v6  ;;  %7465 = vperm.xlu1 %7235, %v7464_v49   ;;  %v11304_v49 = vpack.i.bf16 %v9242_v23, %v9245_v21  ;;  %v2335_v6 = vld [vmem:[%s8649_s21 + $0xe0] sm:$0xff]  ;;  %v7642_v24 = vld [vmem:[%s8644_s3 + $0x150] sm:$0xff]  ;;  %v7643_v23 = vld [vmem:[%s8644_s3 + $0x158] sm:$0xff]  ;;  %v9866_v21 = vsel %vm1746_vm12, 1.0, %v8157_v17 }
 0x3c7   : > { %vm11188_vm15 = vcmp.eq.s32.totalorder %v8957_v30, %v9837_v16  ;;  %6208 = vmatmul.mubr.f32.gmra.mrb[24].mxu0 %v2332_v62  ;;  %v5346_v62 = vsel %vm2902_vm14, 1.0, %v8157_v17  ;;  %vm2885_vm7 = vcmp.lt.s32.totalorder %v7642_v24, 64 }
 0x3c8   : > { %6113 = vmatmul.mubr.msk.f32.gmra.mrb[14].mxu1 %vm11188_vm15, %v11269_v13  ;;  %v1604_v39 = vpop.permute.xlu0 %1603  ;;  %7330 = vxpose.xlu0.b32.cont [2/16] %v11304_v49, 128  ;;  %vm2886_vm15 = vcmp.lt.s32.totalorder %v7643_v23, 64  ;;  %v7479_v49 = vpack.i.bf16 %v5346_v62, %v5345_v46  ;;  %v11307_v46 = vpack.i.bf16 %v9285_v22, %v9294_v27  ;;  %v2338_v62 = vld [vmem:[%s8649_s21 + $0xf8] sm:$0xff]  ;;  %v7644_v22 = vld [vmem:[%s8644_s3 + $0x160] sm:$0xff]  ;;  %v7645_v27 = vld [vmem:[%s8644_s3 + $0x168] sm:$0xff] }
 0x3c9   : > { %v1412_v48 = vpop.permute.xlu1 %1411  ;;  %6210 = vmatprep.mubr.f32.mxu0 %v2333_v15  ;;  %v11305_v15 = vpack.i.bf16 %v9236_v5, %v9248_v42  ;;  %v11306_v5 = vld [vmem:[#allocation61_spill] sm:$0xff]  ;;  %v9891_v42 = vsel %vm1747_vm8, 1.0, %v8157_v17 }
 0x3ca   : > { %v1698_v12 = vsel %vm1265_vm1, %v1412_v48, %v1604_v39  ;;  %7470 = vperm.xlu1 %7235, %v7469_v54   ;;  %v5329_v48 = vsel %vm2885_vm7, 1.0, %v8157_v17  ;;  %vm2903_vm14 = vcmp.lt.s32.totalorder %v11306_v5, 64  ;;  %vm2905_vm7 = vcmp.lt.s32.totalorder %v9331_v25, 64  ;;  %v2342_v25 = vld [vmem:[%s8649_s21 + $0x118] sm:$0xff] }
 0x3cb   : > { %vm1762_vm11 = vcmp.eq.s32.totalorder %v8957_v30, %v1698_v12  ;;  %6211 = vmatmul.mubr.f32.gmra.mrb[26].mxu0 %v2334_v47  ;;  %v2337_v47 = vld [vmem:[%s8649_s21 + $0xf0] sm:$0xff]  ;;  %v5330_v12 = vsel %vm2886_vm15, 1.0, %v8157_v17  ;;  %vm2887_vm15 = vcmp.lt.s32.totalorder %v7644_v22, 64 }
 0x3cc   : > { %v9869_v57 = vsel %vm1762_vm11, 1.0, %v8157_v17  ;;  %6115 = vmatprep.mubr.msk.f32.mxu1 %vm1762_vm11, %v11269_v13  ;;  %v1607_v54 = vpop.permute.xlu0 %1606  ;;  %7332 = vxpose.xlu0.b32.cont [3/16] %v11305_v15, 128  ;;  %v7484_v45 = vpack.i.bf16 %v5330_v12, %v5329_v48  ;;  %v5347_v15 = vsel %vm2903_vm14, 1.0, %v8157_v17  ;;  %vm2888_vm11 = vcmp.lt.s32.totalorder %v7645_v27, 64  ;;  %v2340_v12 = vld [vmem:[%s8649_s21 + $0x108] sm:$0xff]  ;;  %v2343_v27 = vld [vmem:[%s8649_s21 + $0x120] sm:$0xff] }
 0x3cd   : > { %v7509_v20 = vpack.i.bf16 %v9866_v21, %v9869_v57  ;;  %v1415_v39 = vpop.permute.xlu1 %1414  ;;  %6213 = vmatprep.mubr.f32.mxu0 %v2335_v6 }
 0x3ce   : > { %v1699_v18 = vsel %vm1265_vm1, %v1415_v39, %v1607_v54  ;;  %7475 = vperm.xlu1 %7235, %v7474_v51   ;;  %v2339_v54 = vld [vmem:[%s8649_s21 + $0x100] sm:$0xff]  ;;  %v9915_v39 = vsel %vm1748_vm3, 1.0, %v8157_v17 }
 0x3cf   : > { %vm1763_vm12 = vcmp.eq.s32.totalorder %v8957_v30, %v1699_v18  ;;  %6214 = vmatmul.mubr.f32.gmra.mrb[28].mxu0 %v2336_v55  ;;  %v5348_v55 = vsel %vm2904_vm6, 1.0, %v8157_v17 }
 0x3d0   : > { %v9894_v51 = vsel %vm1763_vm12, 1.0, %v8157_v17  ;;  %6116 = vmatmul.mubr.msk.f32.gmra.mrb[16].mxu1 %vm1763_vm12, %v11269_v13  ;;  %v1610_v6 = vpop.permute.xlu0 %1609  ;;  %7334 = vxpose.xlu0.b32.cont [4/16] %v11307_v46, 128  ;;  %v7489_v46 = vpack.i.bf16 %v5348_v55, %v5347_v15  ;;  %vm2906_vm12 = vcmp.lt.s32.totalorder %v9383_v58, 64  ;;  %v11310_v15 = vpack.i.bf16 %v9337_v29, %v9346_v40  ;;  %v7646_v29 = vld [vmem:[%s8644_s3 + $0x170] sm:$0xff]  ;;  %v7647_v40 = vld [vmem:[%s8644_s3 + $0x178] sm:$0xff] }
 0x3d1   : > { %v7511_v43 = vpack.i.bf16 %v9891_v42, %v9894_v51  ;;  %v1418_v24 = vpop.permute.xlu1 %1417  ;;  %6216 = vmatprep.mubr.f32.mxu0 %v2337_v47  ;;  %v11308_v47 = vld [vmem:[#allocation62_spill] sm:$0xff]  ;;  %vm2889_vm14 = vcmp.lt.s32.totalorder %v7646_v29, 64  ;;  %vm2890_vm6 = vcmp.lt.s32.totalorder %v7647_v40, 64 }
 0x3d2   : > { %v1700_v23 = vsel %vm1265_vm1, %v1418_v24, %v1610_v6  ;;  %7480 = vperm.xlu1 %7235, %v7479_v49   ;;  %v11309_v48 = vpack.i.bf16 %v9291_v26, %v11308_v47  ;;  %v5331_v24 = vsel %vm2887_vm15, 1.0, %v8157_v17  ;;  %v9940_v26 = vsel %vm1749_vm9, 1.0, %v8157_v17 }
 0x3d3   : > { %vm1764_vm8 = vcmp.eq.s32.totalorder %v8957_v30, %v1700_v23  ;;  %6217 = vmatmul.mubr.f32.gmra.mrb[30].mxu0 %v2338_v62  ;;  %v2341_v62 = vld [vmem:[%s8649_s21 + $0x110] sm:$0xff]  ;;  %v5332_v23 = vsel %vm2888_vm11, 1.0, %v8157_v17  ;;  %v5350_v47 = vsel %vm2906_vm12, 1.0, %v8157_v17  ;;  %vm11321_vm11 = vcmp.eq.s32.totalorder %v8957_v30, %v9771_v4 }
 0x3d4   : > { %v9918_v18 = vsel %vm1764_vm8, 1.0, %v8157_v17  ;;  %6118 = vmatprep.mubr.msk.f32.mxu1 %vm1764_vm8, %v11269_v13  ;;  %v1613_v49 = vpop.permute.xlu0 %1612  ;;  %7336 = vxpose.xlu0.b32.cont [5/16] %v11309_v48, 128  ;;  %v7494_v9 = vpack.i.bf16 %v5332_v23, %v5331_v24  ;;  %v9964_v48 = vsel %vm1750_vm10, 1.0, %v8157_v17  ;;  %v2344_v24 = vld [vmem:[%s8649_s21 + $0x128] sm:$0xff]  ;;  %vm11319_vm8 = vcmp.eq.s32.totalorder %v8957_v30, %v9755_v14 }
 0x3d5   : > { %v7513_v5 = vpack.i.bf16 %v9915_v39, %v9918_v18  ;;  %v1421_v6 = vpop.permute.xlu1 %1420  ;;  %6219 = vmatprep.mubr.f32.mxu0 %v2339_v54 }
 0x3d6   : > { %v1701_v7 = vsel %vm1265_vm1, %v1421_v6, %v1613_v49  ;;  %7485 = vperm.xlu1 %7235, %v7484_v45   ;;  %v5349_v49 = vsel %vm2905_vm7, 1.0, %v8157_v17  ;;  %vm11323_vm7 = vcmp.eq.s32.totalorder %v8957_v30, %v9787_v59 }
 0x3d7   : > { %vm1765_vm3 = vcmp.eq.s32.totalorder %v8957_v30, %v1701_v7  ;;  %6220 = vmatmul.mubr.f32.gmra.mrb[32].mxu0 %v2340_v12  ;;  %v11311_v7 = vld [vmem:[#allocation63_spill] sm:$0xff] }
 0x3d8   : > { %v9943_v45 = vsel %vm1765_vm3, 1.0, %v8157_v17  ;;  %6119 = vmatmul.mubr.msk.f32.gmra.mrb[18].mxu1 %vm1765_vm3, %v11269_v13  ;;  %v1616_v54 = vpop.permute.xlu0 %1615  ;;  %7338 = vxpose.xlu0.b32.cont [6/16] %v11310_v15, 128  ;;  %v7499_v15 = vpack.i.bf16 %v5350_v47, %v5349_v49  ;;  %v11314_v49 = vpack.i.bf16 %v9389_v28, %v9398_v50  ;;  %v2346_v47 = vld [vmem:[%s8649_s21 + $0x138] sm:$0xff]  ;;  %v10007_v28 = vsel %vm1752_vm4, 1.0, %v8157_v17 }
 0x3d9   : > { %v7515_v58 = vpack.i.bf16 %v9940_v26, %v9943_v45  ;;  %v1424_v55 = vpop.permute.xlu1 %1423  ;;  %6222 = vmatprep.mubr.f32.mxu0 %v2341_v62 }
 0x3da   : > { %v1702_v22 = vsel %vm1265_vm1, %v1424_v55, %v1616_v54  ;;  %7490 = vperm.xlu1 %7235, %v7489_v46   ;;  %v11312_v46 = vld [vmem:[#allocation64_spill] sm:$0xff]  ;;  %v5333_v55 = vsel %vm2889_vm14, 1.0, %v8157_v17 }
 0x3db   : > { %vm1766_vm9 = vcmp.eq.s32.totalorder %v8957_v30, %v1702_v22  ;;  %6223 = vmatmul.mubr.f32.gmra.mrb[34].mxu0 %v2342_v25  ;;  %v11313_v62 = vpack.i.bf16 %v11311_v7, %v11312_v46  ;;  %v2345_v25 = vld [vmem:[%s8649_s21 + $0x130] sm:$0xff]  ;;  %v5334_v22 = vsel %vm2890_vm6, 1.0, %v8157_v17  ;;  %v2347_v46 = vld [vmem:[%s8649_s21 + $0x140] sm:$0xff]  ;;  %vm11327_vm6 = vcmp.eq.s32.totalorder %v8957_v30, %v9818_v52 }
 0x3dc   : > { %v9967_v12 = vsel %vm1766_vm9, 1.0, %v8157_v17  ;;  %6121 = vmatprep.mubr.msk.f32.mxu1 %vm1766_vm9, %v11269_v13  ;;  %v1619_v6 = vpop.permute.xlu0 %1618  ;;  %6225 = vmatprep.mubr.f32.mxu0 %v2343_v27  ;;  %v9987_v27 = vsel %vm1751_vm0, 1.0, %v8157_v17  ;;  %v7504_v8 = vpack.i.bf16 %v5334_v22, %v5333_v55  ;;  %v11316_v22 = vpack.i.bf16 %v9434_v60, %v9443_v31 }
 0x3dd   : > { %7340 = vxpose.xlu0.b32.cont [7/16] %v11313_v62, 128  ;;  %v7517_v23 = vpack.i.bf16 %v9964_v48, %v9967_v12  ;;  %v1427_v54 = vpop.permute.xlu1 %1426  ;;  %v10047_v60 = vsel %vm1754_vm2, 1.0, %v8157_v17  ;;  %vm11325_vm9 = vcmp.eq.s32.totalorder %v8957_v30, %v9803_v1  ;;  %v2363_v1 = vld [vmem:[%s8649_s21 + $0x1c0] sm:$0xff] }
 0x3de   : > { %v1703_v56 = vsel %vm1265_vm1, %v1427_v54, %v1619_v6  ;;  %7495 = vperm.xlu1 %7235, %v7494_v9   ;;  %v2348_v54 = vld [vmem:[%s8649_s21 + $0x148] sm:$0xff] }
 0x3df   : > { %vm1767_vm10 = vcmp.eq.s32.totalorder %v8957_v30, %v1703_v56  ;;  %6226 = vmatmul.mubr.f32.gmra.mrb[36].mxu0 %v2344_v24  ;;  %v11315_v24 = vpack.i.bf16 %v9395_v32, %v9401_v36  ;;  %v10027_v32 = vsel %vm1753_vm5, 1.0, %v8157_v17 }
 0x3e0   : > { %v9990_v40 = vsel %vm1767_vm10, 1.0, %v8157_v17  ;;  %6122 = vmatmul.mubr.msk.f32.gmra.mrb[20].mxu1 %vm1767_vm10, %v11269_v13  ;;  %v1622_v9 = vpop.permute.xlu0 %1621  ;;  %6228 = vmatprep.mubr.f32.mxu0 %v2345_v25  ;;  %v2349_v25 = vld [vmem:[%s8649_s21 + $0x150] sm:$0xff] }
 0x3e1   : > { %7342 = vxpose.xlu0.b32.cont [8/16] %v11314_v49, 128  ;;  %v7519_v29 = vpack.i.bf16 %v9987_v27, %v9990_v40  ;;  %v1430_v6 = vpop.permute.xlu1 %1429 }
 0x3e2   : > { %v1704_v7 = vsel %vm1265_vm1, %v1430_v6, %v1622_v9  ;;  %7500 = vperm.xlu1 %7235, %v7499_v15   ;;  %v2350_v9 = vld [vmem:[%s8649_s21 + $0x158] sm:$0xff]  ;;  %v2351_v6 = vld [vmem:[%s8649_s21 + $0x160] sm:$0xff] }
 0x3e3   : > { %vm1768_vm0 = vcmp.eq.s32.totalorder %v8957_v30, %v1704_v7  ;;  %6229 = vmatmul.mubr.f32.gmra.mrb[38].mxu0 %v2346_v47  ;;  %v11317_v7 = vpack.i.bf16 %v9440_v61, %v9446_v35  ;;  %v10067_v61 = vsel %vm1755_vm13, 1.0, %v8157_v17 }
 0x3e4   : > { %v10010_v50 = vsel %vm1768_vm0, 1.0, %v8157_v17  ;;  %6124 = vmatprep.mubr.msk.f32.mxu1 %vm1768_vm0, %v11269_v13  ;;  %v1625_v62 = vpop.permute.xlu0 %1624  ;;  %6231 = vmatprep.mubr.f32.mxu0 %v2347_v46  ;;  %v2352_v46 = vld [vmem:[%s8649_s21 + $0x168] sm:$0xff]  ;;  %vm11328_vm0 = vcmp.eq.s32.totalorder %v8957_v30, %v9837_v16 }
 0x3e5   : > { %7344 = vxpose.xlu0.b32.cont [9/16] %v11315_v24, 128  ;;  %v7521_v56 = vpack.i.bf16 %v10007_v28, %v10010_v50  ;;  %v1433_v15 = vpop.permute.xlu1 %1432 }
 0x3e6   : > { %v1705_v0 = vsel %vm1265_vm1, %v1433_v15, %v1625_v62  ;;  %7505 = vperm.xlu1 %7235, %v7504_v8  }
 0x3e7   : > { %vm1769_vm4 = vcmp.eq.s32.totalorder %v8957_v30, %v1705_v0  ;;  %6232 = vmatmul.mubr.f32.gmra.mrb[40].mxu0 %v2348_v54  ;;  %v2353_v54 = vld [vmem:[%s8649_s21 + $0x170] sm:$0xff]  ;;  %v11318_v0 = vpack.i.bf16 %v9479_v34, %v9488_v38  ;;  %v10087_v34 = vsel %vm11319_vm8, 1.0, %v8157_v17 }
 0x3e8   : > { %v10030_v36 = vsel %vm1769_vm4, 1.0, %v8157_v17  ;;  %6125 = vmatmul.mubr.msk.f32.gmra.mrb[22].mxu1 %vm1769_vm4, %v11269_v13  ;;  %v1628_v55 = vpop.permute.xlu0 %1627  ;;  %6234 = vmatprep.mubr.f32.mxu0 %v2349_v25  ;;  %v2354_v25 = vld [vmem:[%s8649_s21 + $0x178] sm:$0xff] }
 0x3e9   : > { %7346 = vxpose.xlu0.b32.cont [10/16] %v11316_v22, 128  ;;  %v7523_v49 = vpack.i.bf16 %v10027_v32, %v10030_v36  ;;  %v1436_v47 = vpop.permute.xlu1 %1435 }
 0x3ea   : > { %v1706_v41 = vsel %vm1265_vm1, %v1436_v47, %v1628_v55 }
 0x3eb   : > { %vm1770_vm5 = vcmp.eq.s32.totalorder %v8957_v30, %v1706_v41  ;;  %6235 = vmatmul.mubr.f32.gmra.mrb[42].mxu0 %v2350_v9  ;;  %v2355_v9 = vld [vmem:[%s8649_s21 + $0x180] sm:$0xff]  ;;  %v11320_v41 = vpack.i.bf16 %v9485_v63, %v9491_v44  ;;  %v10107_v63 = vsel %vm11321_vm11, 1.0, %v8157_v17 }
 0x3ec   : > { %v10050_v31 = vsel %vm1770_vm5, 1.0, %v8157_v17  ;;  %6127 = vmatprep.mubr.msk.f32.mxu1 %vm1770_vm5, %v11269_v13  ;;  %v1631_v8 = vpop.permute.xlu0 %1630  ;;  %6237 = vmatprep.mubr.f32.mxu0 %v2351_v6  ;;  %v2356_v6 = vld [vmem:[%s8649_s21 + $0x188] sm:$0xff] }
 0x3ed   : > { %7348 = vxpose.xlu0.b32.cont [11/16] %v11317_v7, 128  ;;  %v7525_v62 = vpack.i.bf16 %v10047_v60, %v10050_v31  ;;  %v1439_v24 = vpop.permute.xlu1 %1438 }
 0x3ee   : > { %v1707_v33 = vsel %vm1265_vm1, %v1439_v24, %v1631_v8 }
 0x3ef   : > { %vm1771_vm2 = vcmp.eq.s32.totalorder %v8957_v30, %v1707_v33  ;;  %6238 = vmatmul.mubr.f32.gmra.mrb[44].mxu0 %v2352_v46  ;;  %v2357_v46 = vld [vmem:[%s8649_s21 + $0x190] sm:$0xff]  ;;  %v11322_v33 = vpack.i.bf16 %v9525_v2, %v9534_v3  ;;  %v10127_v2 = vsel %vm11323_vm7, 1.0, %v8157_v17 }
 0x3f0   : > { %v10070_v35 = vsel %vm1771_vm2, 1.0, %v8157_v17  ;;  %6128 = vmatmul.mubr.msk.f32.gmra.mrb[24].mxu1 %vm1771_vm2, %v11269_v13  ;;  %v1634_v15 = vpop.permute.xlu0 %1633  ;;  %6240 = vmatprep.mubr.f32.mxu0 %v2353_v54  ;;  %v2358_v54 = vld [vmem:[%s8649_s21 + $0x198] sm:$0xff] }
 0x3f1   : > { %7350 = vxpose.xlu0.b32.cont [12/16] %v11318_v0, 128  ;;  %v7527_v55 = vpack.i.bf16 %v10067_v61, %v10070_v35  ;;  %v1442_v22 = vpop.permute.xlu1 %1441 }
 0x3f2   : > { %v1708_v53 = vsel %vm1265_vm1, %v1442_v22, %v1634_v15 }
 0x3f3   : > { %vm1772_vm13 = vcmp.eq.s32.totalorder %v8957_v30, %v1708_v53  ;;  %6241 = vmatmul.mubr.f32.gmra.mrb[46].mxu0 %v2354_v25  ;;  %v2359_v25 = vld [vmem:[%s8649_s21 + $0x1a0] sm:$0xff]  ;;  %v11324_v53 = vpack.i.bf16 %v9531_v37, %v9537_v11  ;;  %v10147_v37 = vsel %vm11325_vm9, 1.0, %v8157_v17 }
 0x3f4   : > { %v10090_v38 = vsel %vm1772_vm13, 1.0, %v8157_v17  ;;  %6130 = vmatprep.mubr.msk.f32.mxu1 %vm1772_vm13, %v11269_v13  ;;  %v1637_v47 = vpop.permute.xlu0 %1636  ;;  %6243 = vmatprep.mubr.f32.mxu0 %v2355_v9  ;;  %v2360_v9 = vld [vmem:[%s8649_s21 + $0x1a8] sm:$0xff] }
 0x3f5   : > { %7352 = vxpose.xlu0.b32.cont [13/16] %v11320_v41, 128  ;;  %v7529_v8 = vpack.i.bf16 %v10087_v34, %v10090_v38  ;;  %v1445_v7 = vpop.permute.xlu1 %1444  ;;  %v10301_v34 = vld [vmem:[#allocation3] ss:$0 sm:$0xff] }
 0x3f6   : > { %v1709_v14 = vsel %vm1265_vm1, %v1445_v7, %v1637_v47 }
 0x3f7   : > { %vm1773_vm15 = vcmp.eq.s32.totalorder %v8957_v30, %v1709_v14  ;;  %6244 = vmatmul.mubr.f32.gmra.mrb[48].mxu0 %v2356_v6  ;;  %v2361_v6 = vld [vmem:[%s8649_s21 + $0x1b0] sm:$0xff]  ;;  %v11326_v14 = vpack.i.bf16 %v9576_v19, %v9579_v10  ;;  %v10167_v19 = vsel %vm11327_vm6, 1.0, %v8157_v17 }
 0x3f8   : > { %v10110_v44 = vsel %vm1773_vm15, 1.0, %v8157_v17  ;;  %6131 = vmatmul.mubr.msk.f32.gmra.mrb[26].mxu1 %vm1773_vm15, %v11269_v13  ;;  %v1640_v24 = vpop.permute.xlu0 %1639  ;;  %6246 = vmatprep.mubr.f32.mxu0 %v2357_v46  ;;  %v2362_v46 = vld [vmem:[%s8649_s21 + $0x1b8] sm:$0xff] }
 0x3f9   : > { %7354 = vxpose.xlu0.b32.cont [14/16] %v11322_v33, 128  ;;  %v7531_v15 = vpack.i.bf16 %v10107_v63, %v10110_v44  ;;  %v1448_v0 = vpop.permute.xlu1 %1447 }
 0x3fa   : > { %v1710_v4 = vsel %vm1265_vm1, %v1448_v0, %v1640_v24 }
 0x3fb   : > { %vm1774_vm3 = vcmp.eq.s32.totalorder %v8957_v30, %v1710_v4  ;;  %6247 = vmatmul.mubr.f32.gmra.mrb[50].mxu0 %v2358_v54  ;;  %v2364_v4 = vld [vmem:[%s8649_s21 + $0x1c8] sm:$0xff] }
 0x3fc   : > { %v10130_v3 = vsel %vm1774_vm3, 1.0, %v8157_v17  ;;  %6133 = vmatprep.mubr.msk.f32.mxu1 %vm1774_vm3, %v11269_v13  ;;  %v1643_v22 = vpop.permute.xlu0 %1642  ;;  %6249 = vmatprep.mubr.f32.mxu0 %v2359_v25 }
 0x3fd   : > { %7356 = vxpose.xlu0.b32.cont [15/16] %v11324_v53, 128  ;;  %v7533_v47 = vpack.i.bf16 %v10127_v2, %v10130_v3  ;;  %v1451_v41 = vpop.permute.xlu1 %1450  ;;  %v2365_v53 = vld [vmem:[%s8649_s21 + $0x1d0] sm:$0xff] }
 0x3fe   : > { %v1711_v59 = vsel %vm1265_vm1, %v1451_v41, %v1643_v22 }
 0x3ff   : > { %vm1775_vm12 = vcmp.eq.s32.totalorder %v8957_v30, %v1711_v59  ;;  %6250 = vmatmul.mubr.f32.gmra.mrb[52].mxu0 %v2360_v9  ;;  %v5205_v9 = vsel %vm11328_vm0, 1.0, %v8157_v17  ;;  %v2366_v59 = vld [vmem:[%s8649_s21 + $0x1d8] sm:$0xff] }
 0x400   : > { %v10150_v11 = vsel %vm1775_vm12, 1.0, %v8157_v17  ;;  %6134 = vmatmul.mubr.msk.f32.gmra.mrb[28].mxu1 %vm1775_vm12, %v11269_v13  ;;  %v1646_v7 = vpop.permute.xlu0 %1645  ;;  %6252 = vmatprep.mubr.f32.mxu0 %v2361_v6 }
 0x401   : > { %7358 = vxpose.xlu0.b32.end [16/16] %v11326_v14, 128  ;;  %v7535_v24 = vpack.i.bf16 %v10147_v37, %v10150_v11  ;;  %v1454_v33 = vpop.permute.xlu1 %1453  ;;  %v2367_v14 = vld [vmem:[%s8649_s21 + $0x1e0] sm:$0xff] }
 0x402   : > { %v1712_v54 = vsel %vm1265_vm1, %v1454_v33, %v1646_v7 }
 0x403   : > { %vm1776_vm14 = vcmp.eq.s32.totalorder %v8957_v30, %v1712_v54  ;;  %6253 = vmatmul.mubr.f32.gmra.mrb[54].mxu0 %v2362_v46  ;;  %v2368_v46 = vld [vmem:[%s8649_s21 + $0x1e8] sm:$0xff] }
 0x404   : > { %v5220_v10 = vsel %vm1776_vm14, 1.0, %v8157_v17  ;;  %6136 = vmatprep.mubr.msk.f32.mxu1 %vm1776_vm14, %v11269_v13  ;;  %v1649_v0 = vpop.permute.xlu0 %1648  ;;  %6255 = vmatprep.mubr.f32.mxu0 %v2363_v1  ;;  %v2369_v1 = vld [vmem:[%s8649_s21 + $0x1f0] sm:$0xff] }
 0x405   : > { %v7537_v25 = vpack.i.bf16 %v10167_v19, %v5220_v10  ;;  %v1457_v22 = vpop.permute.xlu1 %1456 }
 0x406   : > { %v1713_v52 = vsel %vm1265_vm1, %v1457_v22, %v1649_v0  ;;  %vm8159_vm1 = vmmov (!%p5351_p9), 0  }
 0x407   : > { %vm1777_vm10 = vcmp.eq.s32.totalorder %v8957_v30, %v1713_v52  ;;  %6256 = vmatmul.mubr.f32.gmra.mrb[56].mxu0 %v2364_v4  ;;  %v2370_v30 = vld [vmem:[%s8649_s21 + $0x1f8] sm:$0xff] }
 0x408   : > { %v5221_v41 = vsel %vm1777_vm10, 1.0, %v8157_v17  ;;  %6137 = vmatmul.mubr.msk.f32.gmra.mrb[30].mxu1 %vm1777_vm10, %v11269_v13  ;;  %6258 = vmatprep.mubr.f32.mxu0 %v2365_v53 }
 0x409   : > { %v7539_v6 = vpack.i.bf16 %v5205_v9, %v5221_v41  ;;  %v10184_v7 = vpop.permute.xlu1 %7237  ;;  %v10202_v16 = vpop.permute.xlu0 %7243 }
 0x40a   : > { %v7246_v3 = vunpack.i.h.bf16 %v10202_v16  ;;  %v7245_v11 = vunpack.i.l.bf16 %v10202_v16 }
 0x40b   : > { %6259 = vmatmul.mubr.f32.gmra.mrb[58].mxu0 %v2366_v59 }
 0x40c   : > { %6261 = vmatprep.mubr.f32.mxu0 %v2367_v14 }
 0x40d   : > { %v10188_v33 = vpop.permute.xlu1 %7248  ;;  %v10212_v21 = vpop.permute.xlu0 %7258 }
 0x40f   : > { %6262 = vmatmul.mubr.f32.gmra.mrb[60].mxu0 %v2368_v46  ;;  %7510 = vxpose.xlu1.b32.start [1/16] %v7509_v20, 128 }
 0x410   : > { %6264 = vmatprep.mubr.f32.mxu0 %v2369_v1 }
 0x411   : > { %v10195_v13 = vpop.permute.xlu1 %7253  ;;  %v10219_v20 = vpop.permute.xlu0 %7268 }
 0x412   : > { %v7255_v46 = vunpack.i.l.bf16 %v10195_v13 }
 0x413   : > { %6265 = vmatmul.mubr.f32.gmra.mrb[62].mxu0 %v2370_v30  ;;  %7512 = vxpose.xlu1.b32.cont [2/16] %v7511_v43, 128 }
 0x415   : > { %v10200_v17 = vpop.permute.xlu1 %7263  ;;  %v10229_v51 = vpop.permute.xlu0 %7278 }
 0x417   : > { %7514 = vxpose.xlu1.b32.cont [3/16] %v7513_v5, 128 }
 0x419   : > { %v10207_v54 = vpop.permute.xlu1 %7273  ;;  %v10236_v39 = vpop.permute.xlu0 %7288 }
 0x41a   : > { %v7276_v30 = vunpack.i.h.bf16 %v10207_v54 }
 0x41b   : > { %7516 = vxpose.xlu1.b32.cont [4/16] %v7515_v58, 128 }
 0x41d   : > { %v10214_v57 = vpop.permute.xlu1 %7283  ;;  %v10246_v5 = vpop.permute.xlu0 %7298 }
 0x41f   : > { %7518 = vxpose.xlu1.b32.cont [5/16] %v7517_v23, 128 }
 0x421   : > { %v10224_v42 = vpop.permute.xlu1 %7293  ;;  %v10253_v45 = vpop.permute.xlu0 %7308 }
 0x423   : > { %7520 = vxpose.xlu1.b32.cont [6/16] %v7519_v29, 128 }
 0x425   : > { %v10231_v43 = vpop.permute.xlu1 %7303  ;;  %v10263_v48 = vpop.permute.xlu0 %7318 }
 0x426   : > { %11330 = vst [vmem:[#allocation46_spill] sm:$0xff] %v10263_v48 }
 0x427   : > { %7522 = vxpose.xlu1.b32.cont [7/16] %v7521_v56, 128 }
 0x429   : > { %v10241_v18 = vpop.permute.xlu1 %7313 }
 0x42b   : > { %7524 = vxpose.xlu1.b32.cont [8/16] %v7523_v49, 128 }
 0x42d   : > { %v10248_v26 = vpop.permute.xlu1 %7323 }
 0x42f   : > { %7526 = vxpose.xlu1.b32.cont [9/16] %v7525_v62, 128 }
 0x431   : > { %v10258_v58 = vpop.permute.xlu1 %7440 }
 0x432   : > { %11329 = vst [vmem:[#allocation45_spill] sm:$0xff] %v10258_v58 }
 0x433   : > { %7528 = vxpose.xlu1.b32.cont [10/16] %v7527_v55, 128 }
 0x435   : > { %v10265_v12 = vpop.permute.xlu1 %7445 }
 0x437   : > { %7530 = vxpose.xlu1.b32.cont [11/16] %v7529_v8, 128 }
 0x439   : > { %v10273_v40 = vpop.permute.xlu1 %7450 }
 0x43a   : > { %11331 = vst [vmem:[#allocation48_spill] sm:$0xff] %v10273_v40 }
 0x43b   : > { %7532 = vxpose.xlu1.b32.cont [12/16] %v7531_v15, 128 }
 0x43d   : > { %v10279_v50 = vpop.permute.xlu1 %7455 }
 0x43f   : > { %7534 = vxpose.xlu1.b32.cont [13/16] %v7533_v47, 128 }
 0x441   : > { %v10283_v32 = vpop.permute.xlu1 %7460 }
 0x442   : > { %11332 = vst [vmem:[#allocation51_spill] sm:$0xff] %v10283_v32  ;;  %v7296_v32 = vunpack.i.h.bf16 %v10224_v42 }
 0x443   : > { %7536 = vxpose.xlu1.b32.cont [14/16] %v7535_v24, 128 }
 0x445   : > { %v10270_v23 = vpop.trf.xlu0  ;;  %v10289_v60 = vpop.permute.xlu1 %7465 }
 0x446   : > { %v7360_v27 = vunpack.i.l.bf16 %v10270_v23 }
 0x447   : > { %7538 = vxpose.xlu1.b32.cont [15/16] %v7537_v25, 128 }
 0x448   : > { %3755 = vmatprep.mubr.f32.mxu1 %v7360_v27 }
 0x449   : > { %v10275_v29 = vpop.trf.xlu0  ;;  %v10293_v62 = vpop.permute.xlu1 %7470 }
 0x44a   : > { %11334 = vst [vmem:[#allocation53_spill] sm:$0xff] %v10293_v62 }
 0x44b   : > { %7540 = vxpose.xlu1.b32.end [16/16] %v7539_v6, 128  ;;  %v7256_v6 = vunpack.i.h.bf16 %v10195_v13 }
 0x44d   : > { %v10277_v28 = vpop.trf.xlu0  ;;  %v10299_v55 = vpop.permute.xlu1 %7475 }
 0x451   : > { %v10281_v56 = vpop.trf.xlu0  ;;  %v10311_v47 = vpop.permute.xlu1 %7480 }
 0x452   : > { %11338 = vst [vmem:[#allocation54_spill] sm:$0xff] %v10311_v47 }
 0x455   : > { %v10285_v36 = vpop.trf.xlu0  ;;  %v10333_v1 = vpop.permute.xlu1 %7485 }
 0x456   : > { %11341 = vst [vmem:[#allocation57_spill] sm:$0xff] %v10333_v1 }
 0x459   : > { %v10287_v49 = vpop.trf.xlu0 }
 0x45d   : > { %v10291_v31 = vpop.trf.xlu0 }
 0x45e   : > { %11333 = vst [vmem:[#allocation50_spill] sm:$0xff] %v10291_v31  ;;  %v7250_v31 = vunpack.i.l.bf16 %v10188_v33 }
 0x461   : > { %v10295_v61 = vpop.trf.xlu0 }
 0x462   : > { %11335 = vst [vmem:[#allocation47_spill] sm:$0xff] %v10295_v61 }
 0x465   : > { %v10297_v35 = vpop.trf.xlu0 }
 0x466   : > { %11336 = vst [vmem:[#allocation49_spill] sm:$0xff] %v10297_v35  ;;  %v7240_v35 = vunpack.i.h.bf16 %v10184_v7 }
 0x469   : > { %v10303_v38 = vpop.trf.xlu0 }
 0x46a   : > { %11337 = vst [vmem:[#allocation52_spill] sm:$0xff] %v10303_v38  ;;  %v10305_v8 = vpop.f32.mrb[0].mxu1  ;;  %v6173_v63 = vpop.f32.mrb[0].mxu0  ;;  %v7315_v38 = vunpack.i.l.bf16 %v10241_v18 }
 0x46b   : > { %v2780_v44 = vadd.f32 %v6173_v63, %v10301_v34  ;;  %v10308_v15 = vpop.f32.mrb[1].mxu1  ;;  %v2453_v2 = vpop.f32.mrb[1].mxu0 }
 0x46c   : > { %v2779_v37 = vadd.f32 %v10301_v34, %v2453_v2 }
 0x46d   : > { %v10315_v24 = vpop.trf.xlu0  ;;  %v3036_v19 = vmax.f32 %v2780_v44, 0.0 }
 0x46e   : > { %11339 = vst [vmem:[#allocation55_spill] sm:$0xff] %v10315_v24  ;;  %v3035_v10 = vmax.f32 %v2779_v37, 0.0  ;;  %v10317_v0 = vpop.f32.mrb[2].mxu1  ;;  %v6176_v4 = vpop.f32.mrb[2].mxu0 }
 0x46f   : > { %v10319_v25 = vmul.f32 %v7246_v3, %v3036_v19  ;;  %v2782_v22 = vadd.f32 %v6176_v4, %v10301_v34  ;;  %v10322_v53 = vpop.f32.mrb[3].mxu1  ;;  %v2463_v52 = vpop.f32.mrb[3].mxu0 }
 0x470   : > { %v10324_v9 = vmul.f32 %v7245_v11, %v3035_v10  ;;  %v2781_v41 = vadd.f32 %v10301_v34, %v2463_v52  ;;  %v7266_v10 = vunpack.i.h.bf16 %v10200_v17 }
 0x471   : > { %v10327_v59 = vpop.trf.xlu0  ;;  %3484 = vst [vmem:[%s8651_s27 + $0x8] sm:$0xff] %v10319_v25  ;;  %v3038_v14 = vmax.f32 %v2782_v22, 0.0  ;;  %v7265_v22 = vunpack.i.l.bf16 %v10200_v17 }
 0x472   : > { %11340 = vst [vmem:[#allocation56_spill] sm:$0xff] %v10327_v59  ;;  %3483 = vst [vmem:[%s8651_s27] sm:$0xff] %v10324_v9  ;;  %v3037_v16 = vmax.f32 %v2781_v41, 0.0  ;;  %v6179_v27 = vpop.f32.mrb[4].mxu0 }
 0x473   : > { %v10339_v63 = vmul.f32 %v7256_v6, %v3038_v14  ;;  %v2784_v44 = vadd.f32 %v6179_v27, %v10301_v34  ;;  %v10342_v2 = vpop.f32.mrb[4].mxu1  ;;  %v2473_v3 = vpop.f32.mrb[5].mxu0 }
 0x474   : > { %v10344_v37 = vmul.f32 %v7255_v46, %v3037_v16  ;;  %v2783_v13 = vadd.f32 %v10301_v34, %v2473_v3  ;;  %v10347_v11 = vpop.f32.mrb[5].mxu1  ;;  %v10362_v27 = vpop.permute.xlu1 %7490 }
 0x475   : > { %v10349_v19 = vpop.trf.xlu0  ;;  %3486 = vst [vmem:[%s8651_s27 + $0x18] sm:$0xff] %v10339_v63  ;;  %v3040_v4 = vmax.f32 %v2784_v44, 0.0  ;;  %11343 = vst [vmem:[#allocation59_spill] sm:$0xff] %v10362_v27 }
 0x476   : > { %11342 = vst [vmem:[#allocation58_spill] sm:$0xff] %v10349_v19  ;;  %3485 = vst [vmem:[%s8651_s27 + $0x10] sm:$0xff] %v10344_v37  ;;  %v3039_v41 = vmax.f32 %v2783_v13, 0.0  ;;  %v6182_v6 = vpop.f32.mrb[6].mxu0 }
 0x477   : > { %v10359_v14 = vmul.f32 %v7266_v10, %v3040_v4  ;;  %v2786_v46 = vadd.f32 %v6182_v6, %v10301_v34  ;;  %v2483_v16 = vpop.f32.mrb[7].mxu0  ;;  %v7275_v10 = vunpack.i.l.bf16 %v10207_v54  ;;  %v7286_v4 = vunpack.i.h.bf16 %v10214_v57 }
 0x478   : > { %v10364_v3 = vmul.f32 %v7265_v22, %v3039_v41  ;;  %v2785_v44 = vadd.f32 %v10301_v34, %v2483_v16 }
 0x479   : > { %v10367_v17 = vpop.trf.xlu0  ;;  %3488 = vst [vmem:[%s8651_s27 + $0x28] sm:$0xff] %v10359_v14  ;;  %v3042_v13 = vmax.f32 %v2786_v46, 0.0 }
 0x47a   : > { %11344 = vst [vmem:[#allocation60_spill] sm:$0xff] %v10367_v17  ;;  %3487 = vst [vmem:[%s8651_s27 + $0x20] sm:$0xff] %v10364_v3  ;;  %v3041_v22 = vmax.f32 %v2785_v44, 0.0  ;;  %v6185_v41 = vpop.f32.mrb[8].mxu0  ;;  %v7285_v44 = vunpack.i.l.bf16 %v10214_v57 }
 0x47b   : > { %v10377_v6 = vmul.f32 %v7276_v30, %v3042_v13  ;;  %v2788_v16 = vadd.f32 %v6185_v41, %v10301_v34  ;;  %v10380_v52 = vpop.f32.mrb[6].mxu1  ;;  %v2493_v27 = vpop.f32.mrb[9].mxu0 }
 0x47c   : > { %v10382_v47 = vmul.f32 %v7275_v10, %v3041_v22  ;;  %v2787_v46 = vadd.f32 %v10301_v34, %v2493_v27  ;;  %v10385_v54 = vpop.f32.mrb[7].mxu1  ;;  %v10393_v13 = vpop.permute.xlu1 %7495 }
 0x47d   : > { %v10387_v17 = vpop.trf.xlu0  ;;  %3490 = vst [vmem:[%s8651_s27 + $0x38] sm:$0xff] %v10377_v6  ;;  %v3044_v30 = vmax.f32 %v2788_v16, 0.0  ;;  %11346 = vst [vmem:[#allocation62_spill] sm:$0xff] %v10393_v13 }
 0x47e   : > { %11345 = vst [vmem:[#allocation61_spill] sm:$0xff] %v10387_v17  ;;  %3489 = vst [vmem:[%s8651_s27 + $0x30] sm:$0xff] %v10382_v47  ;;  %v3043_v10 = vmax.f32 %v2787_v46, 0.0  ;;  %v6188_v22 = vpop.f32.mrb[10].mxu0  ;;  %v7295_v46 = vunpack.i.l.bf16 %v10224_v42 }
 0x47f   : > { %v10399_v41 = vmul.f32 %v7286_v4, %v3044_v30  ;;  %v2790_v17 = vadd.f32 %v6188_v22, %v10301_v34  ;;  %v2503_v62 = vpop.f32.mrb[11].mxu0  ;;  %v7306_v4 = vunpack.i.h.bf16 %v10231_v43 }
 0x480   : > { %v10402_v19 = vmul.f32 %v7285_v44, %v3043_v10  ;;  %v2789_v16 = vadd.f32 %v10301_v34, %v2503_v62 }
 0x481   : > { %v10405_v57 = vpop.trf.xlu0  ;;  %3492 = vst [vmem:[%s8651_s27 + $0x48] sm:$0xff] %v10399_v41  ;;  %v3046_v59 = vmax.f32 %v2790_v17, 0.0 }
 0x482   : > { %11347 = vst [vmem:[#allocation63_spill] sm:$0xff] %v10405_v57  ;;  %3491 = vst [vmem:[%s8651_s27 + $0x40] sm:$0xff] %v10402_v19  ;;  %v3045_v30 = vmax.f32 %v2789_v16, 0.0  ;;  %v6191_v44 = vpop.f32.mrb[12].mxu0  ;;  %v10420_v57 = vpop.permute.xlu1 %7500 }
 0x483   : > { %v10415_v10 = vmul.f32 %v7296_v32, %v3046_v59  ;;  %v2792_v62 = vadd.f32 %v6191_v44, %v10301_v34  ;;  %v10418_v22 = vpop.f32.mrb[8].mxu1  ;;  %v2513_v27 = vpop.f32.mrb[13].mxu0  ;;  %11348 = vst [vmem:[#allocation64_spill] sm:$0xff] %v10420_v57  ;;  %v7305_v59 = vunpack.i.l.bf16 %v10231_v43 }
 0x484   : > { %v10422_v17 = vmul.f32 %v7295_v46, %v3045_v30  ;;  %v2791_v42 = vadd.f32 %v10301_v34, %v2513_v27  ;;  %v10425_v40 = vpop.f32.mrb[9].mxu1 }
 0x485   : > { %3494 = vst [vmem:[%s8651_s27 + $0x58] sm:$0xff] %v10415_v10  ;;  %v3048_v32 = vmax.f32 %v2792_v62, 0.0  ;;  %v7316_v62 = vunpack.i.h.bf16 %v10241_v18 }
 0x486   : > { %3493 = vst [vmem:[%s8651_s27 + $0x50] sm:$0xff] %v10422_v17  ;;  %v3047_v46 = vmax.f32 %v2791_v42, 0.0  ;;  %v6194_v30 = vpop.f32.mrb[14].mxu0  ;;  %v10445_v16 = vpop.permute.xlu1 %7505 }
 0x487   : > { %v10435_v44 = vmul.f32 %v7306_v4, %v3048_v32  ;;  %v2794_v27 = vadd.f32 %v6194_v30, %v10301_v34  ;;  %v2523_v57 = vpop.f32.mrb[15].mxu0  ;;  %11349 = vst [vmem:[#allocation65_spill] sm:$0xff] %v10445_v16 }
 0x488   : > { %v10438_v24 = vmul.f32 %v7305_v59, %v3047_v46  ;;  %v2793_v58 = vadd.f32 %v10301_v34, %v2523_v57 }
 0x489   : > { %3496 = vst [vmem:[%s8651_s27 + $0x68] sm:$0xff] %v10435_v44  ;;  %v3050_v43 = vmax.f32 %v2794_v27, 0.0 }
 0x48a   : > { %3495 = vst [vmem:[%s8651_s27 + $0x60] sm:$0xff] %v10438_v24  ;;  %v3049_v42 = vmax.f32 %v2793_v58, 0.0  ;;  %v6197_v32 = vpop.f32.mrb[16].mxu0 }
 0x48b   : > { %v10451_v59 = vmul.f32 %v7316_v62, %v3050_v43  ;;  %v2796_v57 = vadd.f32 %v6197_v32, %v10301_v34  ;;  %v10454_v46 = vpop.f32.mrb[10].mxu1  ;;  %v2533_v30 = vpop.f32.mrb[17].mxu0  ;;  %v7239_v62 = vunpack.i.l.bf16 %v10184_v7 }
 0x48c   : > { %v10456_v27 = vmul.f32 %v7315_v38, %v3049_v42  ;;  %v2795_v18 = vadd.f32 %v10301_v34, %v2533_v30  ;;  %v10459_v48 = vpop.f32.mrb[11].mxu1 }
 0x48d   : > { %3498 = vst [vmem:[%s8651_s27 + $0x78] sm:$0xff] %v10451_v59  ;;  %v3052_v58 = vmax.f32 %v2796_v57, 0.0  ;;  %v7251_v57 = vunpack.i.h.bf16 %v10188_v33  ;;  %v7261_v33 = vunpack.i.h.bf16 %v10212_v21 }
 0x48e   : > { %3497 = vst [vmem:[%s8651_s27 + $0x70] sm:$0xff] %v10456_v27  ;;  %v3051_v38 = vmax.f32 %v2795_v18, 0.0  ;;  %v6200_v42 = vpop.f32.mrb[18].mxu0 }
 0x48f   : > { %v3436_v32 = vmul.f32 %v7240_v35, %v3052_v58  ;;  %v2798_v30 = vadd.f32 %v6200_v42, %v10301_v34  ;;  %v2543_v4 = vpop.f32.mrb[19].mxu0  ;;  %v10470_v16 = vpop.trf.xlu1 }
 0x490   : > { %11350 = vst [vmem:[#allocation66_spill] sm:$0xff] %v10470_v16  ;;  %v3435_v61 = vmul.f32 %v7239_v62, %v3051_v38  ;;  %v2797_v13 = vadd.f32 %v10301_v34, %v2543_v4 }
 0x491   : > { %3500 = vst [vmem:[%s8651_s27 + $0x88] sm:$0xff] %v3436_v32  ;;  %v3054_v7 = vmax.f32 %v2798_v30, 0.0 }
 0x492   : > { %3499 = vst [vmem:[%s8651_s27 + $0x80] sm:$0xff] %v3435_v61  ;;  %v3053_v43 = vmax.f32 %v2797_v13, 0.0  ;;  %v6203_v18 = vpop.f32.mrb[20].mxu0  ;;  %v6691_v35 = vpack.c.bf16 %v3436_v32, %v3435_v61  ;;  %v11352_v61 = vpack.c.bf16 %v10319_v25, %v10324_v9  ;;  %v7260_v32 = vunpack.i.l.bf16 %v10212_v21 }
 0x493   : > { %v3438_v58 = vmul.f32 %v7251_v57, %v3054_v7  ;;  %v2800_v42 = vadd.f32 %v6203_v18, %v10301_v34  ;;  %v10478_v1 = vpop.f32.mrb[12].mxu1  ;;  %v2553_v62 = vpop.f32.mrb[21].mxu0  ;;  %v7271_v25 = vunpack.i.h.bf16 %v10219_v20  ;;  %v11353_v21 = vpack.c.bf16 %v10339_v63, %v10344_v37 }
 0x494   : > { %v3437_v38 = vmul.f32 %v7250_v31, %v3053_v43  ;;  %v2799_v4 = vadd.f32 %v10301_v34, %v2553_v62  ;;  %v10481_v16 = vpop.f32.mrb[13].mxu1  ;;  %6692 = vmatprep.subr.bf16.mxu1 %v6691_v35  ;;  %v10483_v30 = vpop.trf.xlu1 }
 0x495   : > { %11351 = vst [vmem:[#allocation67_spill] sm:$0xff] %v10483_v30  ;;  %3502 = vst [vmem:[%s8651_s27 + $0x98] sm:$0xff] %v3438_v58  ;;  %v3056_v13 = vmax.f32 %v2800_v42, 0.0  ;;  %6694 = vmatpush3.bf16.msra.mxu1 %v11352_v61 }
 0x496   : > { %3501 = vst [vmem:[%s8651_s27 + $0x90] sm:$0xff] %v3437_v38  ;;  %v3055_v31 = vmax.f32 %v2799_v4, 0.0  ;;  %v6206_v43 = vpop.f32.mrb[22].mxu0  ;;  %v6695_v57 = vpack.c.bf16 %v3438_v58, %v3437_v38  ;;  %v7270_v58 = vunpack.i.l.bf16 %v10219_v20  ;;  %v7281_v20 = vunpack.i.h.bf16 %v10229_v51 }
 0x497   : > { %v3440_v7 = vmul.f32 %v7261_v33, %v3056_v13  ;;  %v2802_v18 = vadd.f32 %v6206_v43, %v10301_v34  ;;  %v2563_v35 = vpop.f32.mrb[23].mxu0 }
 0x498   : > { %v3439_v62 = vmul.f32 %v7260_v32, %v3055_v31  ;;  %v2801_v30 = vadd.f32 %v10301_v34, %v2563_v35  ;;  %6696 = vmatprep.subr.bf16.mxu1 %v6695_v57  ;;  %v10494_v42 = vpop.trf.xlu1 }
 0x499   : > { %3504 = vst [vmem:[%s8651_s27 + $0xa8] sm:$0xff] %v3440_v7  ;;  %v3058_v9 = vmax.f32 %v2802_v18, 0.0  ;;  %6698 = vmatpush3.bf16.msra.mxu1 %v11353_v21 }
 0x49a   : > { %3503 = vst [vmem:[%s8651_s27 + $0xa0] sm:$0xff] %v3439_v62  ;;  %v3057_v38 = vmax.f32 %v2801_v30, 0.0  ;;  %v6209_v4 = vpop.f32.mrb[24].mxu0  ;;  %v6699_v33 = vpack.c.bf16 %v3440_v7, %v3439_v62  ;;  %v11354_v30 = vpack.c.bf16 %v10359_v14, %v10364_v3  ;;  %v7280_v7 = vunpack.i.l.bf16 %v10229_v51 }
 0x49b   : > { %v3442_v13 = vmul.f32 %v7271_v25, %v3058_v9  ;;  %v2804_v61 = vadd.f32 %v6209_v4, %v10301_v34  ;;  %v10504_v32 = vpop.f32.mrb[14].mxu1  ;;  %v2573_v31 = vpop.f32.mrb[25].mxu0  ;;  %v7291_v14 = vunpack.i.h.bf16 %v10236_v39  ;;  %v11355_v51 = vpack.c.bf16 %v10377_v6, %v10382_v47 }
 0x49c   : > { %v3441_v43 = vmul.f32 %v7270_v58, %v3057_v38  ;;  %v2803_v57 = vadd.f32 %v10301_v34, %v2573_v31  ;;  %v10507_v18 = vpop.f32.mrb[15].mxu1  ;;  %6700 = vmatprep.subr.bf16.mxu1 %v6699_v33  ;;  %v10509_v63 = vpop.trf.xlu1 }
 0x49d   : > { %3506 = vst [vmem:[%s8651_s27 + $0xb8] sm:$0xff] %v3442_v13  ;;  %v3060_v37 = vmax.f32 %v2804_v61, 0.0  ;;  %6702 = vmatpush3.bf16.msra.mxu1 %v11354_v30 }
 0x49e   : > { %3505 = vst [vmem:[%s8651_s27 + $0xb0] sm:$0xff] %v3441_v43  ;;  %v3059_v35 = vmax.f32 %v2803_v57, 0.0  ;;  %v6212_v62 = vpop.f32.mrb[26].mxu0  ;;  %v6703_v25 = vpack.c.bf16 %v3442_v13, %v3441_v43  ;;  %v7290_v13 = vunpack.i.l.bf16 %v10236_v39  ;;  %v7301_v39 = vunpack.i.h.bf16 %v10246_v5 }
 0x49f   : > { %v3444_v9 = vmul.f32 %v7281_v20, %v3060_v37  ;;  %v2806_v21 = vadd.f32 %v6212_v62, %v10301_v34  ;;  %v2583_v58 = vpop.f32.mrb[27].mxu0 }
 0x4a0   : > { %v3443_v38 = vmul.f32 %v7280_v7, %v3059_v35  ;;  %v2805_v4 = vadd.f32 %v10301_v34, %v2583_v58  ;;  %6704 = vmatprep.subr.bf16.mxu1 %v6703_v25  ;;  %v10520_v33 = vpop.trf.xlu1  ;;  %v11356_v25 = vpack.c.bf16 %v10399_v41, %v10402_v19  ;;  %v7311_v19 = vunpack.i.h.bf16 %v10253_v45 }
 0x4a1   : > { %3508 = vst [vmem:[%s8651_s27 + $0xc8] sm:$0xff] %v3444_v9  ;;  %v3062_v3 = vmax.f32 %v2806_v21, 0.0  ;;  %6706 = vmatpush3.bf16.msra.mxu1 %v11355_v51 }
 0x4a2   : > { %3507 = vst [vmem:[%s8651_s27 + $0xc0] sm:$0xff] %v3443_v38  ;;  %v3061_v61 = vmax.f32 %v2805_v4, 0.0  ;;  %v6215_v31 = vpop.f32.mrb[28].mxu0  ;;  %v6707_v43 = vpack.c.bf16 %v3444_v9, %v3443_v38  ;;  %v7300_v9 = vunpack.i.l.bf16 %v10246_v5  ;;  %v11357_v5 = vpack.c.bf16 %v10415_v10, %v10422_v17 }
 0x4a3   : > { %v3446_v57 = vmul.f32 %v7291_v14, %v3062_v3  ;;  %v2808_v20 = vadd.f32 %v6215_v31, %v10301_v34  ;;  %v10530_v37 = vpop.f32.mrb[16].mxu1  ;;  %v2593_v30 = vpop.f32.mrb[29].mxu0  ;;  %v7310_v31 = vunpack.i.l.bf16 %v10253_v45  ;;  %v11358_v17 = vpack.c.bf16 %v10435_v44, %v10438_v24 }
 0x4a4   : > { %v3445_v7 = vmul.f32 %v7290_v13, %v3061_v61  ;;  %v2807_v35 = vadd.f32 %v10301_v34, %v2593_v30  ;;  %v10533_v62 = vpop.f32.mrb[17].mxu1  ;;  %6708 = vmatprep.subr.bf16.mxu1 %v6707_v43  ;;  %v10535_v47 = vpop.trf.xlu1  ;;  %v7363_v24 = vunpack.i.h.bf16 %v10270_v23  ;;  %v7365_v44 = vunpack.i.l.bf16 %v10275_v29 }
 0x4a5   : > { %3510 = vst [vmem:[%s8651_s27 + $0xd8] sm:$0xff] %v3446_v57  ;;  %v3064_v6 = vmax.f32 %v2808_v20, 0.0  ;;  %6710 = vmatpush3.bf16.msra.mxu1 %v11356_v25 }
 0x4a6   : > { %3509 = vst [vmem:[%s8651_s27 + $0xd0] sm:$0xff] %v3445_v7  ;;  %v3063_v21 = vmax.f32 %v2807_v35, 0.0  ;;  %v6218_v58 = vpop.f32.mrb[30].mxu0  ;;  %v6711_v38 = vpack.c.bf16 %v3446_v57, %v3445_v7 }
 0x4a7   : > { %v3448_v4 = vmul.f32 %v7301_v39, %v3064_v6  ;;  %v2810_v14 = vadd.f32 %v6218_v58, %v10301_v34  ;;  %v2603_v3 = vpop.f32.mrb[31].mxu0 }
 0x4a8   : > { %v3447_v51 = vmul.f32 %v7300_v9, %v3063_v21  ;;  %v2809_v13 = vadd.f32 %v10301_v34, %v2603_v3  ;;  %6712 = vmatprep.subr.bf16.mxu1 %v6711_v38  ;;  %v10546_v61 = vpop.trf.xlu1  ;;  %v7326_v38 = vunpack.i.h.bf16 %v10248_v26 }
 0x4a9   : > { %3512 = vst [vmem:[%s8651_s27 + $0xe8] sm:$0xff] %v3448_v4  ;;  %v3066_v41 = vmax.f32 %v2810_v14, 0.0  ;;  %6714 = vmatpush3.bf16.msra.mxu1 %v11357_v5  ;;  %v7448_v5 = vunpack.i.h.bf16 %v10265_v12 }
 0x4aa   : > { %3511 = vst [vmem:[%s8651_s27 + $0xe0] sm:$0xff] %v3447_v51  ;;  %v3065_v43 = vmax.f32 %v2809_v13, 0.0  ;;  %v6221_v57 = vpop.f32.mrb[32].mxu0  ;;  %v6715_v20 = vpack.c.bf16 %v3448_v4, %v3447_v51 }
 0x4ab   : > { %v3450_v30 = vmul.f32 %v7311_v19, %v3066_v41  ;;  %v2619_v7 = vadd.f32 %v6221_v57, %v10305_v8  ;;  %v10556_v35 = vpop.f32.mrb[18].mxu1  ;;  %v2613_v39 = vpop.f32.mrb[33].mxu0 }
 0x4ac   : > { %v3449_v6 = vmul.f32 %v7310_v31, %v3065_v43  ;;  %v2614_v25 = vadd.f32 %v2613_v39, %v10308_v15  ;;  %v10559_v9 = vpop.f32.mrb[19].mxu1  ;;  %6716 = vmatprep.subr.bf16.mxu1 %v6715_v20  ;;  %v10561_v10 = vpop.trf.xlu1  ;;  %v7325_v15 = vunpack.i.l.bf16 %v10248_v26  ;;  %v7447_v43 = vunpack.i.l.bf16 %v10265_v12 }
 0x4ad   : > { %3514 = vst [vmem:[%s8651_s27 + $0xf8] sm:$0xff] %v3450_v30  ;;  %v2812_v45 = vadd.f32 %v10301_v34, %v2619_v7  ;;  %6718 = vmatpush3.bf16.msra.mxu1 %v11358_v17  ;;  %v7458_v17 = vunpack.i.h.bf16 %v10279_v50 }
 0x4ae   : > { %3513 = vst [vmem:[%s8651_s27 + $0xf0] sm:$0xff] %v3449_v6  ;;  %v2811_v8 = vadd.f32 %v10301_v34, %v2614_v25  ;;  %v6224_v21 = vpop.f32.mrb[34].mxu0  ;;  %v6719_v58 = vpack.c.bf16 %v3450_v30, %v3449_v6 }
 0x4af   : > { %v3068_v4 = vmax.f32 %v2812_v45, 0.0  ;;  %v2629_v14 = vadd.f32 %v6224_v21, %v10317_v0  ;;  %v2623_v3 = vpop.f32.mrb[35].mxu0  ;;  %v11359_v0 = vpack.c.bf16 %v10451_v59, %v10456_v27  ;;  %v7368_v59 = vunpack.i.h.bf16 %v10275_v29 }
 0x4b0   : > { %v3067_v51 = vmax.f32 %v2811_v8, 0.0  ;;  %v2624_v13 = vadd.f32 %v2623_v3, %v10322_v53  ;;  %6720 = vmatprep.subr.bf16.mxu1 %v6719_v58  ;;  %v10576_v19 = vpop.trf.xlu1  ;;  %v7457_v58 = vunpack.i.l.bf16 %v10279_v50  ;;  %v7375_v50 = vunpack.i.l.bf16 %v10281_v56 }
 0x4b1   : > { %v10578_v41 = vmul.f32 %v7326_v38, %v3068_v4  ;;  %v2814_v26 = vadd.f32 %v10301_v34, %v2629_v14  ;;  %6722 = vmatpush3.bf16.msra.mxu1 %v11359_v0  ;;  %v7373_v14 = vunpack.i.h.bf16 %v10277_v28 }
 0x4b2   : > { %v10585_v31 = vmul.f32 %v7325_v15, %v3067_v51  ;;  %v2813_v53 = vadd.f32 %v10301_v34, %v2624_v13  ;;  %v6227_v23 = vpop.f32.mrb[36].mxu0 }
 0x4b3   : > { %3516 = vst [vmem:[%s8651_s27 + $0x108] sm:$0xff] %v10578_v41  ;;  %v3070_v57 = vmax.f32 %v2814_v26, 0.0  ;;  %v2639_v20 = vadd.f32 %v6227_v23, %v10342_v2  ;;  %v10592_v30 = vpop.f32.mrb[20].mxu1  ;;  %v2633_v7 = vpop.f32.mrb[37].mxu0  ;;  %v7370_v2 = vunpack.i.l.bf16 %v10277_v28  ;;  %v7468_v28 = vunpack.i.h.bf16 %v10289_v60 }
 0x4b4   : > { %3515 = vst [vmem:[%s8651_s27 + $0x100] sm:$0xff] %v10585_v31  ;;  %v6725_v27 = vpack.c.bf16 %v10578_v41, %v10585_v31  ;;  %v3069_v39 = vmax.f32 %v2813_v53, 0.0  ;;  %v2634_v6 = vadd.f32 %v2633_v7, %v10347_v11  ;;  %v10600_v12 = vpop.f32.mrb[21].mxu1  ;;  %3756 = vmatmul.mubr.f32.vlgmr.msra.gmra.mrb[32].mxu1 %v7363_v24  ;;  %v10603_v25 = vpop.trf.xlu1 }
 0x4b5   : > { %v10605_v45 = vmul.f32 %v7448_v5, %v3070_v57  ;;  %v2816_v29 = vadd.f32 %v10301_v34, %v2639_v20  ;;  %3760 = vmatprep.mubr.f32.mxu1 %v7365_v44  ;;  %v7378_v20 = vunpack.i.h.bf16 %v10281_v56 }
 0x4b6   : > { %v10609_v8 = vmul.f32 %v7447_v43, %v3069_v39  ;;  %v2815_v21 = vadd.f32 %v10301_v34, %v2634_v6  ;;  %v6230_v11 = vpop.f32.mrb[38].mxu0 }
 0x4b7   : > { %3518 = vst [vmem:[%s8651_s27 + $0x118] sm:$0xff] %v10605_v45  ;;  %v3072_v38 = vmax.f32 %v2816_v29, 0.0  ;;  %v2649_v15 = vadd.f32 %v6230_v11, %v10380_v52  ;;  %v2643_v4 = vpop.f32.mrb[39].mxu0  ;;  %v7478_v29 = vunpack.i.h.bf16 %v10299_v55  ;;  %v7477_v11 = vunpack.i.l.bf16 %v10299_v55 }
 0x4b8   : > { %3517 = vst [vmem:[%s8651_s27 + $0x110] sm:$0xff] %v10609_v8  ;;  %v6729_v3 = vpack.c.bf16 %v10605_v45, %v10609_v8  ;;  %v3071_v51 = vmax.f32 %v2815_v21, 0.0  ;;  %v2644_v13 = vadd.f32 %v2643_v4, %v10385_v54  ;;  %3761 = vmatmul.mubr.f32.gmra.mrb[34].mxu1 %v7368_v59  ;;  %v10623_v24 = vpop.trf.xlu1  ;;  %v7467_v54 = vunpack.i.l.bf16 %v10289_v60 }
 0x4b9   : > { %v10625_v44 = vmul.f32 %v7458_v17, %v3072_v38  ;;  %v2818_v52 = vadd.f32 %v10301_v34, %v2649_v15  ;;  %3765 = vmatprep.mubr.f32.mxu1 %v7370_v2  ;;  %v7383_v4 = vunpack.i.h.bf16 %v10285_v36  ;;  %v7385_v55 = vunpack.i.l.bf16 %v10287_v49 }
 0x4ba   : > { %v10629_v26 = vmul.f32 %v7457_v58, %v3071_v51  ;;  %v2817_v0 = vadd.f32 %v10301_v34, %v2644_v13  ;;  %v6233_v5 = vpop.f32.mrb[40].mxu0 }
 0x4bb   : > { %3520 = vst [vmem:[%s8651_s27 + $0x128] sm:$0xff] %v10625_v44  ;;  %v3074_v53 = vmax.f32 %v2818_v52, 0.0  ;;  %v2659_v23 = vadd.f32 %v6233_v5, %v10418_v22  ;;  %v10636_v43 = vpop.f32.mrb[22].mxu1  ;;  %v2653_v57 = vpop.f32.mrb[41].mxu0  ;;  %v7380_v22 = vunpack.i.l.bf16 %v10285_v36  ;;  %v11360_v36 = vld [vmem:[#allocation57_spill] sm:$0xff] }
 0x4bc   : > { %3519 = vst [vmem:[%s8651_s27 + $0x120] sm:$0xff] %v10629_v26  ;;  %v3073_v59 = vmax.f32 %v2817_v0, 0.0  ;;  %v2654_v39 = vadd.f32 %v2653_v57, %v10425_v40  ;;  %v10644_v60 = vpop.f32.mrb[23].mxu1  ;;  %3766 = vmatmul.mubr.f32.gmra.mrb[36].mxu1 %v7373_v14  ;;  %v10647_v6 = vpop.trf.xlu1  ;;  %v11368_v14 = vld [vmem:[#allocation45_spill] sm:$0xff] }
 0x4bd   : > { %v10649_v2 = vmul.f32 %v7468_v28, %v3074_v53  ;;  %v2820_v56 = vadd.f32 %v10301_v34, %v2659_v23  ;;  %3770 = vmatprep.mubr.f32.mxu1 %v7375_v50  ;;  %v7488_v28 = vunpack.i.h.bf16 %v11360_v36  ;;  %v7443_v7 = vunpack.i.h.bf16 %v11368_v14 }
 0x4be   : > { %v10653_v17 = vmul.f32 %v7467_v54, %v3073_v59  ;;  %v2819_v21 = vadd.f32 %v10301_v34, %v2654_v39  ;;  %v6236_v40 = vpop.f32.mrb[42].mxu0  ;;  %v7388_v59 = vunpack.i.h.bf16 %v10287_v49 }
 0x4bf   : > { %3522 = vst [vmem:[%s8651_s27 + $0x138] sm:$0xff] %v10649_v2  ;;  %v3076_v58 = vmax.f32 %v2820_v56, 0.0  ;;  %v2669_v38 = vadd.f32 %v6236_v40, %v10454_v46  ;;  %v2663_v15 = vpop.f32.mrb[43].mxu0 }
 0x4c0   : > { %3521 = vst [vmem:[%s8651_s27 + $0x130] sm:$0xff] %v10653_v17  ;;  %v3075_v51 = vmax.f32 %v2819_v21, 0.0  ;;  %v2664_v13 = vadd.f32 %v2663_v15, %v10459_v48  ;;  %3771 = vmatmul.mubr.f32.gmra.mrb[38].mxu1 %v7378_v20  ;;  %v10667_v50 = vpop.trf.xlu1  ;;  %v7487_v48 = vunpack.i.l.bf16 %v11360_v36  ;;  %v11361_v21 = vld [vmem:[#allocation50_spill] sm:$0xff] }
 0x4c1   : > { %v10669_v52 = vmul.f32 %v7478_v29, %v3076_v58  ;;  %v2822_v46 = vadd.f32 %v10301_v34, %v2669_v38  ;;  %3775 = vmatprep.mubr.f32.mxu1 %v7380_v22 }
 0x4c2   : > { %v10673_v0 = vmul.f32 %v7477_v11, %v3075_v51  ;;  %v2821_v5 = vadd.f32 %v10301_v34, %v2664_v13  ;;  %v6239_v54 = vpop.f32.mrb[44].mxu0  ;;  %v11362_v51 = vld [vmem:[#allocation62_spill] sm:$0xff] }
 0x4c3   : > { %3524 = vst [vmem:[%s8651_s27 + $0x148] sm:$0xff] %v10669_v52  ;;  %v3078_v53 = vmax.f32 %v2822_v46, 0.0  ;;  %v2679_v23 = vadd.f32 %v6239_v54, %v10478_v1  ;;  %v10680_v57 = vpop.f32.mrb[24].mxu1  ;;  %v2673_v20 = vpop.f32.mrb[45].mxu0  ;;  %v7390_v1 = vunpack.i.l.bf16 %v11361_v21  ;;  %v7498_v13 = vunpack.i.h.bf16 %v11362_v51 }
 0x4c4   : > { %3523 = vst [vmem:[%s8651_s27 + $0x140] sm:$0xff] %v10673_v0  ;;  %v3077_v22 = vmax.f32 %v2821_v5, 0.0  ;;  %v2674_v56 = vadd.f32 %v2673_v20, %v10481_v16  ;;  %v10688_v29 = vpop.f32.mrb[25].mxu1  ;;  %3776 = vmatmul.mubr.f32.gmra.mrb[40].mxu1 %v7383_v4  ;;  %v10691_v40 = vpop.trf.xlu1  ;;  %v7393_v16 = vunpack.i.h.bf16 %v11361_v21  ;;  %v7497_v4 = vunpack.i.l.bf16 %v11362_v51 }
 0x4c5   : > { %v10693_v11 = vmul.f32 %v7488_v28, %v3078_v53  ;;  %v2824_v49 = vadd.f32 %v10301_v34, %v2679_v23  ;;  %3780 = vmatprep.mubr.f32.mxu1 %v7385_v55 }
 0x4c6   : > { %v10696_v58 = vmul.f32 %v7487_v48, %v3077_v22  ;;  %v2823_v38 = vadd.f32 %v10301_v34, %v2674_v56  ;;  %v6242_v15 = vpop.f32.mrb[46].mxu0  ;;  %v11363_v48 = vld [vmem:[#allocation47_spill] sm:$0xff] }
 0x4c7   : > { %3526 = vst [vmem:[%s8651_s27 + $0x158] sm:$0xff] %v10693_v11  ;;  %v3080_v46 = vmax.f32 %v2824_v49, 0.0  ;;  %v2689_v36 = vadd.f32 %v6242_v15, %v10504_v32  ;;  %v2683_v28 = vpop.f32.mrb[47].mxu0  ;;  %v7395_v53 = vunpack.i.l.bf16 %v11363_v48  ;;  %v11364_v49 = vld [vmem:[#allocation65_spill] sm:$0xff] }
 0x4c8   : > { %3525 = vst [vmem:[%s8651_s27 + $0x150] sm:$0xff] %v10696_v58  ;;  %v3079_v5 = vmax.f32 %v2823_v38, 0.0  ;;  %v2684_v54 = vadd.f32 %v2683_v28, %v10507_v18  ;;  %3781 = vmatmul.mubr.f32.gmra.mrb[42].mxu1 %v7388_v59  ;;  %v10711_v23 = vpop.trf.xlu1  ;;  %v7508_v38 = vunpack.i.h.bf16 %v11364_v49 }
 0x4c9   : > { %v10713_v20 = vmul.f32 %v7498_v13, %v3080_v46  ;;  %v2826_v32 = vadd.f32 %v10301_v34, %v2689_v36  ;;  %3785 = vmatprep.mubr.f32.mxu1 %v7390_v1  ;;  %v7398_v13 = vunpack.i.h.bf16 %v11363_v48  ;;  %v7507_v46 = vunpack.i.l.bf16 %v11364_v49  ;;  %v11365_v48 = vld [vmem:[#allocation49_spill] sm:$0xff]  ;;  %v11366_v1 = vld [vmem:[#allocation46_spill] sm:$0xff] }
 0x4ca   : > { %v10716_v22 = vmul.f32 %v7497_v4, %v3079_v5  ;;  %v2825_v56 = vadd.f32 %v10301_v34, %v2684_v54  ;;  %v6245_v21 = vpop.f32.mrb[48].mxu0 }
 0x4cb   : > { %3528 = vst [vmem:[%s8651_s27 + $0x168] sm:$0xff] %v10713_v20  ;;  %v3082_v18 = vmax.f32 %v2826_v32, 0.0  ;;  %v2699_v59 = vadd.f32 %v6245_v21, %v10530_v37  ;;  %v10723_v15 = vpop.f32.mrb[26].mxu1  ;;  %v2693_v51 = vpop.f32.mrb[49].mxu0  ;;  %v7400_v32 = vunpack.i.l.bf16 %v11365_v48 }
 0x4cc   : > { %3527 = vst [vmem:[%s8651_s27 + $0x160] sm:$0xff] %v10716_v22  ;;  %v3081_v4 = vmax.f32 %v2825_v56, 0.0  ;;  %v2694_v36 = vadd.f32 %v2693_v51, %v10533_v62  ;;  %v10732_v28 = vpop.f32.mrb[27].mxu1  ;;  %3786 = vmatmul.mubr.f32.gmra.mrb[44].mxu1 %v7393_v16  ;;  %v10734_v37 = vpop.trf.xlu1  ;;  %v7321_v62 = vunpack.i.h.bf16 %v11366_v1  ;;  %v7320_v51 = vunpack.i.l.bf16 %v11366_v1 }
 0x4cd   : > { %v10736_v5 = vmul.f32 %v7508_v38, %v3082_v18  ;;  %v2828_v54 = vadd.f32 %v10301_v34, %v2699_v59  ;;  %3790 = vmatprep.mubr.f32.mxu1 %v7395_v53 }
 0x4ce   : > { %v10740_v21 = vmul.f32 %v7507_v46, %v3081_v4  ;;  %v2827_v49 = vadd.f32 %v10301_v34, %v2694_v36  ;;  %v6248_v56 = vpop.f32.mrb[50].mxu0  ;;  %v7403_v4 = vunpack.i.h.bf16 %v11365_v48 }
 0x4cf   : > { %3530 = vst [vmem:[%s8651_s27 + $0x178] sm:$0xff] %v10736_v5  ;;  %v3084_v16 = vmax.f32 %v2828_v54, 0.0  ;;  %v2709_v38 = vadd.f32 %v6248_v56, %v10556_v35  ;;  %v2703_v18 = vpop.f32.mrb[51].mxu0  ;;  %v11367_v54 = vld [vmem:[#allocation52_spill] sm:$0xff] }
 0x4d0   : > { %3529 = vst [vmem:[%s8651_s27 + $0x170] sm:$0xff] %v10740_v21  ;;  %v6753_v53 = vpack.c.bf16 %v10736_v5, %v10740_v21  ;;  %v3083_v59 = vmax.f32 %v2827_v49, 0.0  ;;  %v2704_v46 = vadd.f32 %v2703_v18, %v10559_v9  ;;  %3791 = vmatmul.mubr.f32.gmra.mrb[46].mxu1 %v7398_v13  ;;  %v7405_v35 = vunpack.i.l.bf16 %v11367_v54 }
 0x4d1   : > { %v3468_v1 = vmul.f32 %v7321_v62, %v3084_v16  ;;  %v2830_v36 = vadd.f32 %v10301_v34, %v2709_v38  ;;  %3795 = vmatprep.mubr.f32.mxu1 %v7400_v32  ;;  %v7442_v49 = vunpack.i.l.bf16 %v11368_v14  ;;  %v7408_v16 = vunpack.i.h.bf16 %v11367_v54  ;;  %v10768_v14 = vld [vmem:[#allocation3] ss:$0 sm:$0xff] }
 0x4d2   : > { %v3467_v56 = vmul.f32 %v7320_v51, %v3083_v59  ;;  %v2829_v55 = vadd.f32 %v10301_v34, %v2704_v46  ;;  %v6251_v39 = vpop.f32.mrb[52].mxu0  ;;  %v7562_v5 = vunpack.i.l.bf16 %v10520_v33  ;;  %v7565_v21 = vunpack.i.h.bf16 %v10520_v33 }
 0x4d3   : > { %3532 = vst [vmem:[%s8651_s27 + $0x188] sm:$0xff] %v3468_v1  ;;  %v3086_v9 = vmax.f32 %v2830_v36, 0.0  ;;  %v2719_v13 = vadd.f32 %v6251_v39, %v10592_v30  ;;  %v10761_v18 = vpop.f32.mrb[28].mxu1  ;;  %v2713_v48 = vpop.f32.mrb[53].mxu0  ;;  %v11369_v39 = vld [vmem:[#allocation55_spill] sm:$0xff]  ;;  %v11370_v36 = vld [vmem:[#allocation48_spill] sm:$0xff]  ;;  %v7582_v33 = vunpack.i.l.bf16 %v10576_v19 }
 0x4d4   : > { %3531 = vst [vmem:[%s8651_s27 + $0x180] sm:$0xff] %v3467_v56  ;;  %v3085_v62 = vmax.f32 %v2829_v55, 0.0  ;;  %v2714_v32 = vadd.f32 %v2713_v48, %v10600_v12  ;;  %v10765_v51 = vpop.f32.mrb[29].mxu1  ;;  %3796 = vmatmul.mubr.f32.gmra.mrb[48].mxu1 %v7403_v4  ;;  %v6723_v34 = vpack.c.bf16 %v3468_v1, %v3467_v56  ;;  %v7410_v59 = vunpack.i.l.bf16 %v11369_v39 }
 0x4d5   : > { %v3470_v38 = vmul.f32 %v7443_v7, %v3086_v9  ;;  %v2832_v30 = vadd.f32 %v10768_v14, %v2719_v13  ;;  %3800 = vmatprep.mubr.f32.mxu1 %v7405_v35  ;;  %v7453_v48 = vunpack.i.h.bf16 %v11370_v36  ;;  %v7452_v4 = vunpack.i.l.bf16 %v11370_v36 }
 0x4d6   : > { %v3469_v46 = vmul.f32 %v7442_v49, %v3085_v62  ;;  %v2831_v55 = vadd.f32 %v10768_v14, %v2714_v32  ;;  %v6254_v12 = vpop.f32.mrb[54].mxu0  ;;  %6724 = vmatprep.subr.bf16.mxu1 %v6723_v34  ;;  %v7413_v9 = vunpack.i.h.bf16 %v11369_v39 }
 0x4d7   : > { %3534 = vst [vmem:[%s8651_s27 + $0x198] sm:$0xff] %v3470_v38  ;;  %v3088_v1 = vmax.f32 %v2832_v30, 0.0  ;;  %v2729_v7 = vadd.f32 %v6254_v12, %v10636_v43  ;;  %v2723_v54 = vpop.f32.mrb[55].mxu0  ;;  %6726 = vmatpush3.bf16.msra.mxu1 %v6725_v27  ;;  %v11371_v43 = vld [vmem:[#allocation56_spill] sm:$0xff]  ;;  %v11372_v27 = vld [vmem:[#allocation51_spill] sm:$0xff] }
 0x4d8   : > { %3533 = vst [vmem:[%s8651_s27 + $0x190] sm:$0xff] %v3469_v46  ;;  %v3087_v35 = vmax.f32 %v2831_v55, 0.0  ;;  %v2724_v56 = vadd.f32 %v2723_v54, %v10644_v60  ;;  %3801 = vmatmul.mubr.f32.gmra.mrb[50].mxu1 %v7408_v16  ;;  %v6727_v49 = vpack.c.bf16 %v3470_v38, %v3469_v46  ;;  %v7415_v32 = vunpack.i.l.bf16 %v11371_v43  ;;  %v11374_v54 = vld [vmem:[#allocation53_spill] sm:$0xff] }
 0x4d9   : > { %v3472_v13 = vmul.f32 %v7453_v48, %v3088_v1  ;;  %v2834_v62 = vadd.f32 %v10768_v14, %v2729_v7  ;;  %3805 = vmatprep.mubr.f32.mxu1 %v7410_v59  ;;  %v7463_v30 = vunpack.i.h.bf16 %v11372_v27  ;;  %v7462_v60 = vunpack.i.l.bf16 %v11372_v27  ;;  %v11373_v1 = vld [vmem:[#allocation58_spill] sm:$0xff] }
 0x4da   : > { %v3471_v34 = vmul.f32 %v7452_v4, %v3087_v35  ;;  %v2833_v41 = vadd.f32 %v10768_v14, %v2724_v56  ;;  %v6257_v31 = vpop.f32.mrb[56].mxu0  ;;  %6728 = vmatprep.subr.bf16.mxu1 %v6727_v49  ;;  %v7418_v48 = vunpack.i.h.bf16 %v11371_v43  ;;  %v7420_v7 = vunpack.i.l.bf16 %v11373_v1 }
 0x4db   : > { %3536 = vst [vmem:[%s8651_s27 + $0x1a8] sm:$0xff] %v3472_v13  ;;  %v3090_v16 = vmax.f32 %v2834_v62, 0.0  ;;  %v2739_v38 = vadd.f32 %v6257_v31, %v10680_v57  ;;  %v10790_v39 = vpop.f32.mrb[30].mxu1  ;;  %v2733_v46 = vpop.f32.mrb[57].mxu0  ;;  %6730 = vmatpush3.bf16.msra.mxu1 %v6729_v3  ;;  %v7472_v35 = vunpack.i.l.bf16 %v11374_v54 }
 0x4dc   : > { %3535 = vst [vmem:[%s8651_s27 + $0x1a0] sm:$0xff] %v3471_v34  ;;  %v3089_v59 = vmax.f32 %v2833_v41, 0.0  ;;  %v2734_v55 = vadd.f32 %v2733_v46, %v10688_v29  ;;  %v10797_v12 = vpop.f32.mrb[31].mxu1  ;;  %3806 = vmatmul.mubr.f32.gmra.mrb[52].mxu1 %v7413_v9  ;;  %v6731_v36 = vpack.c.bf16 %v3472_v13, %v3471_v34  ;;  %v7473_v29 = vunpack.i.h.bf16 %v11374_v54 }
 0x4dd   : > { %v3474_v57 = vmul.f32 %v7463_v30, %v3090_v16  ;;  %v2836_v4 = vadd.f32 %v10768_v14, %v2739_v38  ;;  %3810 = vmatprep.mubr.f32.mxu1 %v7415_v32  ;;  %v11375_v13 = vpack.c.bf16 %v10625_v44, %v10629_v26  ;;  %v7423_v34 = vunpack.i.h.bf16 %v11373_v1 }
 0x4de   : > { %v3473_v45 = vmul.f32 %v7462_v60, %v3089_v59  ;;  %v2835_v8 = vadd.f32 %v10768_v14, %v2734_v55  ;;  %v6260_v3 = vpop.f32.mrb[58].mxu0  ;;  %6732 = vmatprep.subr.bf16.mxu1 %v6731_v36  ;;  %v11377_v60 = vld [vmem:[#allocation54_spill] sm:$0xff]  ;;  %v11378_v55 = vpack.c.bf16 %v10649_v2, %v10653_v17 }
 0x4df   : > { %3538 = vst [vmem:[%s8651_s27 + $0x1b8] sm:$0xff] %v3474_v57  ;;  %v3092_v56 = vmax.f32 %v2836_v4, 0.0  ;;  %v2749_v49 = vadd.f32 %v6260_v3, %v10723_v15  ;;  %v2743_v9 = vpop.f32.mrb[59].mxu0  ;;  %6734 = vmatpush3.bf16.msra.mxu1 %v11375_v13  ;;  %v11376_v15 = vld [vmem:[#allocation60_spill] sm:$0xff]  ;;  %v7483_v16 = vunpack.i.h.bf16 %v11377_v60  ;;  %v11380_v3 = vld [vmem:[#allocation59_spill] sm:$0xff] }
 0x4e0   : > { %3537 = vst [vmem:[%s8651_s27 + $0x1b0] sm:$0xff] %v3473_v45  ;;  %v3091_v62 = vmax.f32 %v2835_v8, 0.0  ;;  %v2744_v43 = vadd.f32 %v2743_v9, %v10732_v28  ;;  %3811 = vmatmul.mubr.f32.gmra.mrb[54].mxu1 %v7418_v48  ;;  %v6735_v32 = vpack.c.bf16 %v3474_v57, %v3473_v45  ;;  %v7425_v27 = vunpack.i.l.bf16 %v11376_v15 }
 0x4e1   : > { %v3476_v41 = vmul.f32 %v7473_v29, %v3092_v56  ;;  %v2838_v31 = vadd.f32 %v10768_v14, %v2749_v49  ;;  %3815 = vmatprep.mubr.f32.mxu1 %v7420_v7  ;;  %v7482_v28 = vunpack.i.l.bf16 %v11377_v60  ;;  %v7428_v4 = vunpack.i.h.bf16 %v11376_v15 }
 0x4e2   : > { %v3475_v30 = vmul.f32 %v7472_v35, %v3091_v62  ;;  %v2837_v44 = vadd.f32 %v10768_v14, %v2744_v43  ;;  %v6263_v26 = vpop.f32.mrb[60].mxu0  ;;  %6736 = vmatprep.subr.bf16.mxu1 %v6735_v32  ;;  %v7493_v54 = vunpack.i.h.bf16 %v11380_v3  ;;  %v11381_v49 = vpack.c.bf16 %v10669_v52, %v10673_v0  ;;  %v11383_v0 = vld [vmem:[#allocation64_spill] sm:$0xff] }
 0x4e3   : > { %3540 = vst [vmem:[%s8651_s27 + $0x1c8] sm:$0xff] %v3476_v41  ;;  %v3094_v38 = vmax.f32 %v2838_v31, 0.0  ;;  %v2759_v46 = vadd.f32 %v6263_v26, %v10761_v18  ;;  %v2753_v59 = vpop.f32.mrb[61].mxu0  ;;  %6738 = vmatpush3.bf16.msra.mxu1 %v11378_v55  ;;  %v11379_v18 = vld [vmem:[#allocation61_spill] sm:$0xff]  ;;  %v7503_v15 = vunpack.i.h.bf16 %v11383_v0 }
 0x4e4   : > { %3539 = vst [vmem:[%s8651_s27 + $0x1c0] sm:$0xff] %v3475_v30  ;;  %v3093_v36 = vmax.f32 %v2837_v44, 0.0  ;;  %v2754_v48 = vadd.f32 %v2753_v59, %v10765_v51  ;;  %3816 = vmatmul.mubr.f32.gmra.mrb[56].mxu1 %v7423_v34  ;;  %v6739_v57 = vpack.c.bf16 %v3476_v41, %v3475_v30  ;;  %v7430_v45 = vunpack.i.l.bf16 %v11379_v18  ;;  %v11387_v59 = vld [vmem:[#allocation67_spill] sm:$0xff] }
 0x4e5   : > { %v3478_v1 = vmul.f32 %v7483_v16, %v3094_v38  ;;  %v2840_v7 = vadd.f32 %v10768_v14, %v2759_v46  ;;  %3820 = vmatprep.mubr.f32.mxu1 %v7425_v27  ;;  %v7492_v51 = vunpack.i.l.bf16 %v11380_v3  ;;  %v7433_v43 = vunpack.i.h.bf16 %v11379_v18  ;;  %v11385_v16 = vld [vmem:[#allocation66_spill] sm:$0xff] }
 0x4e6   : > { %v3477_v8 = vmul.f32 %v7482_v28, %v3093_v36  ;;  %v2839_v2 = vadd.f32 %v10768_v14, %v2754_v48  ;;  %v6266_v17 = vpop.f32.mrb[62].mxu0  ;;  %6740 = vmatprep.subr.bf16.mxu1 %v6739_v57  ;;  %v11384_v27 = vpack.c.bf16 %v10693_v11, %v10696_v58  ;;  %v7502_v30 = vunpack.i.l.bf16 %v11383_v0 }
 0x4e7   : > { %3542 = vst [vmem:[%s8651_s27 + $0x1d8] sm:$0xff] %v3478_v1  ;;  %v3096_v29 = vmax.f32 %v2840_v7, 0.0  ;;  %v2769_v35 = vadd.f32 %v6266_v17, %v10790_v39  ;;  %v2763_v56 = vpop.f32.mrb[63].mxu0  ;;  %6742 = vmatpush3.bf16.msra.mxu1 %v11381_v49  ;;  %v11382_v39 = vld [vmem:[#allocation63_spill] sm:$0xff]  ;;  %v7542_v28 = vunpack.i.l.bf16 %v11385_v16  ;;  %v11386_v46 = vpack.c.bf16 %v10713_v20, %v10716_v22 }
 0x4e8   : > { %3541 = vst [vmem:[%s8651_s27 + $0x1d0] sm:$0xff] %v3477_v8  ;;  %v3095_v9 = vmax.f32 %v2839_v2, 0.0  ;;  %v2764_v13 = vadd.f32 %v2763_v56, %v10797_v12  ;;  %3821 = vmatmul.mubr.f32.gmra.mrb[58].mxu1 %v7428_v4  ;;  %v6743_v62 = vpack.c.bf16 %v3478_v1, %v3477_v8  ;;  %v7435_v41 = vunpack.i.l.bf16 %v11382_v39 }
 0x4e9   : > { %v3480_v32 = vmul.f32 %v7493_v54, %v3096_v29  ;;  %v2842_v34 = vadd.f32 %v10768_v14, %v2769_v35  ;;  %3825 = vmatprep.mubr.f32.mxu1 %v7430_v45  ;;  %v7438_v26 = vunpack.i.h.bf16 %v11382_v39  ;;  %v7545_v58 = vunpack.i.h.bf16 %v11385_v16 }
 0x4ea   : > { %v3479_v31 = vmul.f32 %v7492_v51, %v3095_v9  ;;  %v2841_v52 = vadd.f32 %v10768_v14, %v2764_v13  ;;  %6744 = vmatprep.subr.bf16.mxu1 %v6743_v62  ;;  %v7547_v55 = vunpack.i.l.bf16 %v11387_v59  ;;  %v7550_v36 = vunpack.i.h.bf16 %v11387_v59 }
 0x4eb   : > { %3544 = vst [vmem:[%s8651_s27 + $0x1e8] sm:$0xff] %v3480_v32  ;;  %v3098_v12 = vmax.f32 %v2842_v34, 0.0  ;;  %6746 = vmatpush3.bf16.msra.mxu1 %v11384_v27  ;;  %v7552_v20 = vunpack.i.l.bf16 %v10494_v42  ;;  %v7555_v22 = vunpack.i.h.bf16 %v10494_v42  ;;  %v7557_v48 = vunpack.i.l.bf16 %v10509_v63 }
 0x4ec   : > { %3543 = vst [vmem:[%s8651_s27 + $0x1e0] sm:$0xff] %v3479_v31  ;;  %v3097_v44 = vmax.f32 %v2841_v52, 0.0  ;;  %3826 = vmatmul.mubr.f32.gmra.mrb[60].mxu1 %v7433_v43  ;;  %v6747_v60 = vpack.c.bf16 %v3480_v32, %v3479_v31  ;;  %v7560_v57 = vunpack.i.h.bf16 %v10509_v63  ;;  %v7570_v4 = vunpack.i.h.bf16 %v10535_v47 }
 0x4ed   : > { %v3482_v14 = vmul.f32 %v7503_v15, %v3098_v12  ;;  %3830 = vmatprep.mubr.f32.mxu1 %v7435_v41  ;;  %v7572_v42 = vunpack.i.l.bf16 %v10546_v61  ;;  %v7575_v1 = vunpack.i.h.bf16 %v10546_v61  ;;  %v7577_v63 = vunpack.i.l.bf16 %v10561_v10 }
 0x4ee   : > { %v3481_v38 = vmul.f32 %v7502_v30, %v3097_v44  ;;  %6748 = vmatprep.subr.bf16.mxu1 %v6747_v60  ;;  %v7580_v7 = vunpack.i.h.bf16 %v10561_v10  ;;  %v7585_v18 = vunpack.i.h.bf16 %v10576_v19  ;;  %v7590_v45 = vunpack.i.h.bf16 %v10603_v25 }
 0x4ef   : > { %3546 = vst [vmem:[%s8651_s27 + $0x1f8] sm:$0xff] %v3482_v14  ;;  %6750 = vmatpush3.bf16.msra.mxu1 %v11386_v46  ;;  %v7592_v61 = vunpack.i.l.bf16 %v10623_v24  ;;  %v7595_v8 = vunpack.i.h.bf16 %v10623_v24  ;;  %v7597_v10 = vunpack.i.l.bf16 %v10647_v6  ;;  %v7600_v2 = vunpack.i.h.bf16 %v10647_v6 }
 0x4f0   : > { %3545 = vst [vmem:[%s8651_s27 + $0x1f0] sm:$0xff] %v3481_v38  ;;  %3831 = vmatmul.mubr.f32.gmra.mrb[62].mxu1 %v7438_v26  ;;  %v6751_v11 = vpack.c.bf16 %v3482_v14, %v3481_v38  ;;  %v7602_v19 = vunpack.i.l.bf16 %v10667_v50  ;;  %v7605_v17 = vunpack.i.h.bf16 %v10667_v50  ;;  %v7610_v3 = vunpack.i.h.bf16 %v10691_v40 }
 0x4f1   : > { %3900 = vmatprep.mubr.f32.mxu1 %v7542_v28  ;;  %v7612_v24 = vunpack.i.l.bf16 %v10711_v23  ;;  %v7615_v54 = vunpack.i.h.bf16 %v10711_v23  ;;  %v7617_v6 = vunpack.i.l.bf16 %v10734_v37  ;;  %v7620_v51 = vunpack.i.h.bf16 %v10734_v37 }
 0x4f2   : > { %6752 = vmatprep.subr.bf16.mxu1 %v6751_v11 }
 0x4f3   : > { %6754 = vmatpush3.bf16.msra.mxu1 %v6753_v53  ;;  %v7567_v53 = vunpack.i.l.bf16 %v10535_v47  ;;  %v7587_v47 = vunpack.i.l.bf16 %v10603_v25  ;;  %v7607_v25 = vunpack.i.l.bf16 %v10691_v40 }
 0x4f6   : > { %3901 = vmatmul.mubr.f32.vlgmr.msra.gmra.mrb[64].mxu1 %v7545_v58 }
 0x4f7   : > { %3905 = vmatprep.mubr.f32.mxu1 %v7547_v55 }
 0x4fa   : > { %3906 = vmatmul.mubr.f32.gmra.mrb[66].mxu1 %v7550_v36 }
 0x4fb   : > { %3910 = vmatprep.mubr.f32.mxu1 %v7552_v20 }
 0x4fe   : > { %3911 = vmatmul.mubr.f32.gmra.mrb[68].mxu1 %v7555_v22 }
 0x4ff   : > { %3915 = vmatprep.mubr.f32.mxu1 %v7557_v48 }
 0x502   : > { %3916 = vmatmul.mubr.f32.gmra.mrb[70].mxu1 %v7560_v57 }
 0x503   : > { %3920 = vmatprep.mubr.f32.mxu1 %v7562_v5 }
 0x506   : > { %3921 = vmatmul.mubr.f32.gmra.mrb[72].mxu1 %v7565_v21 }
 0x507   : > { %3925 = vmatprep.mubr.f32.mxu1 %v7567_v53 }
 0x50a   : > { %3926 = vmatmul.mubr.f32.gmra.mrb[74].mxu1 %v7570_v4 }
 0x50b   : > { %3930 = vmatprep.mubr.f32.mxu1 %v7572_v42 }
 0x50e   : > { %3931 = vmatmul.mubr.f32.gmra.mrb[76].mxu1 %v7575_v1 }
 0x50f   : > { %3935 = vmatprep.mubr.f32.mxu1 %v7577_v63 }
 0x512   : > { %3936 = vmatmul.mubr.f32.gmra.mrb[78].mxu1 %v7580_v7 }
 0x513   : > { %3940 = vmatprep.mubr.f32.mxu1 %v7582_v33 }
 0x516   : > { %3941 = vmatmul.mubr.f32.gmra.mrb[80].mxu1 %v7585_v18 }
 0x517   : > { %3945 = vmatprep.mubr.f32.mxu1 %v7587_v47 }
 0x51a   : > { %3946 = vmatmul.mubr.f32.gmra.mrb[82].mxu1 %v7590_v45  ;;  %v3547_v45 = vld [vmem:[#allocation4] sm:$0xff] }
 0x51b   : > { %3950 = vmatprep.mubr.f32.mxu1 %v7592_v61 }
 0x51e   : > { %3951 = vmatmul.mubr.f32.gmra.mrb[84].mxu1 %v7595_v8 }
 0x51f   : > { %3955 = vmatprep.mubr.f32.mxu1 %v7597_v10 }
 0x522   : > { %3956 = vmatmul.mubr.f32.gmra.mrb[86].mxu1 %v7600_v2 }
 0x523   : > { %3960 = vmatprep.mubr.f32.mxu1 %v7602_v19 }
 0x526   : > { %3961 = vmatmul.mubr.f32.gmra.mrb[88].mxu1 %v7605_v17  ;;  %v3548_v17 = vld [vmem:[#allocation4 + $0x8] sm:$0xff] }
 0x527   : > { %3965 = vmatprep.mubr.f32.mxu1 %v7607_v25 }
 0x52a   : > { %3966 = vmatmul.mubr.f32.gmra.mrb[90].mxu1 %v7610_v3 }
 0x52b   : > { %3970 = vmatprep.mubr.f32.mxu1 %v7612_v24 }
 0x52e   : > { %3971 = vmatmul.mubr.f32.gmra.mrb[92].mxu1 %v7615_v54 }
 0x52f   : > { %3975 = vmatprep.mubr.f32.mxu1 %v7617_v6 }
 0x532   : > { %3976 = vmatmul.mubr.f32.gmra.mrb[94].mxu1 %v7620_v51  ;;  %v3549_v51 = vld [vmem:[#allocation4 + $0x10] sm:$0xff] }
 0x587   : > { %v5620_v50 = vpop.f32.mrb[32].mxu1 }
 0x588   : > { %v5621_v29 = vpop.f32.mrb[33].mxu1 }
 0x589   : > { %v5622_v35 = vadd.f32 %v5621_v29, %v5620_v50 }
 0x58b   : > { %v5623_v56 = vpop.f32.mrb[34].mxu1 }
 0x58c   : > { %v5624_v49 = vpop.f32.mrb[35].mxu1 }
 0x58d   : > { %v5625_v40 = vadd.f32 %v5624_v49, %v5623_v56 }
 0x58f   : > { %v5626_v9 = vpop.f32.mrb[36].mxu1 }
 0x590   : > { %v5627_v13 = vpop.f32.mrb[37].mxu1 }
 0x591   : > { %v5628_v62 = vadd.f32 %v5627_v13, %v5626_v9  ;;  %v3550_v13 = vld [vmem:[#allocation4 + $0x18] sm:$0xff] }
 0x593   : > { %v5629_v43 = vpop.f32.mrb[38].mxu1 }
 0x594   : > { %v5630_v32 = vpop.f32.mrb[39].mxu1 }
 0x595   : > { %v5631_v23 = vadd.f32 %v5630_v32, %v5629_v43 }
 0x597   : > { %v5632_v34 = vpop.f32.mrb[40].mxu1 }
 0x598   : > { %v5633_v39 = vpop.f32.mrb[41].mxu1 }
 0x599   : > { %v10890_v41 = vadd.f32 %v5633_v39, %v5632_v34 }
 0x59b   : > { %v5635_v37 = vpop.f32.mrb[42].mxu1 }
 0x59c   : > { %v5636_v31 = vpop.f32.mrb[43].mxu1 }
 0x59d   : > { %v10892_v52 = vadd.f32 %v5636_v31, %v5635_v37  ;;  %v3551_v37 = vld [vmem:[#allocation4 + $0x20] sm:$0xff] }
 0x59f   : > { %v5638_v0 = vpop.f32.mrb[44].mxu1 }
 0x5a0   : > { %v5639_v15 = vpop.f32.mrb[45].mxu1 }
 0x5a1   : > { %v10894_v12 = vadd.f32 %v5639_v15, %v5638_v0 }
 0x5a3   : > { %v5641_v27 = vpop.f32.mrb[46].mxu1 }
 0x5a4   : > { %v5642_v30 = vpop.f32.mrb[47].mxu1 }
 0x5a5   : > { %v10896_v44 = vadd.f32 %v5642_v30, %v5641_v27 }
 0x5a7   : > { %v5644_v26 = vpop.f32.mrb[48].mxu1 }
 0x5a8   : > { %v5645_v60 = vpop.f32.mrb[49].mxu1 }
 0x5a9   : > { %v10898_v14 = vadd.f32 %v5645_v60, %v5644_v26 }
 0x5ab   : > { %v5647_v16 = vpop.f32.mrb[50].mxu1 }
 0x5ac   : > { %v5648_v28 = vpop.f32.mrb[51].mxu1 }
 0x5ad   : > { %v10900_v38 = vadd.f32 %v5648_v28, %v5647_v16  ;;  %v3553_v28 = vld [vmem:[#allocation4 + $0x30] sm:$0xff] }
 0x5af   : > { %v5650_v46 = vpop.f32.mrb[52].mxu1 }
 0x5b0   : > { %v5651_v11 = vpop.f32.mrb[53].mxu1 }
 0x5b1   : > { %v10902_v58 = vadd.f32 %v5651_v11, %v5650_v46 }
 0x5b3   : > { %v5653_v59 = vpop.f32.mrb[54].mxu1 }
 0x5b4   : > { %v5654_v55 = vpop.f32.mrb[55].mxu1 }
 0x5b5   : > { %v10904_v36 = vadd.f32 %v5654_v55, %v5653_v59 }
 0x5b7   : > { %v5656_v20 = vpop.f32.mrb[56].mxu1 }
 0x5b8   : > { %v5657_v22 = vpop.f32.mrb[57].mxu1 }
 0x5b9   : > { %v10906_v48 = vadd.f32 %v5657_v22, %v5656_v20  ;;  %v3554_v20 = vld [vmem:[#allocation4 + $0x38] sm:$0xff] }
 0x5bb   : > { %v5659_v57 = vpop.f32.mrb[58].mxu1 }
 0x5bc   : > { %v5660_v5 = vpop.f32.mrb[59].mxu1 }
 0x5bd   : > { %v10908_v21 = vadd.f32 %v5660_v5, %v5659_v57 }
 0x5bf   : > { %v5662_v53 = vpop.f32.mrb[60].mxu1 }
 0x5c0   : > { %v5663_v4 = vpop.f32.mrb[61].mxu1 }
 0x5c1   : > { %v10910_v42 = vadd.f32 %v5663_v4, %v5662_v53  ;;  %v3555_v4 = vld [vmem:[#allocation4 + $0x40] sm:$0xff] }
 0x5c3   : > { %v5665_v1 = vpop.f32.mrb[62].mxu1 }
 0x5c4   : > { %v5666_v63 = vpop.f32.mrb[63].mxu1 }
 0x5c5   : > { %v10912_v7 = vadd.f32 %v5666_v63, %v5665_v1 }
 0x5c9   : > { %v5700_v33 = vpop.f32.mrb[64].mxu1 }
 0x5ca   : > { %v5701_v18 = vpop.f32.mrb[65].mxu1 }
 0x5cb   : > { %v5702_v47 = vadd.f32 %v5701_v18, %v5700_v33 }
 0x5cd   : > { %v3903_v61 = vadd.f32 %v5702_v47, %v5622_v35  ;;  %v5703_v8 = vpop.f32.mrb[66].mxu1  ;;  %v3556_v47 = vld [vmem:[#allocation4 + $0x48] sm:$0xff] }
 0x5ce   : > { %v5704_v10 = vpop.f32.mrb[67].mxu1 }
 0x5cf   : > { %v3981_v2 = vadd.f32 %v3903_v61, %v3547_v45  ;;  %v5705_v19 = vadd.f32 %v5704_v10, %v5703_v8 }
 0x5d1   : > { %3997 = vst [vmem:[#allocation4] sm:$0xff] %v3981_v2  ;;  %v3908_v25 = vadd.f32 %v5705_v19, %v5625_v40  ;;  %v5706_v3 = vpop.f32.mrb[68].mxu1  ;;  %v3557_v2 = vld [vmem:[#allocation4 + $0x50] sm:$0xff] }
 0x5d2   : > { %v5707_v24 = vpop.f32.mrb[69].mxu1 }
 0x5d3   : > { %v3982_v54 = vadd.f32 %v3908_v25, %v3548_v17  ;;  %v5708_v6 = vadd.f32 %v5707_v24, %v5706_v3  ;;  %v3558_v24 = vld [vmem:[#allocation4 + $0x58] sm:$0xff] }
 0x5d5   : > { %3998 = vst [vmem:[#allocation4 + $0x8] sm:$0xff] %v3982_v54  ;;  %v3913_v50 = vadd.f32 %v5708_v6, %v5628_v62  ;;  %v5709_v29 = vpop.f32.mrb[70].mxu1  ;;  %v3552_v62 = vld [vmem:[#allocation4 + $0x28] sm:$0xff] }
 0x5d6   : > { %v5710_v56 = vpop.f32.mrb[71].mxu1 }
 0x5d7   : > { %v3983_v49 = vadd.f32 %v3913_v50, %v3549_v51  ;;  %v5711_v9 = vadd.f32 %v5710_v56, %v5709_v29  ;;  %v3559_v29 = vld [vmem:[#allocation4 + $0x60] sm:$0xff] }
 0x5d9   : > { %3999 = vst [vmem:[#allocation4 + $0x10] sm:$0xff] %v3983_v49  ;;  %v3918_v35 = vadd.f32 %v5711_v9, %v5631_v23  ;;  %v5712_v43 = vpop.f32.mrb[72].mxu1 }
 0x5da   : > { %v5713_v32 = vpop.f32.mrb[73].mxu1 }
 0x5db   : > { %v3984_v34 = vadd.f32 %v3918_v35, %v3550_v13  ;;  %v5714_v39 = vadd.f32 %v5713_v32, %v5712_v43  ;;  %v3560_v35 = vld [vmem:[#allocation4 + $0x68] sm:$0xff] }
 0x5dd   : > { %4000 = vst [vmem:[#allocation4 + $0x18] sm:$0xff] %v3984_v34  ;;  %v3923_v40 = vadd.f32 %v5714_v39, %v10890_v41  ;;  %v5715_v31 = vpop.f32.mrb[74].mxu1 }
 0x5de   : > { %v5716_v0 = vpop.f32.mrb[75].mxu1 }
 0x5df   : > { %v3985_v15 = vadd.f32 %v3923_v40, %v3551_v37  ;;  %v5717_v27 = vadd.f32 %v5716_v0, %v5715_v31  ;;  %v3561_v37 = vld [vmem:[#allocation4 + $0x70] sm:$0xff] }
 0x5e1   : > { %4001 = vst [vmem:[#allocation4 + $0x20] sm:$0xff] %v3985_v15  ;;  %v3928_v30 = vadd.f32 %v5717_v27, %v10892_v52  ;;  %v5718_v26 = vpop.f32.mrb[76].mxu1  ;;  %v3562_v27 = vld [vmem:[#allocation4 + $0x78] sm:$0xff] }
 0x5e2   : > { %v5719_v60 = vpop.f32.mrb[77].mxu1 }
 0x5e3   : > { %v3986_v16 = vadd.f32 %v3928_v30, %v3552_v62  ;;  %v5720_v23 = vadd.f32 %v5719_v60, %v5718_v26  ;;  %v4059_v26 = vld [vmem:[#allocation16 + $0x8] sm:$0xff] (!%p5351_p9)  ;;  %v4060_v60 = vld [vmem:[#allocation16 + $0x10] sm:$0xff] (!%p5351_p9) }
 0x5e5   : > { %4002 = vst [vmem:[#allocation4 + $0x28] sm:$0xff] %v3986_v16  ;;  %v3933_v46 = vadd.f32 %v5720_v23, %v10894_v12  ;;  %v5721_v11 = vpop.f32.mrb[78].mxu1  ;;  %v4061_v23 = vld [vmem:[#allocation16 + $0x18] sm:$0xff] (!%p5351_p9) }
 0x5e6   : > { %v5722_v59 = vpop.f32.mrb[79].mxu1 }
 0x5e7   : > { %v3987_v55 = vadd.f32 %v3933_v46, %v3553_v28  ;;  %v5723_v41 = vadd.f32 %v5722_v59, %v5721_v11  ;;  %v8158_v28 = vmov (!%p5351_p9), 0.0|0.0   ;;  %v6759_v46 = vpack.c.bf16 (!%p5351_p9), %v4061_v23, %v4060_v60  ;;  %v4063_v11 = vld [vmem:[#allocation16 + $0x28] sm:$0xff] (!%p5351_p9) }
 0x5e8   : > { %6851 = vmatprep.subr.bf16.mxu1 (!%p5351_p9), %v8158_v28  ;;  %v4047_v60 = vld [vmem:[#allocation14 + $0x28] sm:$0xff] (!%p5351_p9) }
 0x5e9   : > { %4003 = vst [vmem:[#allocation4 + $0x30] sm:$0xff] %v3987_v55  ;;  %v3938_v22 = vadd.f32 %v5723_v41, %v10896_v44  ;;  %v5724_v57 = vpop.f32.mrb[80].mxu1  ;;  %v4026_v55 = vld [vmem:[#allocation4] sm:$0xff] (!%p5351_p9)  ;;  %v10930_v41 = vld [vmem:[#allocation4 + $0x8] sm:$0xff] (!%p5351_p9) }
 0x5ea   : > { %v5725_v5 = vpop.f32.mrb[81].mxu1  ;;  %6299 = vmatprep.mubr.f32.mxu0 (!%p5351_p9), %v4026_v55  ;;  %v4426_v23 = vld [vmem:[#allocation19 + $0x68] sm:$0xff] (!%p5351_p9) }
 0x5eb   : > { %v3988_v53 = vadd.f32 %v3938_v22, %v3554_v20  ;;  %v5726_v52 = vadd.f32 %v5725_v5, %v5724_v57  ;;  %v4064_v20 = vld [vmem:[#allocation16 + $0x30] sm:$0xff] (!%p5351_p9)  ;;  %v4065_v22 = vld [vmem:[#allocation16 + $0x38] sm:$0xff] (!%p5351_p9)  ;;  %v4583_v57 = vadd.f32 (!%p5351_p9), %v10930_v41, %v4026_v55 }
 0x5ec   : > { %v6767_v5 = vpack.c.bf16 (!%p5351_p9), %v4065_v22, %v4064_v20  ;;  %v4427_v55 = vld [vmem:[#allocation19 + $0x70] sm:$0xff] (!%p5351_p9)  ;;  %v4428_v20 = vld [vmem:[#allocation19 + $0x78] sm:$0xff] (!%p5351_p9) }
 0x5ed   : > { %4004 = vst [vmem:[#allocation4 + $0x38] sm:$0xff] %v3988_v53  ;;  %v3943_v1 = vadd.f32 %v5726_v52, %v10898_v14  ;;  %v5727_v63 = vpop.f32.mrb[82].mxu1  ;;  %v10933_v53 = vld [vmem:[#allocation4 + $0x10] sm:$0xff] (!%p5351_p9)  ;;  %v4066_v52 = vld [vmem:[#allocation16 + $0x40] sm:$0xff] (!%p5351_p9)  ;;  %v6873_v22 = vpack.c.bf16 (!%p5351_p9), %v4428_v20, %v4427_v55  ;;  %v4628_v55 = vld [vmem:[#allocation22 + $0x18] sm:$0xff] (!%p5351_p9) }
 0x5ee   : > { %v5728_v33 = vpop.f32.mrb[83].mxu1 }
 0x5ef   : > { %v3989_v18 = vadd.f32 %v3943_v1, %v3555_v4  ;;  %v5729_v12 = vadd.f32 %v5728_v33, %v5727_v63  ;;  %v4067_v4 = vld [vmem:[#allocation16 + $0x48] sm:$0xff] (!%p5351_p9)  ;;  %v4584_v1 = vadd.f32 (!%p5351_p9), %v4583_v57, %v10933_v53  ;;  %v10936_v63 = vld [vmem:[#allocation4 + $0x18] sm:$0xff] (!%p5351_p9)  ;;  %v4050_v57 = vld [vmem:[#allocation14 + $0x40] sm:$0xff] (!%p5351_p9) }
 0x5f1   : > { %4005 = vst [vmem:[#allocation4 + $0x40] sm:$0xff] %v3989_v18  ;;  %v3948_v45 = vadd.f32 %v5729_v12, %v10900_v38  ;;  %v5730_v61 = vpop.f32.mrb[84].mxu1  ;;  %v4585_v33 = vadd.f32 (!%p5351_p9), %v4584_v1, %v10936_v63  ;;  %v6771_v18 = vpack.c.bf16 (!%p5351_p9), %v4067_v4, %v4066_v52  ;;  %v10939_v12 = vld [vmem:[#allocation4 + $0x20] sm:$0xff] (!%p5351_p9)  ;;  %v4052_v4 = vld [vmem:[#allocation14 + $0x50] sm:$0xff] (!%p5351_p9)  ;;  %v4053_v1 = vld [vmem:[#allocation14 + $0x58] sm:$0xff] (!%p5351_p9) }
 0x5f2   : > { %v5731_v8 = vpop.f32.mrb[85].mxu1  ;;  %v4018_v52 = vld [vmem:[#allocation5] sm:$0xff] (!%p5351_p9) }
 0x5f3   : > { %v3990_v10 = vadd.f32 %v3948_v45, %v3556_v47  ;;  %v5732_v44 = vadd.f32 %v5731_v8, %v5730_v61  ;;  %v4413_v47 = vld [vmem:[#allocation19] sm:$0xff] (!%p5351_p9)  ;;  %v4414_v45 = vld [vmem:[#allocation19 + $0x8] sm:$0xff] (!%p5351_p9)  ;;  %v4068_v61 = vld [vmem:[#allocation16 + $0x50] sm:$0xff] (!%p5351_p9) }
 0x5f4   : > { %v4069_v8 = vld [vmem:[#allocation16 + $0x58] sm:$0xff] (!%p5351_p9) }
 0x5f5   : > { %4006 = vst [vmem:[#allocation4 + $0x48] sm:$0xff] %v3990_v10  ;;  %v3953_v19 = vadd.f32 %v5732_v44, %v10902_v58  ;;  %v5733_v17 = vpop.f32.mrb[86].mxu1  ;;  %v4586_v10 = vadd.f32 (!%p5351_p9), %v4585_v33, %v10939_v12  ;;  %v6852_v44 = vpack.c.bf16 (!%p5351_p9), %v4414_v45, %v4413_v47  ;;  %v6807_v33 = vpack.c.bf16 (!%p5351_p9), %v4053_v1, %v4052_v4  ;;  %v4056_v45 = vld [vmem:[#allocation14 + $0x70] sm:$0xff] (!%p5351_p9)  ;;  %v4633_v4 = vld [vmem:[#allocation22 + $0x40] sm:$0xff] (!%p5351_p9)  ;;  %v4634_v1 = vld [vmem:[#allocation22 + $0x48] sm:$0xff] (!%p5351_p9) }
 0x5f6   : > { %v5734_v25 = vpop.f32.mrb[87].mxu1 }
 0x5f7   : > { %v3991_v3 = vadd.f32 %v3953_v19, %v3557_v2  ;;  %v5735_v14 = vadd.f32 %v5734_v25, %v5733_v17  ;;  %v10942_v2 = vld [vmem:[#allocation4 + $0x28] sm:$0xff] (!%p5351_p9)  ;;  %v4415_v19 = vld [vmem:[#allocation19 + $0x10] sm:$0xff] (!%p5351_p9)  ;;  %v4416_v17 = vld [vmem:[#allocation19 + $0x18] sm:$0xff] (!%p5351_p9)  ;;  %6853 = vmatpush3.bf16.msra.mxu1 (!%p5351_p9), %v6852_v44 }
 0x5f8   : > { %v4587_v25 = vadd.f32 (!%p5351_p9), %v4586_v10, %v10942_v2  ;;  %6854 = vmatprep.subr.bf16.mxu1 (!%p5351_p9), %v8158_v28  ;;  %v4284_v10 = vld [vmem:[#allocation17] sm:$0xff] (!%p5351_p9)  ;;  %v4285_v44 = vld [vmem:[#allocation17 + $0x8] sm:$0xff] (!%p5351_p9) }
 0x5f9   : > { %4007 = vst [vmem:[#allocation4 + $0x50] sm:$0xff] %v3991_v3  ;;  %v3958_v54 = vadd.f32 %v5735_v14, %v10904_v36  ;;  %v5736_v6 = vpop.f32.mrb[88].mxu1  ;;  %v6855_v3 = vpack.c.bf16 (!%p5351_p9), %v4416_v17, %v4415_v19  ;;  %v6775_v14 = vpack.c.bf16 (!%p5351_p9), %v4069_v8, %v4068_v61  ;;  %v4057_v61 = vld [vmem:[#allocation14 + $0x78] sm:$0xff] (!%p5351_p9)  ;;  %v4286_v19 = vld [vmem:[#allocation17 + $0x10] sm:$0xff] (!%p5351_p9) }
 0x5fa   : > { %v5737_v51 = vpop.f32.mrb[89].mxu1  ;;  %v6815_v8 = vpack.c.bf16 (!%p5351_p9), %v4057_v61, %v4056_v45  ;;  %v4287_v17 = vld [vmem:[#allocation17 + $0x18] sm:$0xff] (!%p5351_p9)  ;;  %v4637_v45 = vld [vmem:[#allocation22 + $0x60] sm:$0xff] (!%p5351_p9)  ;;  %v4638_v61 = vld [vmem:[#allocation22 + $0x68] sm:$0xff] (!%p5351_p9) }
 0x5fb   : > { %v3992_v50 = vadd.f32 %v3958_v54, %v3558_v24  ;;  %v5738_v38 = vadd.f32 %v5737_v51, %v5736_v6  ;;  %v10945_v24 = vld [vmem:[#allocation4 + $0x30] sm:$0xff] (!%p5351_p9)  ;;  %v4417_v54 = vld [vmem:[#allocation19 + $0x20] sm:$0xff] (!%p5351_p9)  ;;  %v4418_v6 = vld [vmem:[#allocation19 + $0x28] sm:$0xff] (!%p5351_p9)  ;;  %6856 = vmatpush3.bf16.msra.mxu1 (!%p5351_p9), %v6855_v3  ;;  %v6823_v3 = vpack.c.bf16 (!%p5351_p9), %v4287_v17, %v4286_v19 }
 0x5fc   : > { %v4070_v51 = vld [vmem:[#allocation16 + $0x60] sm:$0xff] (!%p5351_p9)  ;;  %6857 = vmatprep.subr.bf16.mxu1 (!%p5351_p9), %v8158_v28  ;;  %v4782_v17 = vld [vmem:[#allocation23 + $0x8] sm:$0xff] (!%p5351_p9) }
 0x5fd   : > { %4008 = vst [vmem:[#allocation4 + $0x58] sm:$0xff] %v3992_v50  ;;  %v3963_v56 = vadd.f32 %v5738_v38, %v10906_v48  ;;  %v5739_v49 = vpop.f32.mrb[90].mxu1  ;;  %v4071_v50 = vld [vmem:[#allocation16 + $0x68] sm:$0xff] (!%p5351_p9)  ;;  %v4588_v38 = vadd.f32 (!%p5351_p9), %v4587_v25, %v10945_v24  ;;  %v4781_v19 = vld [vmem:[#allocation23] sm:$0xff] (!%p5351_p9) }
 0x5fe   : > { %v5740_v9 = vpop.f32.mrb[91].mxu1  ;;  %v4019_v25 = vld [vmem:[#allocation5 + $0x8] sm:$0xff] (!%p5351_p9) }
 0x5ff   : > { %v3993_v13 = vadd.f32 %v3963_v56, %v3559_v29  ;;  %v5741_v58 = vadd.f32 %v5740_v9, %v5739_v49  ;;  %v10949_v29 = vld [vmem:[#allocation4 + $0x38] sm:$0xff] (!%p5351_p9)  ;;  %v6858_v49 = vpack.c.bf16 (!%p5351_p9), %v4418_v6, %v4417_v54  ;;  %v6779_v9 = vpack.c.bf16 (!%p5351_p9), %v4071_v50, %v4070_v51  ;;  %v4289_v54 = vld [vmem:[#allocation17 + $0x28] sm:$0xff] (!%p5351_p9)  ;;  %v4022_v50 = vld [vmem:[#allocation5 + $0x20] sm:$0xff] (!%p5351_p9) }
 0x600   : > { %v10952_v56 = vadd.f32 (!%p5351_p9), %v4588_v38, %v10949_v29  ;;  %v4021_v6 = vld [vmem:[#allocation5 + $0x18] sm:$0xff] (!%p5351_p9)  ;;  %v4290_v38 = vld [vmem:[#allocation17 + $0x30] sm:$0xff] (!%p5351_p9) }
 0x601   : > { %4009 = vst [vmem:[#allocation4 + $0x60] sm:$0xff] %v3993_v13  ;;  %v3968_v43 = vadd.f32 %v5741_v58, %v10908_v21  ;;  %v5742_v32 = vpop.f32.mrb[92].mxu1  ;;  %v4058_v21 = vld [vmem:[#allocation16] sm:$0xff] (!%p5351_p9)  ;;  %v4419_v13 = vld [vmem:[#allocation19 + $0x30] sm:$0xff] (!%p5351_p9)  ;;  %v4420_v58 = vld [vmem:[#allocation19 + $0x38] sm:$0xff] (!%p5351_p9)  ;;  %6859 = vmatpush3.bf16.msra.mxu1 (!%p5351_p9), %v6858_v49 }
 0x602   : > { %v5743_v34 = vpop.f32.mrb[93].mxu1  ;;  %v6755_v16 = vpack.c.bf16 (!%p5351_p9), %v4059_v26, %v4058_v21  ;;  %6860 = vmatprep.subr.bf16.mxu1 (!%p5351_p9), %v8158_v28  ;;  %v4046_v21 = vld [vmem:[#allocation14 + $0x20] sm:$0xff] (!%p5351_p9)  ;;  %v4023_v49 = vld [vmem:[#allocation5 + $0x28] sm:$0xff] (!%p5351_p9) }
 0x603   : > { %v3994_v39 = vadd.f32 %v3968_v43, %v3560_v35  ;;  %v5744_v36 = vadd.f32 %v5743_v34, %v5742_v32  ;;  %v4072_v35 = vld [vmem:[#allocation16 + $0x70] sm:$0xff] (!%p5351_p9)  ;;  %v4073_v43 = vld [vmem:[#allocation16 + $0x78] sm:$0xff] (!%p5351_p9)  ;;  %v6861_v32 = vpack.c.bf16 (!%p5351_p9), %v4420_v58, %v4419_v13  ;;  %v4292_v58 = vld [vmem:[#allocation17 + $0x40] sm:$0xff] (!%p5351_p9) }
 0x604   : > { %6756 = vmatprep.subr.bf16.mxu0 (!%p5351_p9), %v6755_v16  ;;  %v6783_v34 = vpack.c.bf16 (!%p5351_p9), %v4073_v43, %v4072_v35  ;;  %v4024_v13 = vld [vmem:[#allocation5 + $0x30] sm:$0xff] (!%p5351_p9)  ;;  %v4293_v35 = vld [vmem:[#allocation17 + $0x48] sm:$0xff] (!%p5351_p9)  ;;  %v4025_v43 = vld [vmem:[#allocation5 + $0x38] sm:$0xff] (!%p5351_p9) }
 0x605   : > { %4010 = vst [vmem:[#allocation4 + $0x68] sm:$0xff] %v3994_v39  ;;  %v3973_v40 = vadd.f32 %v5744_v36, %v10910_v42  ;;  %v5745_v31 = vpop.f32.mrb[94].mxu1  ;;  %v8160_v42 = vmov (!%p5351_p9), 0.0   ;;  %6758 = vmatpush3.bf16.msra.mxu0 (!%p5351_p9), %v6755_v16  ;;  %v4421_v39 = vld [vmem:[#allocation19 + $0x40] sm:$0xff] (!%p5351_p9)  ;;  %v4422_v36 = vld [vmem:[#allocation19 + $0x48] sm:$0xff] (!%p5351_p9)  ;;  %6862 = vmatpush3.bf16.msra.mxu1 (!%p5351_p9), %v6861_v32  ;;  %v6835_v32 = vpack.c.bf16 (!%p5351_p9), %v4293_v35, %v4292_v58 }
 0x606   : > { %v5746_v0 = vpop.f32.mrb[95].mxu1  ;;  %6431 = vmatprep.mubr.msk.f32.mxu1 (!%p5351_p9), %vm8159_vm1, %v8160_v42  ;;  %6760 = vmatprep.subr.bf16.mxu0 (!%p5351_p9), %v6759_v46  ;;  %v4425_v16 = vld [vmem:[#allocation19 + $0x60] sm:$0xff] (!%p5351_p9)  ;;  %v4790_v58 = vld [vmem:[#allocation23 + $0x48] sm:$0xff] (!%p5351_p9) }
 0x607   : > { %v3995_v15 = vadd.f32 %v3973_v40, %v3561_v37  ;;  %v5747_v48 = vadd.f32 %v5746_v0, %v5745_v31  ;;  %4016 = sbr.rel (%p5351_p9) target bundleno = 2136 (0x858), region = 148  ;;  %v4042_v37 = vld [vmem:[#allocation14] sm:$0xff] (!%p5351_p9)  ;;  %v4043_v40 = vld [vmem:[#allocation14 + $0x8] sm:$0xff] (!%p5351_p9)  ;;  %v6864_v31 = vpack.c.bf16 (!%p5351_p9), %v4422_v36, %v4421_v39  ;;  %6863 = vmatprep.subr.bf16.mxu1 (!%p5351_p9), %v8158_v28  ;;  %v4294_v39 = vld [vmem:[#allocation17 + $0x50] sm:$0xff] (!%p5351_p9) }
 0x608   : > { %v6787_v0 = vpack.c.bf16 (!%p5351_p9), %v4043_v40, %v4042_v37  ;;  %v4295_v36 = vld [vmem:[#allocation17 + $0x58] sm:$0xff] (!%p5351_p9)  ;;  %v4296_v40 = vld [vmem:[#allocation17 + $0x60] sm:$0xff] (!%p5351_p9) }
 0x609   : > { %4011 = vst [vmem:[#allocation4 + $0x70] sm:$0xff] %v3995_v15  ;;  %v3978_v62 = vadd.f32 %v5747_v48, %v10912_v7  ;;  %v4062_v7 = vld [vmem:[#allocation16 + $0x20] sm:$0xff] (!%p5351_p9)  ;;  %6762 = vmatpush3.bf16.msra.mxu0 (!%p5351_p9), %v6759_v46  ;;  %v4044_v15 = vld [vmem:[#allocation14 + $0x10] sm:$0xff] (!%p5351_p9)  ;;  %v4045_v48 = vld [vmem:[#allocation14 + $0x18] sm:$0xff] (!%p5351_p9)  ;;  %6865 = vmatpush3.bf16.msra.mxu1 (!%p5351_p9), %v6864_v31  ;;  %v6795_v46 = vpack.c.bf16 (!%p5351_p9), %v4047_v60, %v4046_v21 }
 0x60a   : > { %v6763_v59 = vpack.c.bf16 (!%p5351_p9), %v4063_v11, %v4062_v7  ;;  %6866 = vmatprep.subr.bf16.mxu1 (!%p5351_p9), %v8158_v28  ;;  %v4048_v7 = vld [vmem:[#allocation14 + $0x30] sm:$0xff] (!%p5351_p9)  ;;  %v6870_v11 = vpack.c.bf16 (!%p5351_p9), %v4426_v23, %v4425_v16  ;;  %v6839_v37 = vpack.c.bf16 (!%p5351_p9), %v4295_v36, %v4294_v39  ;;  %v4297_v31 = vld [vmem:[#allocation17 + $0x68] sm:$0xff] (!%p5351_p9)  ;;  %v4037_v21 = vld [vmem:[#allocation4 + $0x58] sm:$0xff] (!%p5351_p9) }
 0x60b   : > { %v3996_v30 = vadd.f32 %v3978_v62, %v3562_v27  ;;  %v4423_v27 = vld [vmem:[#allocation19 + $0x50] sm:$0xff] (!%p5351_p9)  ;;  %v4424_v62 = vld [vmem:[#allocation19 + $0x58] sm:$0xff] (!%p5351_p9) }
 0x60c   : > { %6764 = vmatprep.subr.bf16.mxu0 (!%p5351_p9), %v6763_v59  ;;  %v6867_v26 = vpack.c.bf16 (!%p5351_p9), %v4424_v62, %v4423_v27  ;;  %v4035_v62 = vld [vmem:[#allocation4 + $0x48] sm:$0xff] (!%p5351_p9) }
 0x60d   : > { %4012 = vst [vmem:[#allocation4 + $0x78] sm:$0xff] %v3996_v30  ;;  %6766 = vmatpush3.bf16.msra.mxu0 (!%p5351_p9), %v6763_v59  ;;  %v6791_v30 = vpack.c.bf16 (!%p5351_p9), %v4045_v48, %v4044_v15  ;;  %v4049_v59 = vld [vmem:[#allocation14 + $0x38] sm:$0xff] (!%p5351_p9)  ;;  %v4298_v15 = vld [vmem:[#allocation17 + $0x70] sm:$0xff] (!%p5351_p9)  ;;  %v4039_v60 = vld [vmem:[#allocation4 + $0x68] sm:$0xff] (!%p5351_p9) }
 0x60e   : > { %6768 = vmatprep.subr.bf16.mxu0 %v6767_v5  ;;  %6868 = vmatpush3.bf16.msra.mxu1 %v6867_v26  ;;  %v4299_v48 = vld [vmem:[#allocation17 + $0x78] sm:$0xff]  ;;  %v4038_v26 = vld [vmem:[#allocation4 + $0x60] sm:$0xff] }
 0x60f   : > { %6869 = vmatprep.subr.bf16.mxu1 %v8158_v28  ;;  %v6847_v27 = vpack.c.bf16 %v4299_v48, %v4298_v15  ;;  %v4796_v15 = vld [vmem:[#allocation23 + $0x78] sm:$0xff] }
 0x610   : > { %v4040_v16 = vld [vmem:[#allocation4 + $0x70] sm:$0xff] }
 0x611   : > { %6770 = vmatpush3.bf16.msra.mxu0 %v6767_v5  ;;  %v4051_v5 = vld [vmem:[#allocation14 + $0x48] sm:$0xff] }
 0x612   : > { %6772 = vmatprep.subr.bf16.mxu0 %v6771_v18  ;;  %6871 = vmatpush3.bf16.msra.mxu1 %v6870_v11 }
 0x613   : > { %6872 = vmatprep.subr.bf16.mxu1 %v8158_v28 }
 0x614   : > { %v4041_v23 = vld [vmem:[#allocation4 + $0x78] sm:$0xff] }
 0x615   : > { %6774 = vmatpush3.bf16.msra.mxu0 %v6771_v18  ;;  %v4054_v18 = vld [vmem:[#allocation14 + $0x60] sm:$0xff] }
 0x616   : > { %6776 = vmatprep.subr.bf16.mxu0 %v6775_v14  ;;  %6874 = vmatpush3.bf16.msra.mxu1 %v6873_v22  ;;  %v4630_v22 = vld [vmem:[#allocation22 + $0x28] sm:$0xff] }
 0x617   : > { %6875 = vmatprep.subr.bf16.mxu1 %v8158_v28 }
 0x619   : > { %6778 = vmatpush3.bf16.msra.mxu0 %v6775_v14  ;;  %v4020_v14 = vld [vmem:[#allocation5 + $0x10] sm:$0xff] }
 0x61a   : > { %6780 = vmatprep.subr.bf16.mxu0 %v6779_v9 }
 0x61d   : > { %6782 = vmatpush3.bf16.msra.mxu0 %v6779_v9 }
 0x61e   : > { %6784 = vmatprep.subr.bf16.mxu0 %v6783_v34 }
 0x621   : > { %6786 = vmatpush3.bf16.msra.mxu0 %v6783_v34  ;;  %v4034_v34 = vld [vmem:[#allocation4 + $0x40] sm:$0xff] }
 0x622   : > { %6788 = vmatprep.subr.bf16.mxu0 %v6787_v0 }
 0x624   : > { %6300 = vmatmul.mubr.f32.vlgmr.msra.gmra.mrb[0].mxu0 %v10930_v41  ;;  %v6799_v41 = vpack.c.bf16 %v4049_v59, %v4048_v7  ;;  %v4626_v7 = vld [vmem:[#allocation22 + $0x8] sm:$0xff]  ;;  %v4627_v59 = vld [vmem:[#allocation22 + $0x10] sm:$0xff] }
 0x625   : > { %6790 = vmatpush3.bf16.msra.mxu0 %v6787_v0  ;;  %6302 = vmatprep.mubr.f32.mxu0 %v10933_v53  ;;  %v6803_v53 = vpack.c.bf16 %v4051_v5, %v4050_v57  ;;  %v6843_v0 = vpack.c.bf16 %v4297_v31, %v4296_v40  ;;  %v6879_v20 = vpack.c.bf16 %v4628_v55, %v4627_v59  ;;  %v4631_v5 = vld [vmem:[#allocation22 + $0x30] sm:$0xff]  ;;  %v4794_v40 = vld [vmem:[#allocation23 + $0x68] sm:$0xff] }
 0x626   : > { %6792 = vmatprep.subr.bf16.mxu0 %v6791_v30 }
 0x628   : > { %6303 = vmatmul.mubr.f32.gmra.mrb[2].mxu0 %v10936_v63  ;;  %v10969_v63 = vld [vmem:[%s11388_s1] sm:$0x1] }
 0x629   : > { %6794 = vmatpush3.bf16.msra.mxu0 %v6791_v30  ;;  %6305 = vmatprep.mubr.f32.mxu0 %v10939_v12  ;;  %v4055_v12 = vld [vmem:[#allocation14 + $0x68] sm:$0xff]  ;;  %v4036_v30 = vld [vmem:[#allocation4 + $0x50] sm:$0xff] }
 0x62a   : > { %6796 = vmatprep.subr.bf16.mxu0 %v6795_v46  ;;  %6432 = vmatmul.mubr.f32.vlgmr.msra.gmra.mrb[0].mxu1 %v10969_v63  ;;  %v6811_v47 = vpack.c.bf16 %v4055_v12, %v4054_v18  ;;  %v4635_v18 = vld [vmem:[#allocation22 + $0x50] sm:$0xff]  ;;  %v4636_v12 = vld [vmem:[#allocation22 + $0x58] sm:$0xff] }
 0x62b   : > { %6466 = vmatprep.mubr.msk.f32.mxu1 %vm8159_vm1, %v8160_v42 }
 0x62c   : > { %6306 = vmatmul.mubr.f32.gmra.mrb[4].mxu0 %v10942_v2  ;;  %v6819_v2 = vpack.c.bf16 %v4285_v44, %v4284_v10  ;;  %v4639_v10 = vld [vmem:[#allocation22 + $0x70] sm:$0xff]  ;;  %v4640_v44 = vld [vmem:[#allocation22 + $0x78] sm:$0xff] }
 0x62d   : > { %6798 = vmatpush3.bf16.msra.mxu0 %v6795_v46  ;;  %6308 = vmatprep.mubr.f32.mxu0 %v10945_v24  ;;  %v4288_v24 = vld [vmem:[#allocation17 + $0x20] sm:$0xff] }
 0x62e   : > { %6800 = vmatprep.subr.bf16.mxu0 %v6799_v41  ;;  %v6827_v51 = vpack.c.bf16 %v4289_v54, %v4288_v24  ;;  %v4625_v46 = vld [vmem:[#allocation22] sm:$0xff] }
 0x62f   : > { %v6876_v11 = vpack.c.bf16 %v4626_v7, %v4625_v46  ;;  %v4785_v54 = vld [vmem:[#allocation23 + $0x20] sm:$0xff]  ;;  %v5352_v46 = vld [vmem:[%s11390_s17] ss:$0 sm:$0xff] }
 0x630   : > { %6309 = vmatmul.mubr.f32.gmra.mrb[6].mxu0 %v10949_v29  ;;  %v4291_v29 = vld [vmem:[#allocation17 + $0x38] sm:$0xff] }
 0x631   : > { %6802 = vmatpush3.bf16.msra.mxu0 %v6799_v41  ;;  %6343 = vmatprep.mubr.f32.mxu0 %v4018_v52  ;;  %v6831_v9 = vpack.c.bf16 %v4291_v29, %v4290_v38  ;;  %v4629_v41 = vld [vmem:[#allocation22 + $0x20] sm:$0xff]  ;;  %v4787_v38 = vld [vmem:[#allocation23 + $0x30] sm:$0xff]  ;;  %v4788_v29 = vld [vmem:[#allocation23 + $0x38] sm:$0xff] }
 0x632   : > { %6804 = vmatprep.subr.bf16.mxu0 %v6803_v53  ;;  %6877 = vmatpush3.bf16.msra.mxu1 %v6876_v11  ;;  %v6882_v57 = vpack.c.bf16 %v4630_v22, %v4629_v41 }
 0x633   : > { %6878 = vmatprep.subr.bf16.mxu1 %v8158_v28 }
 0x635   : > { %6806 = vmatpush3.bf16.msra.mxu0 %v6803_v53  ;;  %v4632_v53 = vld [vmem:[#allocation22 + $0x38] sm:$0xff] }
 0x636   : > { %6808 = vmatprep.subr.bf16.mxu0 %v6807_v33  ;;  %6880 = vmatpush3.bf16.msra.mxu1 %v6879_v20  ;;  %v6885_v52 = vpack.c.bf16 %v4632_v53, %v4631_v5 }
 0x637   : > { %6881 = vmatprep.subr.bf16.mxu1 %v8158_v28 }
 0x639   : > { %6810 = vmatpush3.bf16.msra.mxu0 %v6807_v33  ;;  %v6888_v33 = vpack.c.bf16 %v4634_v1, %v4633_v4 }
 0x63a   : > { %6812 = vmatprep.subr.bf16.mxu0 %v6811_v47  ;;  %6883 = vmatpush3.bf16.msra.mxu1 %v6882_v57 }
 0x63b   : > { %6884 = vmatprep.subr.bf16.mxu1 %v8158_v28 }
 0x63d   : > { %6814 = vmatpush3.bf16.msra.mxu0 %v6811_v47  ;;  %v6891_v47 = vpack.c.bf16 %v4636_v12, %v4635_v18 }
 0x63e   : > { %6816 = vmatprep.subr.bf16.mxu0 %v6815_v8  ;;  %6886 = vmatpush3.bf16.msra.mxu1 %v6885_v52 }
 0x63f   : > { %6887 = vmatprep.subr.bf16.mxu1 %v8158_v28 }
 0x641   : > { %6818 = vmatpush3.bf16.msra.mxu0 %v6815_v8  ;;  %v6894_v8 = vpack.c.bf16 %v4638_v61, %v4637_v45 }
 0x642   : > { %6820 = vmatprep.subr.bf16.mxu0 %v6819_v2  ;;  %6889 = vmatpush3.bf16.msra.mxu1 %v6888_v33 }
 0x643   : > { %6890 = vmatprep.subr.bf16.mxu1 %v8158_v28 }
 0x644   : > { %6344 = vmatmul.mubr.f32.vlgmr.msra.gmra.mrb[0].mxu0 %v4019_v25  ;;  %v6924_v25 = vpack.c.bf16 %v4782_v17, %v4781_v19 }
 0x645   : > { %6822 = vmatpush3.bf16.msra.mxu0 %v6819_v2  ;;  %6346 = vmatprep.mubr.f32.mxu0 %v4020_v14  ;;  %v6897_v2 = vpack.c.bf16 %v4640_v44, %v4639_v10  ;;  %v4784_v14 = vld [vmem:[#allocation23 + $0x18] sm:$0xff] }
 0x646   : > { %6824 = vmatprep.subr.bf16.mxu0 %v6823_v3  ;;  %6892 = vmatpush3.bf16.msra.mxu1 %v6891_v47 }
 0x647   : > { %6893 = vmatprep.subr.bf16.mxu1 %v8158_v28 }
 0x648   : > { %6347 = vmatmul.mubr.f32.gmra.mrb[2].mxu0 %v4021_v6  ;;  %v4786_v6 = vld [vmem:[#allocation23 + $0x28] sm:$0xff] }
 0x649   : > { %6826 = vmatpush3.bf16.msra.mxu0 %v6823_v3  ;;  %6349 = vmatprep.mubr.f32.mxu0 %v4022_v50  ;;  %v4783_v3 = vld [vmem:[#allocation23 + $0x10] sm:$0xff]  ;;  %v4590_v50 = vrot.slane %v10952_v56, 4 }
 0x64a   : > { %6828 = vmatprep.subr.bf16.mxu0 %v6827_v51  ;;  %6895 = vmatpush3.bf16.msra.mxu1 %v6894_v8  ;;  %v6927_v24 = vpack.c.bf16 %v4784_v14, %v4783_v3 }
 0x64b   : > { %6896 = vmatprep.subr.bf16.mxu1 %v8158_v28 }
 0x64c   : > { %6350 = vmatmul.mubr.f32.gmra.mrb[4].mxu0 %v4023_v49  ;;  %v6933_v49 = vpack.c.bf16 %v4788_v29, %v4787_v38 }
 0x64d   : > { %6830 = vmatpush3.bf16.msra.mxu0 %v6827_v51  ;;  %6352 = vmatprep.mubr.f32.mxu0 %v4024_v13  ;;  %v6930_v51 = vpack.c.bf16 %v4786_v6, %v4785_v54  ;;  %v4789_v13 = vld [vmem:[#allocation23 + $0x40] sm:$0xff] }
 0x64e   : > { %6832 = vmatprep.subr.bf16.mxu0 %v6831_v9  ;;  %6898 = vmatpush3.bf16.msra.mxu1 %v6897_v2  ;;  %v6936_v35 = vpack.c.bf16 %v4790_v58, %v4789_v13 }
 0x64f   : > { %6899 = vmatprep.subr.bf16.mxu1 %v8158_v28 }
 0x650   : > { %6353 = vmatmul.mubr.f32.gmra.mrb[6].mxu0 %v4025_v43 }
 0x651   : > { %6834 = vmatpush3.bf16.msra.mxu0 %v6831_v9  ;;  %6387 = vmatprep.mubr.f32.mxu0 %v4034_v34  ;;  %v4591_v9 = vadd.f32 %v4590_v50, %v10952_v56  ;;  %v4792_v34 = vld [vmem:[#allocation23 + $0x58] sm:$0xff] }
 0x652   : > { %6836 = vmatprep.subr.bf16.mxu0 %v6835_v32 }
 0x653   : > { %v4592_v43 = vrot.slane %v4591_v9, 2 }
 0x655   : > { %6838 = vmatpush3.bf16.msra.mxu0 %v6835_v32  ;;  %v4791_v32 = vld [vmem:[#allocation23 + $0x50] sm:$0xff]  ;;  %v4593_v36 = vadd.f32 %v4592_v43, %v4591_v9 }
 0x656   : > { %6840 = vmatprep.subr.bf16.mxu0 %v6839_v37  ;;  %v6939_v39 = vpack.c.bf16 %v4792_v34, %v4791_v32  ;;  %v4609_v34 = vld [vmem:[#allocation20] sm:$0xff] }
 0x657   : > { %v4594_v31 = vrot.slane %v4593_v36, 1 }
 0x659   : > { %6842 = vmatpush3.bf16.msra.mxu0 %v6839_v37  ;;  %v4793_v37 = vld [vmem:[#allocation23 + $0x60] sm:$0xff] }
 0x65a   : > { %6844 = vmatprep.subr.bf16.mxu0 %v6843_v0  ;;  %v6942_v56 = vpack.c.bf16 %v4794_v40, %v4793_v37 }
 0x65d   : > { %6846 = vmatpush3.bf16.msra.mxu0 %v6843_v0  ;;  %v4795_v0 = vld [vmem:[#allocation23 + $0x70] sm:$0xff] }
 0x65e   : > { %6848 = vmatprep.subr.bf16.mxu0 %v6847_v27  ;;  %v6945_v48 = vpack.c.bf16 %v4796_v15, %v4795_v0  ;;  %v4613_v15 = vld [vmem:[#allocation20 + $0x20] sm:$0xff] }
 0x661   : > { %6850 = vmatpush3.bf16.msra.mxu0 %v6847_v27  ;;  %v4595_v27 = vadd.f32 %v4594_v31, %v4593_v36  ;;  %v4612_v31 = vld [vmem:[#allocation20 + $0x18] sm:$0xff] }
 0x662   : > { %6923 = vmatprep.subr.bf16.mxu0 %v8158_v28 }
 0x664   : > { %6388 = vmatmul.mubr.f32.vlgmr.msra.gmra.mrb[0].mxu0 %v4035_v62 }
 0x665   : > { %6390 = vmatprep.mubr.f32.mxu0 %v4036_v30  ;;  %6925 = vmatpush3.bf16.msra.mxu0 %v6924_v25 }
 0x666   : > { %6926 = vmatprep.subr.bf16.mxu0 %v8158_v28 }
 0x668   : > { %6391 = vmatmul.mubr.f32.gmra.mrb[2].mxu0 %v4037_v21  ;;  %v11389_v21 = vlaneseq }
 0x669   : > { %6393 = vmatprep.mubr.f32.mxu0 %v4038_v26  ;;  %6928 = vmatpush3.bf16.msra.mxu0 %v6927_v24 }
 0x66a   : > { %6929 = vmatprep.subr.bf16.mxu0 %v8158_v28  ;;  %v4500_v26 = vshrl.u32 %v11389_v21, 7 }
 0x66c   : > { %6394 = vmatmul.mubr.f32.gmra.mrb[4].mxu0 %v4039_v60  ;;  %v4501_v60 = vsub.s32 0, %v4500_v26  ;;  %v4617_v26 = vld [vmem:[#allocation20 + $0x40] sm:$0xff] }
 0x66d   : > { %6396 = vmatprep.mubr.f32.mxu0 %v4040_v16  ;;  %6931 = vmatpush3.bf16.msra.mxu0 %v6930_v51 }
 0x66e   : > { %6932 = vmatprep.subr.bf16.mxu0 %v8158_v28 }
 0x670   : > { %6397 = vmatmul.mubr.f32.gmra.mrb[6].mxu0 %v4041_v23 }
 0x671   : > { %6536 = vmatprep.mubr.msk.f32.mxu0 %vm8159_vm1, %v8160_v42  ;;  %6934 = vmatpush3.bf16.msra.mxu0 %v6933_v49 }
 0x672   : > { %6935 = vmatprep.subr.bf16.mxu0 %v8158_v28 }
 0x675   : > { %6937 = vmatpush3.bf16.msra.mxu0 %v6936_v35 }
 0x676   : > { %6938 = vmatprep.subr.bf16.mxu0 %v8158_v28 }
 0x679   : > { %6940 = vmatpush3.bf16.msra.mxu0 %v6939_v39  ;;  %v4610_v39 = vld [vmem:[#allocation20 + $0x8] sm:$0xff] }
 0x67a   : > { %6941 = vmatprep.subr.bf16.mxu0 %v8158_v28  ;;  %v6900_v37 = vpack.c.bf16 %v4610_v39, %v4609_v34 }
 0x67d   : > { %6943 = vmatpush3.bf16.msra.mxu0 %v6942_v56  ;;  %v4611_v56 = vld [vmem:[#allocation20 + $0x10] sm:$0xff] }
 0x67e   : > { %6944 = vmatprep.subr.bf16.mxu0 %v8158_v28  ;;  %v6903_v0 = vpack.c.bf16 %v4612_v31, %v4611_v56 }
 0x681   : > { %6946 = vmatpush3.bf16.msra.mxu0 %v6945_v48  ;;  %v4614_v48 = vld [vmem:[#allocation20 + $0x28] sm:$0xff] }
 0x684   : > { %6537 = vmatmul.mubr.f32.vlgmr.msra.gmra.mrb[8].mxu0 %v4595_v27  ;;  %v6906_v27 = vpack.c.bf16 %v4614_v48, %v4613_v15 }
 0x6fd   : > { %v4495_v62 = vpop.f32.mrb[0].mxu1 }
 0x6fe   : > { %v6433_v30 = vpop.f32.mrb[1].mxu1  ;;  %v4502_v16 = vrot.slane %v4495_v62, %v4501_v60  ;;  %v4615_v62 = vld [vmem:[#allocation20 + $0x30] sm:$0xff]  ;;  %v4618_v60 = vld [vmem:[#allocation20 + $0x48] sm:$0xff] }
 0x6ff   : > { %v4616_v30 = vld [vmem:[#allocation20 + $0x38] sm:$0xff] }
 0x700   : > { %v6909_v21 = vpack.c.bf16 %v4616_v30, %v4615_v62 }
 0x737   : > { %v6389_v23 = vpop.f32.mrb[0].mxu0 }
 0x738   : > { %v4504_v7 = vadd.f32 %v6389_v23, %v4502_v16  ;;  %v4366_v11 = vpop.f32.mrb[1].mxu0  ;;  %v4620_v23 = vld [vmem:[#allocation20 + $0x58] sm:$0xff] }
 0x739   : > { %v4503_v59 = vadd.f32 %v4502_v16, %v4366_v11  ;;  %v4622_v11 = vld [vmem:[#allocation20 + $0x68] sm:$0xff] }
 0x73a   : > { %v4519_v55 = vadd.f32 %v5352_v46, %v4504_v7  ;;  %v4621_v7 = vld [vmem:[#allocation20 + $0x60] sm:$0xff] }
 0x73b   : > { %v4518_v20 = vadd.f32 %v5352_v46, %v4503_v59  ;;  %v6392_v41 = vpop.f32.mrb[2].mxu0  ;;  %v6918_v59 = vpack.c.bf16 %v4622_v11, %v4621_v7 }
 0x73c   : > { %v4527_v22 = vmax.f32 %v4519_v55, 0.0  ;;  %v4506_v57 = vadd.f32 %v6392_v41, %v4502_v16  ;;  %v4376_v5 = vpop.f32.mrb[3].mxu0  ;;  %v4623_v55 = vld [vmem:[#allocation20 + $0x70] sm:$0xff] }
 0x73d   : > { %v4526_v53 = vmax.f32 %v4518_v20, 0.0  ;;  %v4505_v52 = vadd.f32 %v4502_v16, %v4376_v5  ;;  %v4624_v20 = vld [vmem:[#allocation20 + $0x78] sm:$0xff] }
 0x73e   : > { %4576 = vst [vmem:[#allocation25 + $0x8] sm:$0xff] %v4527_v22  ;;  %v4521_v4 = vadd.f32 %v5352_v46, %v4506_v57  ;;  %v6921_v41 = vpack.c.bf16 %v4624_v20, %v4623_v55 }
 0x73f   : > { %4575 = vst [vmem:[#allocation25] sm:$0xff] %v4526_v53  ;;  %v4596_v1 = vadd.f32 %v4527_v22, %v4526_v53  ;;  %v4520_v33 = vadd.f32 %v5352_v46, %v4505_v52  ;;  %v6395_v18 = vpop.f32.mrb[4].mxu0 }
 0x740   : > { %v4529_v12 = vmax.f32 %v4521_v4, 0.0  ;;  %v4508_v47 = vadd.f32 %v6395_v18, %v4502_v16  ;;  %v4386_v45 = vpop.f32.mrb[5].mxu0 }
 0x741   : > { %v4528_v61 = vmax.f32 %v4520_v33, 0.0  ;;  %v4507_v8 = vadd.f32 %v4502_v16, %v4386_v45  ;;  %v4868_v33 = vld [vmem:[%s11391_s6] sm:$0x1] }
 0x742   : > { %4578 = vst [vmem:[#allocation25 + $0x18] sm:$0xff] %v4529_v12  ;;  %v4523_v10 = vadd.f32 %v5352_v46, %v4508_v47 }
 0x743   : > { %4577 = vst [vmem:[#allocation25 + $0x10] sm:$0xff] %v4528_v61  ;;  %v4597_v44 = vadd.f32 %v4596_v1, %v4528_v61  ;;  %v4522_v2 = vadd.f32 %v5352_v46, %v4507_v8  ;;  %v6398_v19 = vpop.f32.mrb[6].mxu0 }
 0x744   : > { %v4531_v17 = vmax.f32 %v4523_v10, 0.0  ;;  %v4510_v25 = vadd.f32 %v6398_v19, %v4502_v16  ;;  %v4396_v3 = vpop.f32.mrb[7].mxu0 }
 0x745   : > { %v4530_v14 = vmax.f32 %v4522_v2, 0.0  ;;  %v4598_v24 = vadd.f32 %v4597_v44, %v4529_v12  ;;  %v4509_v54 = vadd.f32 %v4502_v16, %v4396_v3  ;;  %v6912_v16 = vpack.c.bf16 %v4618_v60, %v4617_v26 }
 0x746   : > { %4580 = vst [vmem:[#allocation25 + $0x28] sm:$0xff] %v4531_v17  ;;  %v4525_v6 = vadd.f32 %v5352_v46, %v4510_v25 }
 0x747   : > { %4579 = vst [vmem:[#allocation25 + $0x20] sm:$0xff] %v4530_v14  ;;  %v4599_v51 = vadd.f32 %v4598_v24, %v4530_v14  ;;  %v4524_v50 = vadd.f32 %v5352_v46, %v4509_v54 }
 0x748   : > { %v4533_v38 = vmax.f32 %v4525_v6, 0.0 }
 0x749   : > { %v4532_v29 = vmax.f32 %v4524_v50, 0.0  ;;  %v4600_v49 = vadd.f32 %v4599_v51, %v4531_v17 }
 0x74a   : > { %4582 = vst [vmem:[#allocation25 + $0x38] sm:$0xff] %v4533_v38 }
 0x74b   : > { %4581 = vst [vmem:[#allocation25 + $0x30] sm:$0xff] %v4532_v29  ;;  %v4601_v9 = vadd.f32 %v4600_v49, %v4532_v29 }
 0x74d   : > { %v4602_v13 = vadd.f32 %v4601_v9, %v4533_v38 }
 0x74f   : > { %v4603_v58 = vrot.slane %v4602_v13, 4 }
 0x751   : > { %v4604_v35 = vadd.f32 %v4603_v58, %v4602_v13 }
 0x753   : > { %v4605_v43 = vrot.slane %v4604_v35, 2 }
 0x755   : > { %v4606_v32 = vadd.f32 %v4605_v43, %v4604_v35 }
 0x757   : > { %v4607_v36 = vrot.slane %v4606_v32, 1  ;;  %v4863_v22 = vpop.f32.mrb[8].mxu0 }
 0x758   : > { %v6538_v57 = vpop.f32.mrb[9].mxu0 }
 0x759   : > { %v4608_v40 = vadd.f32 %v4607_v36, %v4606_v32 }
 0x75b   : > { %6467 = vmatmul.mubr.f32.vlgmr.msra.gmra.mrb[2].mxu1 %v4608_v40 }
 0x75c   : > { %6901 = vmatpush3.bf16.msra.mxu1 %v6900_v37  ;;  %6501 = vmatprep.mubr.msk.f32.mxu1 %vm8159_vm1, %v8160_v42  ;;  %v4619_v42 = vld [vmem:[#allocation20 + $0x50] sm:$0xff] }
 0x75d   : > { %6902 = vmatprep.subr.bf16.mxu1 %v8158_v28  ;;  %v6915_v46 = vpack.c.bf16 %v4620_v23, %v4619_v42 }
 0x760   : > { %6904 = vmatpush3.bf16.msra.mxu1 %v6903_v0 }
 0x761   : > { %6905 = vmatprep.subr.bf16.mxu1 %v8158_v28 }
 0x764   : > { %6907 = vmatpush3.bf16.msra.mxu1 %v6906_v27 }
 0x765   : > { %6908 = vmatprep.subr.bf16.mxu1 %v8158_v28 }
 0x768   : > { %6910 = vmatpush3.bf16.msra.mxu1 %v6909_v21 }
 0x769   : > { %6911 = vmatprep.subr.bf16.mxu1 %v8158_v28 }
 0x76c   : > { %6913 = vmatpush3.bf16.msra.mxu1 %v6912_v16 }
 0x76d   : > { %6914 = vmatprep.subr.bf16.mxu1 %v8158_v28 }
 0x770   : > { %6916 = vmatpush3.bf16.msra.mxu1 %v6915_v46 }
 0x771   : > { %6917 = vmatprep.subr.bf16.mxu1 %v8158_v28 }
 0x774   : > { %6919 = vmatpush3.bf16.msra.mxu1 %v6918_v59 }
 0x775   : > { %6920 = vmatprep.subr.bf16.mxu1 %v8158_v28 }
 0x778   : > { %6922 = vmatpush3.bf16.msra.mxu1 %v6921_v41 }
 0x77b   : > { %6502 = vmatmul.mubr.f32.vlgmr.msra.gmra.mrb[4].mxu1 %v10969_v63 }
 0x82e   : > { %v4707_v5 = vpop.f32.mrb[2].mxu1 }
 0x82f   : > { %v6468_v53 = vpop.f32.mrb[3].mxu1 }
 0x84e   : > { %v4777_v52 = vpop.f32.mrb[4].mxu1 }
 0x84f   : > { %v4778_v4 = vadd.f32 %v4777_v52, %v4707_v5  ;;  %v6503_v1 = vpop.f32.mrb[5].mxu1 }
 0x851   : > { %v4867_v18 = vadd.f32 %v4863_v22, %v4778_v4 }
 0x853   : > { %v4869_v12 = vadd.f32 %v4868_v33, %v4867_v18 }
 0x855   : > { %v4870_v47 = vmax.f32 %v4869_v12, 0.0 }
 0x857   : > { %4871 = vst [vmem:[#allocation28] sm:$0x1] %v4870_v47 }
 0x858 PF: > { %s11392_s26 = sld [smem:[#allocation43_spill]]  ;;  %s4872_s20 = sand.u32 1, %s8290_s2  }
 0x859   : > { %s5362_s21 = sshll.u32 %s8290_s2, 13  ;;  %s4899_s19 = sshll.u32 %s8651_s27, 4  ;;  %s11021_s19 = int_to_ptr.vmem [resolvable:$true] %s4899_s19 }
 0x85a   : > { %s11393_s28 = sld [smem:[#allocation78_spill]]  ;;  %s11023_s18 = scalar_lea.sflag [#allocation27], %s4872_s20 }
 0x85b   : > { %s7985_s30 = scalar_lea.vmem %s11021_s19, 8192  ;;  %s8161_s1 = smov [#allocation26]  }
 0x85c   : > { %p7986_p10 = scmp.ne.s32.totalorder %s11021_s19, %s7985_s30  ;;  %s7989_s23 = sshll.u32 %s8161_s1, 4  ;;  %s7990_s23 = int_to_ptr.vmem [resolvable:$false] %s7989_s23 }
 0x85d   : > { %s7991_s27 = scalar_lea.vmem %s7990_s23, 16384  ;;  %p7992_p8 = scmp.lt.s32.totalorder %s11021_s19, %s7990_s23 }
 0x85e   : > { %p11394_p4 = scmp.ne.s32.totalorder %s11392_s26, 0  ;;  %p7993_p12 = scmp.lt.s32.totalorder %s7991_s27, %s7985_s30 }
 0x860   : > { %s11019_s9 = scalar_lea.hbm %s11393_s28, %s5362_s21  ;;  %p7987_p13 = pnand %p7986_p10, %p11394_p4 }
 0x861   : > { %p7994_p0 = por %p7993_p12, %p7992_p8 }
 0x862   : > { %p7988_p7 = pneg %p7987_p13 }
 0x864   : > { %p7995_p3 = pnand %p7994_p0, %p7988_p7 }
 0x866   : > { %7998 = shalt.err (!%p7995_p3)
}
 0x867   : > { %s7999_s24 = scalar_lea.hbm %s11019_s9, 8192  ;;  %s8003_s3 = scalar_lea.hbm %s11393_s28, 24576 }
 0x868   : > { %p8000_p2 = scmp.ne.s32.totalorder %s11019_s9, %s7999_s24  ;;  %p8004_p1 = scmp.lt.u32.totalorder %s11019_s9, %s11393_s28 }
 0x869   : > { %p8005_p11 = scmp.lt.u32.totalorder %s8003_s3, %s7999_s24  ;;  %p8007_p10 = scmp.lt.u32.totalorder %s7999_s24, %s11019_s9 }
 0x86a   : > { %p8001_p6 = pnand %p8000_p2, %p11394_p4 }
 0x86b   : > { %p8006_p9 = por %p8005_p11, %p8004_p1 }
 0x86c   : > { %p8002_p5 = pneg %p8001_p6 }
 0x86d   : > { %p8008_p13 = por %p8007_p10, %p8006_p9 }
 0x86f   : > { %p8009_p7 = pnand %p8008_p13, %p8002_p5 }
 0x871   : > { %8012 = shalt.err (!%p8009_p7)
}
 0x872   : > { %s8162_s21 = smov 128   ;;  %s8163_s13 = smov 8  }
 0x873   : > { %7093 = dma.vmem_to_hbm [thread:$0]  (%p11394_p4), %s11021_s19, 8192, %s11019_s9, %s11023_s18, %s8162_s21, %s8162_s21, %s8163_s13  }
 0x874   : > { %s8164_s0 = smov [#allocation25]   ;;  %s8165_s1 = smov [#allocation28]  }
 0x875   : > { %s4883_s30 = sshll.u32 %s8164_s0, 4  ;;  %s4913_s23 = sshll.u32 %s8165_s1, 4  ;;  %s4884_s30 = int_to_ptr.vmem [resolvable:$true] %s4883_s30  ;;  %s11047_s23 = int_to_ptr.vmem [resolvable:$true] %s4913_s23 }
 0x876   : > { %s8013_s27 = scalar_lea.vmem %s4884_s30, 1024  ;;  %p11395_p12 = scmp.eq.s32.totalorder %s8290_s2, 2 }
 0x877   : > { %p8014_p8 = scmp.ne.s32.totalorder %s4884_s30, %s8013_s27  ;;  %p8020_p2 = scmp.lt.s32.totalorder %s4884_s30, %s4884_s30 }
 0x878   : > { %p8021_p6 = scmp.lt.s32.totalorder %s8013_s27, %s8013_s27 }
 0x879   : > { %p8015_p0 = pnand %p8014_p8, %p11395_p12 }
 0x87a   : > { %p8022_p5 = por %p8021_p6, %p8020_p2 }
 0x87b   : > { %p8016_p3 = pneg %p8015_p0 }
 0x87d   : > { %p8023_p1 = pnand %p8022_p5, %p8016_p3 }
 0x87f   : > { %8026 = shalt.err (!%p8023_p1)
}
 0x880   : > { %s11396_s19 = sld [smem:[#allocation77_spill]]  ;;  %p11397_p11 = pmov %p11395_p12 }
 0x886   : > { %s8027_s9 = scalar_lea.hbm %s11396_s19, 1024 }
 0x887   : > { %p8028_p4 = scmp.ne.s32.totalorder %s11396_s19, %s8027_s9  ;;  %p8033_p13 = scmp.lt.u32.totalorder %s8027_s9, %s11396_s19 }
 0x889   : > { %p8029_p9 = pnand %p8028_p4, %p11397_p11 }
 0x88b   : > { %p8030_p10 = pneg %p8029_p9 }
 0x88d   : > { %p8035_p7 = pnand %p8033_p13, %p8030_p10 }
 0x88f   : > { %8038 = shalt.err (!%p8035_p7)
}
 0x890   : > { %p11398_p8 = pmov %p11397_p11  ;;  %s8039_s0 = scalar_lea.vmem %s11047_s23, 16 }
 0x891   : > { %p8040_p12 = scmp.ne.s32.totalorder %s11047_s23, %s8039_s0  ;;  %s8045_s1 = scalar_lea.vmem %s11047_s23, 32 }
 0x892   : > { %7092 = dma.vmem_to_hbm [thread:$0]  (%p11398_p8), %s4884_s30, 1024, %s11396_s19, [#allocation7], %s8162_s21, %s8162_s21, %s8163_s13  }
 0x893   : > { %p11399_p0 = pmov %p11398_p8  ;;  %p8046_p6 = scmp.lt.s32.totalorder %s11047_s23, %s11047_s23 }
 0x894   : > { %p8047_p5 = scmp.lt.s32.totalorder %s8045_s1, %s8039_s0 }
 0x895   : > { %p8041_p3 = pnand %p8040_p12, %p11399_p0 }
 0x896   : > { %p8048_p1 = por %p8047_p5, %p8046_p6 }
 0x897   : > { %p8042_p2 = pneg %p8041_p3 }
 0x899   : > { %p8049_p4 = pnand %p8048_p1, %p8042_p2 }
 0x89b   : > { %8052 = shalt.err (!%p8049_p4)
}
 0x89c   : > { %s11400_s26 = sld [smem:[#allocation79_spill]]  ;;  %p11401_p9 = pmov %p11399_p0 }
 0x8a2   : > { %s8053_s9 = scalar_lea.hbm %s11400_s26, 16 }
 0x8a3   : > { %p8054_p11 = scmp.ne.s32.totalorder %s11400_s26, %s8053_s9  ;;  %p8059_p7 = scmp.lt.u32.totalorder %s8053_s9, %s11400_s26 }
 0x8a5   : > { %p8055_p10 = pnand %p8054_p11, %p11401_p9 }
 0x8a7   : > { %p8056_p13 = pneg %p8055_p10 }
 0x8a9   : > { %p8061_p8 = pnand %p8059_p7, %p8056_p13 }
 0x8ab   : > { %8064 = shalt.err (!%p8061_p8)
}
 0x8ac   : > { %p11402_p12 = pmov %p11399_p0 }
 0x8ae   : > { %7095 = dma.vmem_to_hbm [thread:$0]  (%p11402_p12), %s11047_s23, 16, %s11400_s26, [#allocation27]  }
 0x8af   : > { %8110 = dma.done.wait (%p11399_p0), [#allocation7], 1024   ;;  %p11403_p3 = pmov %p11399_p0 }
 0x8b0   : > { %p11404_p2 = pmov %p11399_p0 }
 0x8b1   : > { %8112 = vsyncadd (%p11403_p3), [#allocation7], 4294966272 }
 0x8b2   : > { %8114 = dma.done.wait (%p11404_p2), [#allocation27], 16   ;;  %p11405_p6 = pmov %p11399_p0 }
 0x8b4   : > { %8116 = vsyncadd (%p11405_p6), [#allocation27], 4294967280 }
 0x8b5 PF: > { %s11406_s3 = sld [smem:[#allocation40_spill]]  ;;  %s11407_s6 = sld [smem:[#allocation44_spill]] }
 0x8bb   : > { %p7170_p5 = scmp.ge.s32.totalorder %s11406_s3, 2  ;;  %s11408_s20 = sadd.s32 4294967294, %s11406_s3  }
 0x8bc   : > { %s4933_s0 = sand.u32 1, %s11408_s20   ;;  %p11409_p1 = scmp.ne.s32.totalorder %s11407_s6, 0 }
 0x8bd   : > { %s4934_s23 = scalar_lea.sflag [#allocation27], %s4933_s0 }
 0x8be   : > { %p7139_p4 = pnand %p7170_p5, %p11409_p1 }
 0x8c0   : > { %8118 = dma.done.wait (!%p7139_p4), %s4934_s23, 8192  }
 0x8c1   : > { %8120 = vsyncadd (!%p7139_p4), %s4934_s23, 4294959104  ;;  %s11410_s24 = sld [smem:[#allocation41_spill]]  ;;  %s11411_s27 = sld [smem:[#allocation39_spill]] }
 0x8c2   : > { %s11412_s23 = sld [smem:[#allocation42_spill]]  ;;  %s11413_s1 = smov %s8127_s22 }
 0x8c7   : > { %p39_p11 = scmp.ge.s32.totalorder %s11410_s24, 5   ;;  %s11414_s22 = smov %s11411_s27 }
 0x8c9   :  { %41 = sbr.rel (!%p39_p11) target bundleno = 24 (0x18), region = 204 }
 0x8d0   :  { %4939 = vsyncpa [#allocation6], 1 }
 0x8d1   :  { %4941 = vsyncpa [#allocation6 + $0x1], 1 }
 0x8d2   :  { %4942 = vsyncpa [#allocation9], 1 }
 0x8d3   :  { %4943 = vsyncpa [#allocation12], 1 }
 0x8d4   :  { %4944 = vsyncpa [#allocation15], 1 }
 0x8d5   :  { %4945 = vsyncpa [#allocation18], 1 }
 0x8d6   :  { %4946 = vsyncpa [#allocation21], 1 }
 0x8d7   :  { %4947 = vsyncpa [#allocation24], 1 }
 0x8d8   :  { %4948 = vsyncpa [#allocation7], 1 }
 0x8d9   :  { %4950 = vsyncpa [#allocation7 + $0x1], 1 }
 0x8da   :  { %4951 = vsyncpa [#allocation27], 1 }
 0x8db   :  { %4953 = vsyncpa [#allocation27 + $0x1], 1 }

</bundles_post_ra>
